<compile_context>
chip_gen: v6e
topology: v6e:2x2x1
jax: 0.10.0
libtpu: 0.0.40
codegen_flags: <defaults>
</compile_context>

<pallas_src>
import functools

import jax
import jax.numpy as jnp
from jax import lax
from jax.experimental import pallas as pl
from jax.experimental.pallas import tpu as pltpu


def _vmem_budget_bytes():
    """Generation-aware scoped-VMEM budget (v7x: 64 MiB physical, v5e/v6e: 128 MiB)."""
    cap = 64 * 1024 * 1024
    try:
        cap = int(pltpu.get_tpu_info().vmem_capacity_bytes)
    except Exception:  # best-effort query; fall back to the conservative v7x figure
        pass
    return int(min(cap * 3 // 4, 100 * 1024 * 1024))


# ---------------- pass 1: fused conv (implicit GEMM) + per-channel stats ----------------
def _conv_stats_kernel(x_ref, w_ref, y_ref, stats_ref, *, kh, kw, stride, h_out, w_out):
    # x_ref:     (1, H_in_p, W_in_p, C_in) bf16  -- whole spatially padded image, NHWC
    # w_ref:     (kh, kw, C_in, C_out)     bf16  -- per-tap weights
    # y_ref:     (1, h_out, w_out, C_out)  bf16  -- conv output (pre-BN intermediate)
    # stats_ref: (1, 2, C_out)             f32   -- per-core partial [sum; sum-of-squares]
    c_in = x_ref.shape[-1]
    c_out = w_ref.shape[-1]
    rows = h_out * w_out

    acc = jnp.zeros((rows, c_out), jnp.float32)
    # Fused im2col: kh*kw shifted matmuls, f32 accumulation on the MXU.
    for dy in range(kh):
        for dx in range(kw):
            if stride == 1:
                patch = x_ref[0, pl.ds(dy, h_out), pl.ds(dx, w_out), :]
            else:
                patch = x_ref[0, pl.ds(dy, h_out, stride), pl.ds(dx, w_out, stride), :]
            acc = acc + jnp.dot(patch.reshape(rows, c_in), w_ref[dy, dx],
                                preferred_element_type=jnp.float32)

    y_bf = acc.astype(y_ref.dtype)
    y_ref[0] = y_bf.reshape(h_out, w_out, c_out)

    # Batch statistics of the stored (quantized) conv output, so pass 2 normalizes
    # exactly what the stats describe.  NOTE: E[y^2]-mean^2 in f32 can cancel for very
    # large batches; clamped in the wrapper.
    yf = y_bf.astype(jnp.float32)
    s = jnp.sum(yf, axis=0, keepdims=True)          # (1, C_out)
    sq = jnp.sum(yf * yf, axis=0, keepdims=True)    # (1, C_out)

    j = pl.program_id(1)

    @pl.when(j == 0)
    def _():
        stats_ref[0, 0:1, :] = s
        stats_ref[0, 1:2, :] = sq

    @pl.when(j > 0)
    def _():
        stats_ref[0, 0:1, :] = stats_ref[0, 0:1, :] + s
        stats_ref[0, 1:2, :] = stats_ref[0, 1:2, :] + sq


# ---------------- pass 2: elementwise normalize + affine + LeakyReLU --------------------
def _norm_act_kernel(y_ref, scale_ref, shift_ref, o_ref, *, neg_slope):
    z = y_ref[...].astype(jnp.float32) * scale_ref[...] + shift_ref[...]
    o_ref[...] = jnp.where(z >= 0, z, neg_slope * z)


def conv_block(x, weight, gamma, beta, *, stride=1, padding=0, eps=1e-5,
               neg_slope=0.1, block_m=None, mxu_dtype=jnp.bfloat16):
    """x: (N, C_in, H, W) f32; weight: (C_out, C_in, kh, kw); gamma/beta: (C_out,)."""
    n, c_in, h, w = x.shape
    c_out, _, kh, kw = weight.shape
    h_out = (h + 2 * padding - kh) // stride + 1
    w_out = (w + 2 * padding - kw) // stride + 1
    m = n * h_out * w_out

    vmem_budget = _vmem_budget_bytes()

    # ---- layouts: NHWC activations (channels on lanes), per-tap weights ----------------
    x_nhwc = jnp.pad(x.transpose(0, 2, 3, 1),
                     ((0, 0), (padding, padding), (padding, padding), (0, 0)))
    x_nhwc = x_nhwc.astype(mxu_dtype)                         # (N, H+2p, W+2p, C_in)
    w_taps = weight.transpose(2, 3, 1, 0).astype(mxu_dtype)   # (kh, kw, C_in, C_out)
    h_in_p, w_in_p = h + 2 * padding, w + 2 * padding

    # ---- pass 1: grid (cores, imgs/core) so the stats accumulation is split per core ---
    n_cores = 2 if (n >= 2 and n % 2 == 0) else 1
    n_per_core = n // n_cores

    conv_y, stats = pl.pallas_call(
        functools.partial(_conv_stats_kernel, kh=kh, kw=kw, stride=stride,
                          h_out=h_out, w_out=w_out),
        out_shape=(
            jax.ShapeDtypeStruct((n, h_out, w_out, c_out), mxu_dtype),
            jax.ShapeDtypeStruct((n_cores, 2, c_out), jnp.float32),
        ),
        grid_spec=pltpu.PrefetchScalarGridSpec(
            num_scalar_prefetch=0,
            grid=(n_cores, n_per_core),
            in_specs=[
                pl.BlockSpec((1, h_in_p, w_in_p, c_in),
                             lambda c, j: (c * n_per_core + j, 0, 0, 0)),
                pl.BlockSpec((kh, kw, c_in, c_out), lambda c, j: (0, 0, 0, 0)),
            ],
            out_specs=(
                pl.BlockSpec((1, h_out, w_out, c_out),
                             lambda c, j: (c * n_per_core + j, 0, 0, 0)),
                pl.BlockSpec((1, 2, c_out), lambda c, j: (c, 0, 0)),
            ),
        ),
        compiler_params=pltpu.CompilerParams(
            dimension_semantics=("parallel", "arbitrary"),
            vmem_limit_bytes=vmem_budget,
        ),
    )(x_nhwc, w_taps)

    # ---- fold stats into per-channel scale/shift ONCE (not per grid step) --------------
    sums = stats.sum(axis=0)                               # (2, C_out) global sums
    mean = sums[0] / m
    var = jnp.maximum(sums[1] / m - mean * mean, 0.0)      # biased var (PyTorch BN norm)
    inv_std = lax.rsqrt(var + eps)
    scale_v = gamma.astype(jnp.float32) * inv_std
    shift_v = beta.astype(jnp.float32) - mean * scale_v
    scale = scale_v.reshape(1, c_out)
    shift = shift_v.reshape(1, c_out)

    # ---- pass 2: elementwise normalize over the bf16 intermediate, large M tiles -------
    y2d = conv_y.reshape(m, c_out)                         # contiguity-preserving reshape

    if block_m is None:
        per_row = 2 * c_out * (2 + 4) + 64                 # double-buffered bf16 in + f32 out
        block_m = max(512, min(vmem_budget // per_row, 32768))
    if m <= block_m:
        tm, num_tiles = m, 1
    else:
        tm = max(8, (block_m // 8) * 8)
        num_tiles = (m + tm - 1) // tm                     # ragged tail handled by Pallas

    out2d = pl.pallas_call(
        functools.partial(_norm_act_kernel, neg_slope=float(neg_slope)),
        out_shape=jax.ShapeDtypeStruct((m, c_out), jnp.float32),
        grid_spec=pltpu.PrefetchScalarGridSpec(
            num_scalar_prefetch=0,
            grid=(num_tiles,),
            in_specs=[
                pl.BlockSpec((tm, c_out), lambda i: (i, 0)),
                pl.BlockSpec((1, c_out), lambda i: (0, 0)),
                pl.BlockSpec((1, c_out), lambda i: (0, 0)),
            ],
            out_specs=pl.BlockSpec((tm, c_out), lambda i: (i, 0)),
        ),
        compiler_params=pltpu.CompilerParams(
            dimension_semantics=("parallel",),
            vmem_limit_bytes=vmem_budget,
        ),
    )(y2d, scale, shift)

    # Back to NCHW per the PyTorch module contract.
    return out2d.reshape(n, h_out, w_out, c_out).transpose(0, 3, 1, 2)


def _reference(x, weight, gamma, beta, *, stride, padding, eps=1e-5, neg_slope=0.1):
    """Pure-f32 PyTorch-style reference: Conv2d(bias=False) -> BN (batch stats) -> LeakyReLU."""
    y = lax.conv_general_dilated(
        x, weight, (stride, stride),
        [(padding, padding), (padding, padding)],
        dimension_numbers=("NCHW", "OIHW", "NCHW"))
    mean = y.mean(axis=(0, 2, 3), keepdims=True)
    var = y.var(axis=(0, 2, 3), keepdims=True)             # biased, as PyTorch BN normalizes
    y_hat = (y - mean) / jnp.sqrt(var + eps)
    z = y_hat * gamma.reshape(1, -1, 1, 1) + beta.reshape(1, -1, 1, 1)
    return jnp.where(z >= 0, z, neg_slope * z)


if __name__ == "__main__":
    # ConvBlock(size=3, ch_in=4, ch_out=8, stride=1, padding=1)
    size, ch_in, ch_out, stride, padding = 3, 4, 8, 1, 1
    batch, spatial = 2, 16

    key = jax.random.PRNGKey(0)
    kx, kw_, kg, kb = jax.random.split(key, 4)

    x = jax.random.normal(kx, (batch, ch_in, spatial, spatial), dtype=jnp.float32)
    weight = jax.random.normal(kw_, (ch_out, ch_in, size, size), dtype=jnp.float32) * 0.1
    gamma = 1.0 + 0.1 * jax.random.normal(kg, (ch_out,), dtype=jnp.float32)
    beta = 0.1 * jax.random.normal(kb, (ch_out,), dtype=jnp.float32)

    fwd = jax.jit(functools.partial(conv_block, stride=stride, padding=padding))
    out = jax.block_until_ready(fwd(x, weight, gamma, beta))
    assert out.shape == (batch, ch_out, spatial, spatial), out.shape

    # Tolerance covers the intended bf16 MXU-operand / bf16-intermediate quantization.
    ref = _reference(x, weight, gamma, beta, stride=stride, padding=padding)
    err = float(jnp.max(jnp.abs(out - ref)))
    assert jnp.allclose(out, ref, atol=6e-2, rtol=6e-2), err

    print("KERNEL_OK")
</pallas_src>

<mosaic_0001>
module attributes {stable_mosaic.version = 11 : i64} {
  func.func @_conv_stats_kernel(%arg0: i32, %arg1: i32, %arg2: memref<1x18x18x4xbf16, #tpu.memory_space<vmem>>, %arg3: memref<3x3x4x8xbf16, #tpu.memory_space<vmem>>, %arg4: memref<1x16x16x8xbf16, #tpu.memory_space<vmem>>, %arg5: memref<1x2x8xf32, #tpu.memory_space<vmem>>) attributes {dimension_semantics = [#tpu.dimension_semantics<parallel>, #tpu.dimension_semantics<arbitrary>], iteration_bounds = array<i64: 2, 1>, scalar_prefetch = 0 : i64, scratch_operands = 0 : i64, tpu.core_type = #tpu.core_type<tc>, window_params = [{transform_indices = @transform_0, window_bounds = array<i64: 1, 18, 18, 4>}, {pipeline_mode = #tpu.pipeline_mode<synchronous>, transform_indices = @transform_1, window_bounds = array<i64: 3, 3, 4, 8>}, {transform_indices = @transform_2, window_bounds = array<i64: 1, 16, 16, 8>}, {transform_indices = @transform_3, window_bounds = array<i64: 1, 2, 8>}]} {
    %cst = arith.constant 0.000000e+00 : f32
    %0 = vector.broadcast %cst : f32 to vector<256x8xf32>
    %c0 = arith.constant 0 : index
    %c0_0 = arith.constant 0 : index
    %c0_1 = arith.constant 0 : index
    %c0_2 = arith.constant 0 : index
    %1 = vector.load %arg2[%c0, %c0_0, %c0_1, %c0_2] : memref<1x18x18x4xbf16, #tpu.memory_space<vmem>>, vector<1x16x16x4xbf16>
    %2 = vector.shape_cast %1 : vector<1x16x16x4xbf16> to vector<16x16x4xbf16>
    %3 = vector.shape_cast %2 : vector<16x16x4xbf16> to vector<256x4xbf16>
    %c0_3 = arith.constant 0 : index
    %c0_4 = arith.constant 0 : index
    %c0_5 = arith.constant 0 : index
    %c0_6 = arith.constant 0 : index
    %4 = vector.load %arg3[%c0_3, %c0_4, %c0_5, %c0_6] : memref<3x3x4x8xbf16, #tpu.memory_space<vmem>>, vector<1x1x4x8xbf16>
    %5 = vector.shape_cast %4 : vector<1x1x4x8xbf16> to vector<4x8xbf16>
    %cst_7 = arith.constant dense<0.000000e+00> : vector<256x8xf32>
    %6 = tpu.matmul %3, %5, %cst_7 {dimension_numbers = #tpu.dot_dimension_numbers<[1], [0], [0], [1], [0, 0, 1, 1], [], []>} : vector<256x4xbf16>, vector<4x8xbf16>, vector<256x8xf32> -> vector<256x8xf32>
    %7 = arith.addf %0, %6 : vector<256x8xf32>
    %c0_8 = arith.constant 0 : index
    %c0_9 = arith.constant 0 : index
    %c1 = arith.constant 1 : index
    %c0_10 = arith.constant 0 : index
    %8 = vector.load %arg2[%c0_8, %c0_9, %c1, %c0_10] : memref<1x18x18x4xbf16, #tpu.memory_space<vmem>>, vector<1x16x16x4xbf16>
    %9 = vector.shape_cast %8 : vector<1x16x16x4xbf16> to vector<16x16x4xbf16>
    %10 = vector.shape_cast %9 : vector<16x16x4xbf16> to vector<256x4xbf16>
    %c0_11 = arith.constant 0 : index
    %c1_12 = arith.constant 1 : index
    %c0_13 = arith.constant 0 : index
    %c0_14 = arith.constant 0 : index
    %11 = vector.load %arg3[%c0_11, %c1_12, %c0_13, %c0_14] : memref<3x3x4x8xbf16, #tpu.memory_space<vmem>>, vector<1x1x4x8xbf16>
    %12 = vector.shape_cast %11 : vector<1x1x4x8xbf16> to vector<4x8xbf16>
    %cst_15 = arith.constant dense<0.000000e+00> : vector<256x8xf32>
    %13 = tpu.matmul %10, %12, %cst_15 {dimension_numbers = #tpu.dot_dimension_numbers<[1], [0], [0], [1], [0, 0, 1, 1], [], []>} : vector<256x4xbf16>, vector<4x8xbf16>, vector<256x8xf32> -> vector<256x8xf32>
    %14 = arith.addf %7, %13 : vector<256x8xf32>
    %c0_16 = arith.constant 0 : index
    %c0_17 = arith.constant 0 : index
    %c2 = arith.constant 2 : index
    %c0_18 = arith.constant 0 : index
    %15 = vector.load %arg2[%c0_16, %c0_17, %c2, %c0_18] : memref<1x18x18x4xbf16, #tpu.memory_space<vmem>>, vector<1x16x16x4xbf16>
    %16 = vector.shape_cast %15 : vector<1x16x16x4xbf16> to vector<16x16x4xbf16>
    %17 = vector.shape_cast %16 : vector<16x16x4xbf16> to vector<256x4xbf16>
    %c0_19 = arith.constant 0 : index
    %c2_20 = arith.constant 2 : index
    %c0_21 = arith.constant 0 : index
    %c0_22 = arith.constant 0 : index
    %18 = vector.load %arg3[%c0_19, %c2_20, %c0_21, %c0_22] : memref<3x3x4x8xbf16, #tpu.memory_space<vmem>>, vector<1x1x4x8xbf16>
    %19 = vector.shape_cast %18 : vector<1x1x4x8xbf16> to vector<4x8xbf16>
    %cst_23 = arith.constant dense<0.000000e+00> : vector<256x8xf32>
    %20 = tpu.matmul %17, %19, %cst_23 {dimension_numbers = #tpu.dot_dimension_numbers<[1], [0], [0], [1], [0, 0, 1, 1], [], []>} : vector<256x4xbf16>, vector<4x8xbf16>, vector<256x8xf32> -> vector<256x8xf32>
    %21 = arith.addf %14, %20 : vector<256x8xf32>
    %c0_24 = arith.constant 0 : index
    %c1_25 = arith.constant 1 : index
    %c0_26 = arith.constant 0 : index
    %c0_27 = arith.constant 0 : index
    %22 = vector.load %arg2[%c0_24, %c1_25, %c0_26, %c0_27] : memref<1x18x18x4xbf16, #tpu.memory_space<vmem>>, vector<1x16x16x4xbf16>
    %23 = vector.shape_cast %22 : vector<1x16x16x4xbf16> to vector<16x16x4xbf16>
    %24 = vector.shape_cast %23 : vector<16x16x4xbf16> to vector<256x4xbf16>
    %c1_28 = arith.constant 1 : index
    %c0_29 = arith.constant 0 : index
    %c0_30 = arith.constant 0 : index
    %c0_31 = arith.constant 0 : index
    %25 = vector.load %arg3[%c1_28, %c0_29, %c0_30, %c0_31] : memref<3x3x4x8xbf16, #tpu.memory_space<vmem>>, vector<1x1x4x8xbf16>
    %26 = vector.shape_cast %25 : vector<1x1x4x8xbf16> to vector<4x8xbf16>
    %cst_32 = arith.constant dense<0.000000e+00> : vector<256x8xf32>
    %27 = tpu.matmul %24, %26, %cst_32 {dimension_numbers = #tpu.dot_dimension_numbers<[1], [0], [0], [1], [0, 0, 1, 1], [], []>} : vector<256x4xbf16>, vector<4x8xbf16>, vector<256x8xf32> -> vector<256x8xf32>
    %28 = arith.addf %21, %27 : vector<256x8xf32>
    %c0_33 = arith.constant 0 : index
    %c1_34 = arith.constant 1 : index
    %c1_35 = arith.constant 1 : index
    %c0_36 = arith.constant 0 : index
    %29 = vector.load %arg2[%c0_33, %c1_34, %c1_35, %c0_36] : memref<1x18x18x4xbf16, #tpu.memory_space<vmem>>, vector<1x16x16x4xbf16>
    %30 = vector.shape_cast %29 : vector<1x16x16x4xbf16> to vector<16x16x4xbf16>
    %31 = vector.shape_cast %30 : vector<16x16x4xbf16> to vector<256x4xbf16>
    %c1_37 = arith.constant 1 : index
    %c1_38 = arith.constant 1 : index
    %c0_39 = arith.constant 0 : index
    %c0_40 = arith.constant 0 : index
    %32 = vector.load %arg3[%c1_37, %c1_38, %c0_39, %c0_40] : memref<3x3x4x8xbf16, #tpu.memory_space<vmem>>, vector<1x1x4x8xbf16>
    %33 = vector.shape_cast %32 : vector<1x1x4x8xbf16> to vector<4x8xbf16>
    %cst_41 = arith.constant dense<0.000000e+00> : vector<256x8xf32>
    %34 = tpu.matmul %31, %33, %cst_41 {dimension_numbers = #tpu.dot_dimension_numbers<[1], [0], [0], [1], [0, 0, 1, 1], [], []>} : vector<256x4xbf16>, vector<4x8xbf16>, vector<256x8xf32> -> vector<256x8xf32>
    %35 = arith.addf %28, %34 : vector<256x8xf32>
    %c0_42 = arith.constant 0 : index
    %c1_43 = arith.constant 1 : index
    %c2_44 = arith.constant 2 : index
    %c0_45 = arith.constant 0 : index
    %36 = vector.load %arg2[%c0_42, %c1_43, %c2_44, %c0_45] : memref<1x18x18x4xbf16, #tpu.memory_space<vmem>>, vector<1x16x16x4xbf16>
    %37 = vector.shape_cast %36 : vector<1x16x16x4xbf16> to vector<16x16x4xbf16>
    %38 = vector.shape_cast %37 : vector<16x16x4xbf16> to vector<256x4xbf16>
    %c1_46 = arith.constant 1 : index
    %c2_47 = arith.constant 2 : index
    %c0_48 = arith.constant 0 : index
    %c0_49 = arith.constant 0 : index
    %39 = vector.load %arg3[%c1_46, %c2_47, %c0_48, %c0_49] : memref<3x3x4x8xbf16, #tpu.memory_space<vmem>>, vector<1x1x4x8xbf16>
    %40 = vector.shape_cast %39 : vector<1x1x4x8xbf16> to vector<4x8xbf16>
    %cst_50 = arith.constant dense<0.000000e+00> : vector<256x8xf32>
    %41 = tpu.matmul %38, %40, %cst_50 {dimension_numbers = #tpu.dot_dimension_numbers<[1], [0], [0], [1], [0, 0, 1, 1], [], []>} : vector<256x4xbf16>, vector<4x8xbf16>, vector<256x8xf32> -> vector<256x8xf32>
    %42 = arith.addf %35, %41 : vector<256x8xf32>
    %c0_51 = arith.constant 0 : index
    %c2_52 = arith.constant 2 : index
    %c0_53 = arith.constant 0 : index
    %c0_54 = arith.constant 0 : index
    %43 = vector.load %arg2[%c0_51, %c2_52, %c0_53, %c0_54] : memref<1x18x18x4xbf16, #tpu.memory_space<vmem>>, vector<1x16x16x4xbf16>
    %44 = vector.shape_cast %43 : vector<1x16x16x4xbf16> to vector<16x16x4xbf16>
    %45 = vector.shape_cast %44 : vector<16x16x4xbf16> to vector<256x4xbf16>
    %c2_55 = arith.constant 2 : index
    %c0_56 = arith.constant 0 : index
    %c0_57 = arith.constant 0 : index
    %c0_58 = arith.constant 0 : index
    %46 = vector.load %arg3[%c2_55, %c0_56, %c0_57, %c0_58] : memref<3x3x4x8xbf16, #tpu.memory_space<vmem>>, vector<1x1x4x8xbf16>
    %47 = vector.shape_cast %46 : vector<1x1x4x8xbf16> to vector<4x8xbf16>
    %cst_59 = arith.constant dense<0.000000e+00> : vector<256x8xf32>
    %48 = tpu.matmul %45, %47, %cst_59 {dimension_numbers = #tpu.dot_dimension_numbers<[1], [0], [0], [1], [0, 0, 1, 1], [], []>} : vector<256x4xbf16>, vector<4x8xbf16>, vector<256x8xf32> -> vector<256x8xf32>
    %49 = arith.addf %42, %48 : vector<256x8xf32>
    %c0_60 = arith.constant 0 : index
    %c2_61 = arith.constant 2 : index
    %c1_62 = arith.constant 1 : index
    %c0_63 = arith.constant 0 : index
    %50 = vector.load %arg2[%c0_60, %c2_61, %c1_62, %c0_63] : memref<1x18x18x4xbf16, #tpu.memory_space<vmem>>, vector<1x16x16x4xbf16>
    %51 = vector.shape_cast %50 : vector<1x16x16x4xbf16> to vector<16x16x4xbf16>
    %52 = vector.shape_cast %51 : vector<16x16x4xbf16> to vector<256x4xbf16>
    %c2_64 = arith.constant 2 : index
    %c1_65 = arith.constant 1 : index
    %c0_66 = arith.constant 0 : index
    %c0_67 = arith.constant 0 : index
    %53 = vector.load %arg3[%c2_64, %c1_65, %c0_66, %c0_67] : memref<3x3x4x8xbf16, #tpu.memory_space<vmem>>, vector<1x1x4x8xbf16>
    %54 = vector.shape_cast %53 : vector<1x1x4x8xbf16> to vector<4x8xbf16>
    %cst_68 = arith.constant dense<0.000000e+00> : vector<256x8xf32>
    %55 = tpu.matmul %52, %54, %cst_68 {dimension_numbers = #tpu.dot_dimension_numbers<[1], [0], [0], [1], [0, 0, 1, 1], [], []>} : vector<256x4xbf16>, vector<4x8xbf16>, vector<256x8xf32> -> vector<256x8xf32>
    %56 = arith.addf %49, %55 : vector<256x8xf32>
    %c0_69 = arith.constant 0 : index
    %c2_70 = arith.constant 2 : index
    %c2_71 = arith.constant 2 : index
    %c0_72 = arith.constant 0 : index
    %57 = vector.load %arg2[%c0_69, %c2_70, %c2_71, %c0_72] : memref<1x18x18x4xbf16, #tpu.memory_space<vmem>>, vector<1x16x16x4xbf16>
    %58 = vector.shape_cast %57 : vector<1x16x16x4xbf16> to vector<16x16x4xbf16>
    %59 = vector.shape_cast %58 : vector<16x16x4xbf16> to vector<256x4xbf16>
    %c2_73 = arith.constant 2 : index
    %c2_74 = arith.constant 2 : index
    %c0_75 = arith.constant 0 : index
    %c0_76 = arith.constant 0 : index
    %60 = vector.load %arg3[%c2_73, %c2_74, %c0_75, %c0_76] : memref<3x3x4x8xbf16, #tpu.memory_space<vmem>>, vector<1x1x4x8xbf16>
    %61 = vector.shape_cast %60 : vector<1x1x4x8xbf16> to vector<4x8xbf16>
    %cst_77 = arith.constant dense<0.000000e+00> : vector<256x8xf32>
    %62 = tpu.matmul %59, %61, %cst_77 {dimension_numbers = #tpu.dot_dimension_numbers<[1], [0], [0], [1], [0, 0, 1, 1], [], []>} : vector<256x4xbf16>, vector<4x8xbf16>, vector<256x8xf32> -> vector<256x8xf32>
    %63 = arith.addf %56, %62 : vector<256x8xf32>
    %64 = arith.truncf %63 : vector<256x8xf32> to vector<256x8xbf16>
    %65 = vector.shape_cast %64 : vector<256x8xbf16> to vector<16x16x8xbf16>
    %c0_78 = arith.constant 0 : index
    %c0_79 = arith.constant 0 : index
    %c0_80 = arith.constant 0 : index
    %c0_81 = arith.constant 0 : index
    %66 = vector.load %arg4[%c0_78, %c0_79, %c0_80, %c0_81] : memref<1x16x16x8xbf16, #tpu.memory_space<vmem>>, vector<1x16x16x8xbf16>
    %67 = vector.shape_cast %66 : vector<1x16x16x8xbf16> to vector<16x16x8xbf16>
    %68 = vector.shape_cast %65 : vector<16x16x8xbf16> to vector<1x16x16x8xbf16>
    tpu.vector_store %arg4[%c0_78, %c0_79, %c0_80, %c0_81], %68 {strides = array<i32>} : memref<1x16x16x8xbf16, #tpu.memory_space<vmem>>, vector<1x16x16x8xbf16>,
    %69 = arith.extf %64 : vector<256x8xbf16> to vector<256x8xf32>
    %cst_82 = arith.constant dense<0.000000e+00> : vector<8xf32>
    %70 = vector.multi_reduction <add>, %69, %cst_82 [0] : vector<256x8xf32> to vector<8xf32>
    %71 = vector.shape_cast %70 : vector<8xf32> to vector<1x8xf32>
    %72 = arith.mulf %69, %69 : vector<256x8xf32>
    %cst_83 = arith.constant dense<0.000000e+00> : vector<8xf32>
    %73 = vector.multi_reduction <add>, %72, %cst_83 [0] : vector<256x8xf32> to vector<8xf32>
    %74 = vector.shape_cast %73 : vector<8xf32> to vector<1x8xf32>
    %c0_i32 = arith.constant 0 : i32
    %75 = arith.cmpi eq, %arg1, %c0_i32 : i32
    %76 = arith.extui %75 : i1 to i32
    %c0_i32_84 = arith.constant 0 : i32
    %77 = arith.cmpi ne, %76, %c0_i32_84 : i32
    scf.if %77 {
      %c0_87 = arith.constant 0 : index
      %c0_88 = arith.constant 0 : index
      %c0_89 = arith.constant 0 : index
      %81 = vector.load %arg5[%c0_87, %c0_88, %c0_89] : memref<1x2x8xf32, #tpu.memory_space<vmem>>, vector<1x1x8xf32>
      %82 = vector.shape_cast %81 : vector<1x1x8xf32> to vector<1x8xf32>
      %83 = vector.shape_cast %71 : vector<1x8xf32> to vector<1x1x8xf32>
      tpu.vector_store %arg5[%c0_87, %c0_88, %c0_89], %83 {strides = array<i32>} : memref<1x2x8xf32, #tpu.memory_space<vmem>>, vector<1x1x8xf32>,
      %c0_90 = arith.constant 0 : index
      %c1_91 = arith.constant 1 : index
      %c0_92 = arith.constant 0 : index
      %84 = vector.load %arg5[%c0_90, %c1_91, %c0_92] : memref<1x2x8xf32, #tpu.memory_space<vmem>>, vector<1x1x8xf32>
      %85 = vector.shape_cast %84 : vector<1x1x8xf32> to vector<1x8xf32>
      %86 = vector.shape_cast %74 : vector<1x8xf32> to vector<1x1x8xf32>
      tpu.vector_store %arg5[%c0_90, %c1_91, %c0_92], %86 {strides = array<i32>} : memref<1x2x8xf32, #tpu.memory_space<vmem>>, vector<1x1x8xf32>,
    } else {
    }
    %c0_i32_85 = arith.constant 0 : i32
    %78 = arith.cmpi sgt, %arg1, %c0_i32_85 : i32
    %79 = arith.extui %78 : i1 to i32
    %c0_i32_86 = arith.constant 0 : i32
    %80 = arith.cmpi ne, %79, %c0_i32_86 : i32
    scf.if %80 {
      %c0_87 = arith.constant 0 : index
      %c0_88 = arith.constant 0 : index
      %c0_89 = arith.constant 0 : index
      %81 = vector.load %arg5[%c0_87, %c0_88, %c0_89] : memref<1x2x8xf32, #tpu.memory_space<vmem>>, vector<1x1x8xf32>
      %82 = vector.shape_cast %81 : vector<1x1x8xf32> to vector<1x8xf32>
      %83 = arith.addf %82, %71 : vector<1x8xf32>
      %c0_90 = arith.constant 0 : index
      %c0_91 = arith.constant 0 : index
      %c0_92 = arith.constant 0 : index
      %84 = vector.load %arg5[%c0_90, %c0_91, %c0_92] : memref<1x2x8xf32, #tpu.memory_space<vmem>>, vector<1x1x8xf32>
      %85 = vector.shape_cast %84 : vector<1x1x8xf32> to vector<1x8xf32>
      %86 = vector.shape_cast %83 : vector<1x8xf32> to vector<1x1x8xf32>
      tpu.vector_store %arg5[%c0_90, %c0_91, %c0_92], %86 {strides = array<i32>} : memref<1x2x8xf32, #tpu.memory_space<vmem>>, vector<1x1x8xf32>,
      %c0_93 = arith.constant 0 : index
      %c1_94 = arith.constant 1 : index
      %c0_95 = arith.constant 0 : index
      %87 = vector.load %arg5[%c0_93, %c1_94, %c0_95] : memref<1x2x8xf32, #tpu.memory_space<vmem>>, vector<1x1x8xf32>
      %88 = vector.shape_cast %87 : vector<1x1x8xf32> to vector<1x8xf32>
      %89 = arith.addf %88, %74 : vector<1x8xf32>
      %c0_96 = arith.constant 0 : index
      %c1_97 = arith.constant 1 : index
      %c0_98 = arith.constant 0 : index
      %90 = vector.load %arg5[%c0_96, %c1_97, %c0_98] : memref<1x2x8xf32, #tpu.memory_space<vmem>>, vector<1x1x8xf32>
      %91 = vector.shape_cast %90 : vector<1x1x8xf32> to vector<1x8xf32>
      %92 = vector.shape_cast %89 : vector<1x8xf32> to vector<1x1x8xf32>
      tpu.vector_store %arg5[%c0_96, %c1_97, %c0_98], %92 {strides = array<i32>} : memref<1x2x8xf32, #tpu.memory_space<vmem>>, vector<1x1x8xf32>,
    } else {
    }
    return
  }
  func.func @transform_0(%arg0: i32, %arg1: i32) -> (i32, i32, i32, i32) {
    %c1_i32 = arith.constant 1 : i32
    %0 = arith.muli %arg0, %c1_i32 : i32
    %1 = arith.addi %0, %arg1 : i32
    %c0_i32 = arith.constant 0 : i32
    %c0_i32_0 = arith.constant 0 : i32
    %c0_i32_1 = arith.constant 0 : i32
    %c0_i32_2 = arith.constant 0 : i32
    return %1, %c0_i32, %c0_i32_0, %c0_i32_1 : i32, i32, i32, i32
  }
  func.func @transform_1(%arg0: i32, %arg1: i32) -> (i32, i32, i32, i32) {
    %c0_i32 = arith.constant 0 : i32
    %c0_i32_0 = arith.constant 0 : i32
    %c0_i32_1 = arith.constant 0 : i32
    %c0_i32_2 = arith.constant 0 : i32
    %c0_i32_3 = arith.constant 0 : i32
    return %c0_i32, %c0_i32_0, %c0_i32_1, %c0_i32_2 : i32, i32, i32, i32
  }
  func.func @transform_2(%arg0: i32, %arg1: i32) -> (i32, i32, i32, i32) {
    %c1_i32 = arith.constant 1 : i32
    %0 = arith.muli %arg0, %c1_i32 : i32
    %1 = arith.addi %0, %arg1 : i32
    %c0_i32 = arith.constant 0 : i32
    %c0_i32_0 = arith.constant 0 : i32
    %c0_i32_1 = arith.constant 0 : i32
    %c0_i32_2 = arith.constant 0 : i32
    return %1, %c0_i32, %c0_i32_0, %c0_i32_1 : i32, i32, i32, i32
  }
  func.func @transform_3(%arg0: i32, %arg1: i32) -> (i32, i32, i32) {
    %c0_i32 = arith.constant 0 : i32
    %c0_i32_0 = arith.constant 0 : i32
    %c0_i32_1 = arith.constant 0 : i32
    return %arg0, %c0_i32, %c0_i32_0 : i32, i32, i32
  }
}

module attributes {stable_mosaic.version = 11 : i64} {
  func.func @_norm_act_kernel(%arg0: i32, %arg1: memref<512x8xbf16, #tpu.memory_space<vmem>>, %arg2: memref<1x8xf32, #tpu.memory_space<vmem>>, %arg3: memref<1x8xf32, #tpu.memory_space<vmem>>, %arg4: memref<512x8xf32, #tpu.memory_space<vmem>>) attributes {dimension_semantics = [#tpu.dimension_semantics<parallel>], iteration_bounds = array<i64: 1>, scalar_prefetch = 0 : i64, scratch_operands = 0 : i64, tpu.core_type = #tpu.core_type<tc>, window_params = [{transform_indices = @transform_0, window_bounds = array<i64: 512, 8>}, {pipeline_mode = #tpu.pipeline_mode<synchronous>, transform_indices = @transform_1, window_bounds = array<i64: 1, 8>}, {pipeline_mode = #tpu.pipeline_mode<synchronous>, transform_indices = @transform_2, window_bounds = array<i64: 1, 8>}, {transform_indices = @transform_3, window_bounds = array<i64: 512, 8>}]} {
    %c0 = arith.constant 0 : index
    %c0_0 = arith.constant 0 : index
    %0 = vector.load %arg1[%c0, %c0_0] : memref<512x8xbf16, #tpu.memory_space<vmem>>, vector<512x8xbf16>
    %1 = arith.extf %0 : vector<512x8xbf16> to vector<512x8xf32>
    %c0_1 = arith.constant 0 : index
    %c0_2 = arith.constant 0 : index
    %2 = vector.load %arg2[%c0_1, %c0_2] : memref<1x8xf32, #tpu.memory_space<vmem>>, vector<1x8xf32>
    %3 = vector.broadcast %2 : vector<1x8xf32> to vector<512x8xf32>
    %4 = arith.mulf %1, %3 : vector<512x8xf32>
    %c0_3 = arith.constant 0 : index
    %c0_4 = arith.constant 0 : index
    %5 = vector.load %arg3[%c0_3, %c0_4] : memref<1x8xf32, #tpu.memory_space<vmem>>, vector<1x8xf32>
    %6 = vector.broadcast %5 : vector<1x8xf32> to vector<512x8xf32>
    %7 = arith.addf %4, %6 : vector<512x8xf32>
    %cst = arith.constant 0.000000e+00 : f32
    %8 = vector.broadcast %cst : f32 to vector<512x8xf32>
    %9 = arith.cmpf oge, %7, %8 : vector<512x8xf32>
    %cst_5 = arith.constant 1.000000e-01 : f32
    %10 = vector.broadcast %cst_5 : f32 to vector<512x8xf32>
    %11 = arith.mulf %10, %7 : vector<512x8xf32>
    %12 = arith.select %9, %7, %11 : vector<512x8xi1>, vector<512x8xf32>
    %c0_6 = arith.constant 0 : index
    %c0_7 = arith.constant 0 : index
    %13 = vector.load %arg4[%c0_6, %c0_7] : memref<512x8xf32, #tpu.memory_space<vmem>>, vector<512x8xf32>
    tpu.vector_store %arg4[%c0_6, %c0_7], %12 {strides = array<i32>} : memref<512x8xf32, #tpu.memory_space<vmem>>, vector<512x8xf32>,
    return
  }
  func.func @transform_0(%arg0: i32) -> (i32, i32) {
    %c0_i32 = arith.constant 0 : i32
    %c0_i32_0 = arith.constant 0 : i32
    return %arg0, %c0_i32 : i32, i32
  }
  func.func @transform_1(%arg0: i32) -> (i32, i32) {
    %c0_i32 = arith.constant 0 : i32
    %c0_i32_0 = arith.constant 0 : i32
    %c0_i32_1 = arith.constant 0 : i32
    return %c0_i32, %c0_i32_0 : i32, i32
  }
  func.func @transform_2(%arg0: i32) -> (i32, i32) {
    %c0_i32 = arith.constant 0 : i32
    %c0_i32_0 = arith.constant 0 : i32
    %c0_i32_1 = arith.constant 0 : i32
    return %c0_i32, %c0_i32_0 : i32, i32
  }
  func.func @transform_3(%arg0: i32) -> (i32, i32) {
    %c0_i32 = arith.constant 0 : i32
    %c0_i32_0 = arith.constant 0 : i32
    return %arg0, %c0_i32 : i32, i32
  }
}

</mosaic_0001>

<bundles_post_ra>
// kernel: conv_block.3
= control target key start
LH: loop header
LB: loop body
LE: loop exit
PB: predicated region body
PF: predicated region fallthrough
CT: control target
= control target key end

     0   :  { %vm476_vm0 = vcmask 64512   ;;  %s1216_s0 = inlined_call_operand.vmem [shape: bf16[512,8], index: 0, kind: input, shape index: {}]   ;;  %s1217_s1 = inlined_call_operand.vmem [shape: f32[1,8], index: 1, kind: input, shape index: {}]   ;;  %s1218_s2 = inlined_call_operand.vmem [shape: f32[1,8], index: 2, kind: input, shape index: {}]   ;;  %s1219_s3 = inlined_call_operand.vmem [shape: f32[512,8], index: 3, kind: output, shape index: {}]  }
   0x1   :  { %v548_v0 = vld [vmem:[%s1216_s0] sm:$0xff]   ;;  %v675_v4 = vld [vmem:[%s1216_s0 + $0x8] sm:$0xff]   ;;  %v676_v5 = vld [vmem:[%s1216_s0 + $0x10] sm:$0xff]  }
   0x2   :  { %v732_v1 = vld [vmem:[%s1217_s1] ss:$0 sm:$0xff]  ;;  %v549_v2 = vunpack.c.l.bf16 %v548_v0  ;;  %v550_v3 = vunpack.c.h.bf16 %v548_v0  ;;  %v677_v6 = vld [vmem:[%s1216_s0 + $0x18] sm:$0xff]   ;;  %v553_v8 = vunpack.c.l.bf16 %v675_v4  ;;  %v554_v9 = vunpack.c.h.bf16 %v675_v4  ;;  %v679_v36 = vld [vmem:[%s1216_s0 + $0x28] sm:$0xff]  }
   0x3   :  { %v746_v7 = vld [vmem:[%s1218_s2] ss:$0 sm:$0xff]  ;;  %v557_v10 = vunpack.c.l.bf16 %v676_v5  ;;  %v558_v11 = vunpack.c.h.bf16 %v676_v5  ;;  %v561_v14 = vunpack.c.l.bf16 %v677_v6  ;;  %v562_v15 = vunpack.c.h.bf16 %v677_v6  ;;  %v680_v48 = vld [vmem:[%s1216_s0 + $0x30] sm:$0xff]   ;;  %v681_v55 = vld [vmem:[%s1216_s0 + $0x38] sm:$0xff]  }
   0x4   :  { %v149_v12 = vmul.f32 %v549_v2, %v732_v1  ;;  %v150_v13 = vmul.f32 %v550_v3, %v732_v1  ;;  %v151_v16 = vmul.f32 %v553_v8, %v732_v1  ;;  %v152_v17 = vmul.f32 %v554_v9, %v732_v1  ;;  %v678_v28 = vld [vmem:[%s1216_s0 + $0x20] sm:$0xff]  }
   0x5   :  { %v153_v18 = vmul.f32 %v557_v10, %v732_v1  ;;  %v154_v19 = vmul.f32 %v558_v11, %v732_v1  ;;  %v155_v22 = vmul.f32 %v561_v14, %v732_v1  ;;  %v156_v23 = vmul.f32 %v562_v15, %v732_v1  ;;  %v682_v14 = vld [vmem:[%s1216_s0 + $0x40] sm:$0xff]  }
   0x6   :  { %v220_v20 = vadd.f32 %v746_v7, %v149_v12  ;;  %v221_v21 = vadd.f32 %v746_v7, %v150_v13  ;;  %v222_v24 = vadd.f32 %v746_v7, %v151_v16  ;;  %v223_v25 = vadd.f32 %v746_v7, %v152_v17 }
   0x7   :  { %v224_v26 = vadd.f32 %v746_v7, %v153_v18  ;;  %v225_v27 = vadd.f32 %v746_v7, %v154_v19  ;;  %v226_v41 = vadd.f32 %v746_v7, %v155_v22  ;;  %v227_v42 = vadd.f32 %v746_v7, %v156_v23  ;;  %v683_v19 = vld [vmem:[%s1216_s0 + $0x48] sm:$0xff]  }
   0x8   :  { %vm284_vm1 = vcmp.ge.f32.partialorder %v220_v20, 0.0  ;;  %v348_v29 = vmul.f32 0.1, %v220_v20  ;;  %vm285_vm2 = vcmp.ge.f32.partialorder %v221_v21, 0.0  ;;  %v349_v30 = vmul.f32 0.1, %v221_v21 }
   0x9   :  { %vm286_vm3 = vcmp.ge.f32.partialorder %v222_v24, 0.0  ;;  %v350_v31 = vmul.f32 0.1, %v222_v24  ;;  %vm287_vm4 = vcmp.ge.f32.partialorder %v223_v25, 0.0  ;;  %v351_v32 = vmul.f32 0.1, %v223_v25 }
   0xa   :  { %v412_v33 = vsel %vm284_vm1, %v220_v20, %v348_v29  ;;  %v413_v34 = vsel %vm285_vm2, %v221_v21, %v349_v30  ;;  %vm288_vm5 = vcmp.ge.f32.partialorder %v224_v26, 0.0  ;;  %v352_v35 = vmul.f32 0.1, %v224_v26  ;;  %v684_v30 = vld [vmem:[%s1216_s0 + $0x50] sm:$0xff]  }
   0xb   :  { %477 = vst.msk [vmem:[%s1219_s3] sm:$0xff] %vm476_vm0, %v412_v33  ;;  %478 = vst.msk [vmem:[%s1219_s3 + $0x8] sm:$0xff] %vm476_vm0, %v413_v34  ;;  %v414_v37 = vsel %vm286_vm3, %v222_v24, %v350_v31  ;;  %v415_v38 = vsel %vm287_vm4, %v223_v25, %v351_v32  ;;  %vm289_vm6 = vcmp.ge.f32.partialorder %v225_v27, 0.0  ;;  %v353_v39 = vmul.f32 0.1, %v225_v27 }
   0xc   :  { %479 = vst.msk [vmem:[%s1219_s3 + $0x10] sm:$0xff] %vm476_vm0, %v414_v37  ;;  %480 = vst.msk [vmem:[%s1219_s3 + $0x18] sm:$0xff] %vm476_vm0, %v415_v38  ;;  %v416_v40 = vsel %vm288_vm5, %v224_v26, %v352_v35  ;;  %v565_v43 = vunpack.c.l.bf16 %v678_v28  ;;  %v566_v45 = vunpack.c.h.bf16 %v678_v28  ;;  %v569_v46 = vunpack.c.l.bf16 %v679_v36  ;;  %v685_v37 = vld [vmem:[%s1216_s0 + $0x58] sm:$0xff]  }
   0xd   :  { %481 = vst.msk [vmem:[%s1219_s3 + $0x20] sm:$0xff] %vm476_vm0, %v416_v40  ;;  %v417_v44 = vsel %vm289_vm6, %v225_v27, %v353_v39  ;;  %v570_v47 = vunpack.c.h.bf16 %v679_v36  ;;  %vm290_vm7 = vcmp.ge.f32.partialorder %v226_v41, 0.0  ;;  %v354_v49 = vmul.f32 0.1, %v226_v41 }
   0xe   :  { %482 = vst.msk [vmem:[%s1219_s3 + $0x28] sm:$0xff] %vm476_vm0, %v417_v44  ;;  %vm291_vm8 = vcmp.ge.f32.partialorder %v227_v42, 0.0  ;;  %v355_v50 = vmul.f32 0.1, %v227_v42  ;;  %v157_v51 = vmul.f32 %v565_v43, %v732_v1  ;;  %v158_v52 = vmul.f32 %v566_v45, %v732_v1 }
   0xf   :  { %v159_v53 = vmul.f32 %v569_v46, %v732_v1  ;;  %v160_v54 = vmul.f32 %v570_v47, %v732_v1  ;;  %v418_v56 = vsel %vm290_vm7, %v226_v41, %v354_v49  ;;  %v573_v58 = vunpack.c.l.bf16 %v680_v48 }
  0x10   :  { %v419_v57 = vsel %vm291_vm8, %v227_v42, %v355_v50  ;;  %v574_v59 = vunpack.c.h.bf16 %v680_v48  ;;  %483 = vst.msk [vmem:[%s1219_s3 + $0x30] sm:$0xff] %vm476_vm0, %v418_v56  ;;  %v228_v60 = vadd.f32 %v746_v7, %v157_v51  ;;  %v229_v61 = vadd.f32 %v746_v7, %v158_v52 }
  0x11   :  { %484 = vst.msk [vmem:[%s1219_s3 + $0x38] sm:$0xff] %vm476_vm0, %v419_v57  ;;  %v230_v62 = vadd.f32 %v746_v7, %v159_v53  ;;  %v231_v63 = vadd.f32 %v746_v7, %v160_v54  ;;  %v161_v0 = vmul.f32 %v573_v58, %v732_v1  ;;  %v577_v3 = vunpack.c.l.bf16 %v681_v55  ;;  %v686_v58 = vld [vmem:[%s1216_s0 + $0x60] sm:$0xff]  }
  0x12   :  { %v162_v2 = vmul.f32 %v574_v59, %v732_v1  ;;  %v578_v4 = vunpack.c.h.bf16 %v681_v55  ;;  %vm292_vm9 = vcmp.ge.f32.partialorder %v228_v60, 0.0  ;;  %v356_v5 = vmul.f32 0.1, %v228_v60 }
  0x13   :  { %vm293_vm10 = vcmp.ge.f32.partialorder %v229_v61, 0.0  ;;  %v357_v6 = vmul.f32 0.1, %v229_v61  ;;  %vm294_vm11 = vcmp.ge.f32.partialorder %v230_v62, 0.0  ;;  %v358_v8 = vmul.f32 0.1, %v230_v62 }
  0x14   :  { %vm295_vm12 = vcmp.ge.f32.partialorder %v231_v63, 0.0  ;;  %v359_v9 = vmul.f32 0.1, %v231_v63  ;;  %v420_v10 = vsel %vm292_vm9, %v228_v60, %v356_v5  ;;  %v232_v12 = vadd.f32 %v746_v7, %v161_v0 }
  0x15   :  { %v421_v11 = vsel %vm293_vm10, %v229_v61, %v357_v6  ;;  %v233_v13 = vadd.f32 %v746_v7, %v162_v2  ;;  %485 = vst.msk [vmem:[%s1219_s3 + $0x40] sm:$0xff] %vm476_vm0, %v420_v10  ;;  %v422_v15 = vsel %vm294_vm11, %v230_v62, %v358_v8  ;;  %v163_v17 = vmul.f32 %v577_v3, %v732_v1 }
  0x16   :  { %486 = vst.msk [vmem:[%s1219_s3 + $0x48] sm:$0xff] %vm476_vm0, %v421_v11  ;;  %v423_v16 = vsel %vm295_vm12, %v231_v63, %v359_v9  ;;  %v164_v18 = vmul.f32 %v578_v4, %v732_v1  ;;  %487 = vst.msk [vmem:[%s1219_s3 + $0x50] sm:$0xff] %vm476_vm0, %v422_v15  ;;  %vm296_vm13 = vcmp.ge.f32.partialorder %v232_v12, 0.0  ;;  %v360_v20 = vmul.f32 0.1, %v232_v12  ;;  %v687_v63 = vld [vmem:[%s1216_s0 + $0x68] sm:$0xff]  }
  0x17   :  { %488 = vst.msk [vmem:[%s1219_s3 + $0x58] sm:$0xff] %vm476_vm0, %v423_v16  ;;  %vm297_vm14 = vcmp.ge.f32.partialorder %v233_v13, 0.0  ;;  %v361_v21 = vmul.f32 0.1, %v233_v13  ;;  %v234_v22 = vadd.f32 %v746_v7, %v163_v17  ;;  %v581_v24 = vunpack.c.l.bf16 %v682_v14 }
  0x18   :  { %v235_v23 = vadd.f32 %v746_v7, %v164_v18  ;;  %v582_v25 = vunpack.c.h.bf16 %v682_v14  ;;  %v424_v26 = vsel %vm296_vm13, %v232_v12, %v360_v20  ;;  %v585_v28 = vunpack.c.l.bf16 %v683_v19  ;;  %v688_v12 = vld [vmem:[%s1216_s0 + $0x70] sm:$0xff]  }
  0x19   :  { %v425_v27 = vsel %vm297_vm14, %v233_v13, %v361_v21  ;;  %v586_v29 = vunpack.c.h.bf16 %v683_v19  ;;  %489 = vst.msk [vmem:[%s1219_s3 + $0x60] sm:$0xff] %vm476_vm0, %v424_v26  ;;  %vm298_vm15 = vcmp.ge.f32.partialorder %v234_v22, 0.0  ;;  %v362_v31 = vmul.f32 0.1, %v234_v22  ;;  %v689_v19 = vld [vmem:[%s1216_s0 + $0x78] sm:$0xff]  }
  0x1a   :  { %490 = vst.msk [vmem:[%s1219_s3 + $0x68] sm:$0xff] %vm476_vm0, %v425_v27  ;;  %vm299_vm1 = vcmp.ge.f32.partialorder %v235_v23, 0.0  ;;  %v363_v32 = vmul.f32 0.1, %v235_v23  ;;  %v165_v33 = vmul.f32 %v581_v24, %v732_v1  ;;  %v166_v34 = vmul.f32 %v582_v25, %v732_v1 }
  0x1b   :  { %v167_v35 = vmul.f32 %v585_v28, %v732_v1  ;;  %v168_v36 = vmul.f32 %v586_v29, %v732_v1  ;;  %v426_v38 = vsel %vm298_vm15, %v234_v22, %v362_v31  ;;  %v589_v40 = vunpack.c.l.bf16 %v684_v30 }
  0x1c   :  { %v427_v39 = vsel %vm299_vm1, %v235_v23, %v363_v32  ;;  %v590_v41 = vunpack.c.h.bf16 %v684_v30  ;;  %491 = vst.msk [vmem:[%s1219_s3 + $0x70] sm:$0xff] %vm476_vm0, %v426_v38  ;;  %v236_v42 = vadd.f32 %v746_v7, %v165_v33  ;;  %v237_v43 = vadd.f32 %v746_v7, %v166_v34 }
  0x1d   :  { %492 = vst.msk [vmem:[%s1219_s3 + $0x78] sm:$0xff] %vm476_vm0, %v427_v39  ;;  %v238_v44 = vadd.f32 %v746_v7, %v167_v35  ;;  %v239_v45 = vadd.f32 %v746_v7, %v168_v36  ;;  %v169_v46 = vmul.f32 %v589_v40, %v732_v1  ;;  %v593_v48 = vunpack.c.l.bf16 %v685_v37  ;;  %v690_v40 = vld [vmem:[%s1216_s0 + $0x80] sm:$0xff]  }
  0x1e   :  { %v170_v47 = vmul.f32 %v590_v41, %v732_v1  ;;  %v594_v49 = vunpack.c.h.bf16 %v685_v37  ;;  %vm300_vm2 = vcmp.ge.f32.partialorder %v236_v42, 0.0  ;;  %v364_v50 = vmul.f32 0.1, %v236_v42 }
  0x1f   :  { %vm301_vm3 = vcmp.ge.f32.partialorder %v237_v43, 0.0  ;;  %v365_v51 = vmul.f32 0.1, %v237_v43  ;;  %vm302_vm4 = vcmp.ge.f32.partialorder %v238_v44, 0.0  ;;  %v366_v52 = vmul.f32 0.1, %v238_v44 }
  0x20   :  { %vm303_vm5 = vcmp.ge.f32.partialorder %v239_v45, 0.0  ;;  %v367_v53 = vmul.f32 0.1, %v239_v45  ;;  %v428_v54 = vsel %vm300_vm2, %v236_v42, %v364_v50  ;;  %v240_v56 = vadd.f32 %v746_v7, %v169_v46 }
  0x21   :  { %v429_v55 = vsel %vm301_vm3, %v237_v43, %v365_v51  ;;  %v241_v57 = vadd.f32 %v746_v7, %v170_v47  ;;  %493 = vst.msk [vmem:[%s1219_s3 + $0x80] sm:$0xff] %vm476_vm0, %v428_v54  ;;  %v430_v59 = vsel %vm302_vm4, %v238_v44, %v366_v52  ;;  %v171_v61 = vmul.f32 %v593_v48, %v732_v1 }
  0x22   :  { %494 = vst.msk [vmem:[%s1219_s3 + $0x88] sm:$0xff] %vm476_vm0, %v429_v55  ;;  %v431_v60 = vsel %vm303_vm5, %v239_v45, %v367_v53  ;;  %v172_v62 = vmul.f32 %v594_v49, %v732_v1  ;;  %495 = vst.msk [vmem:[%s1219_s3 + $0x90] sm:$0xff] %vm476_vm0, %v430_v59  ;;  %vm304_vm6 = vcmp.ge.f32.partialorder %v240_v56, 0.0  ;;  %v368_v0 = vmul.f32 0.1, %v240_v56  ;;  %v691_v45 = vld [vmem:[%s1216_s0 + $0x88] sm:$0xff]  }
  0x23   :  { %496 = vst.msk [vmem:[%s1219_s3 + $0x98] sm:$0xff] %vm476_vm0, %v431_v60  ;;  %vm305_vm7 = vcmp.ge.f32.partialorder %v241_v57, 0.0  ;;  %v369_v2 = vmul.f32 0.1, %v241_v57  ;;  %v242_v3 = vadd.f32 %v746_v7, %v171_v61  ;;  %v597_v5 = vunpack.c.l.bf16 %v686_v58 }
  0x24   :  { %v243_v4 = vadd.f32 %v746_v7, %v172_v62  ;;  %v598_v6 = vunpack.c.h.bf16 %v686_v58  ;;  %v432_v8 = vsel %vm304_vm6, %v240_v56, %v368_v0  ;;  %v601_v10 = vunpack.c.l.bf16 %v687_v63  ;;  %v692_v56 = vld [vmem:[%s1216_s0 + $0x90] sm:$0xff]  }
  0x25   :  { %v433_v9 = vsel %vm305_vm7, %v241_v57, %v369_v2  ;;  %v602_v11 = vunpack.c.h.bf16 %v687_v63  ;;  %497 = vst.msk [vmem:[%s1219_s3 + $0xa0] sm:$0xff] %vm476_vm0, %v432_v8  ;;  %vm306_vm8 = vcmp.ge.f32.partialorder %v242_v3, 0.0  ;;  %v370_v13 = vmul.f32 0.1, %v242_v3  ;;  %v693_v63 = vld [vmem:[%s1216_s0 + $0x98] sm:$0xff]  }
  0x26   :  { %498 = vst.msk [vmem:[%s1219_s3 + $0xa8] sm:$0xff] %vm476_vm0, %v433_v9  ;;  %vm307_vm9 = vcmp.ge.f32.partialorder %v243_v4, 0.0  ;;  %v371_v14 = vmul.f32 0.1, %v243_v4  ;;  %v173_v15 = vmul.f32 %v597_v5, %v732_v1  ;;  %v174_v16 = vmul.f32 %v598_v6, %v732_v1 }
  0x27   :  { %v175_v17 = vmul.f32 %v601_v10, %v732_v1  ;;  %v176_v18 = vmul.f32 %v602_v11, %v732_v1  ;;  %v434_v20 = vsel %vm306_vm8, %v242_v3, %v370_v13  ;;  %v605_v22 = vunpack.c.l.bf16 %v688_v12 }
  0x28   :  { %v435_v21 = vsel %vm307_vm9, %v243_v4, %v371_v14  ;;  %v606_v23 = vunpack.c.h.bf16 %v688_v12  ;;  %499 = vst.msk [vmem:[%s1219_s3 + $0xb0] sm:$0xff] %vm476_vm0, %v434_v20  ;;  %v244_v24 = vadd.f32 %v746_v7, %v173_v15  ;;  %v245_v25 = vadd.f32 %v746_v7, %v174_v16 }
  0x29   :  { %500 = vst.msk [vmem:[%s1219_s3 + $0xb8] sm:$0xff] %vm476_vm0, %v435_v21  ;;  %v246_v26 = vadd.f32 %v746_v7, %v175_v17  ;;  %v247_v27 = vadd.f32 %v746_v7, %v176_v18  ;;  %v177_v28 = vmul.f32 %v605_v22, %v732_v1  ;;  %v609_v30 = vunpack.c.l.bf16 %v689_v19  ;;  %v694_v22 = vld [vmem:[%s1216_s0 + $0xa0] sm:$0xff]  }
  0x2a   :  { %v178_v29 = vmul.f32 %v606_v23, %v732_v1  ;;  %v610_v31 = vunpack.c.h.bf16 %v689_v19  ;;  %vm308_vm10 = vcmp.ge.f32.partialorder %v244_v24, 0.0  ;;  %v372_v32 = vmul.f32 0.1, %v244_v24 }
  0x2b   :  { %vm309_vm11 = vcmp.ge.f32.partialorder %v245_v25, 0.0  ;;  %v373_v33 = vmul.f32 0.1, %v245_v25  ;;  %vm310_vm12 = vcmp.ge.f32.partialorder %v246_v26, 0.0  ;;  %v374_v34 = vmul.f32 0.1, %v246_v26 }
  0x2c   :  { %vm311_vm13 = vcmp.ge.f32.partialorder %v247_v27, 0.0  ;;  %v375_v35 = vmul.f32 0.1, %v247_v27  ;;  %v436_v36 = vsel %vm308_vm10, %v244_v24, %v372_v32  ;;  %v248_v38 = vadd.f32 %v746_v7, %v177_v28 }
  0x2d   :  { %v437_v37 = vsel %vm309_vm11, %v245_v25, %v373_v33  ;;  %v249_v39 = vadd.f32 %v746_v7, %v178_v29  ;;  %501 = vst.msk [vmem:[%s1219_s3 + $0xc0] sm:$0xff] %vm476_vm0, %v436_v36  ;;  %v438_v41 = vsel %vm310_vm12, %v246_v26, %v374_v34  ;;  %v179_v43 = vmul.f32 %v609_v30, %v732_v1 }
  0x2e   :  { %502 = vst.msk [vmem:[%s1219_s3 + $0xc8] sm:$0xff] %vm476_vm0, %v437_v37  ;;  %v439_v42 = vsel %vm311_vm13, %v247_v27, %v375_v35  ;;  %v180_v44 = vmul.f32 %v610_v31, %v732_v1  ;;  %503 = vst.msk [vmem:[%s1219_s3 + $0xd0] sm:$0xff] %vm476_vm0, %v438_v41  ;;  %vm312_vm14 = vcmp.ge.f32.partialorder %v248_v38, 0.0  ;;  %v376_v46 = vmul.f32 0.1, %v248_v38  ;;  %v695_v27 = vld [vmem:[%s1216_s0 + $0xa8] sm:$0xff]  }
  0x2f   :  { %504 = vst.msk [vmem:[%s1219_s3 + $0xd8] sm:$0xff] %vm476_vm0, %v439_v42  ;;  %vm313_vm15 = vcmp.ge.f32.partialorder %v249_v39, 0.0  ;;  %v377_v47 = vmul.f32 0.1, %v249_v39  ;;  %v250_v48 = vadd.f32 %v746_v7, %v179_v43  ;;  %v613_v50 = vunpack.c.l.bf16 %v690_v40 }
  0x30   :  { %v251_v49 = vadd.f32 %v746_v7, %v180_v44  ;;  %v614_v51 = vunpack.c.h.bf16 %v690_v40  ;;  %v440_v52 = vsel %vm312_vm14, %v248_v38, %v376_v46  ;;  %v617_v54 = vunpack.c.l.bf16 %v691_v45  ;;  %v696_v38 = vld [vmem:[%s1216_s0 + $0xb0] sm:$0xff]  }
  0x31   :  { %v441_v53 = vsel %vm313_vm15, %v249_v39, %v377_v47  ;;  %v618_v55 = vunpack.c.h.bf16 %v691_v45  ;;  %505 = vst.msk [vmem:[%s1219_s3 + $0xe0] sm:$0xff] %vm476_vm0, %v440_v52  ;;  %vm314_vm1 = vcmp.ge.f32.partialorder %v250_v48, 0.0  ;;  %v378_v57 = vmul.f32 0.1, %v250_v48  ;;  %v697_v45 = vld [vmem:[%s1216_s0 + $0xb8] sm:$0xff]  }
  0x32   :  { %506 = vst.msk [vmem:[%s1219_s3 + $0xe8] sm:$0xff] %vm476_vm0, %v441_v53  ;;  %vm315_vm2 = vcmp.ge.f32.partialorder %v251_v49, 0.0  ;;  %v379_v58 = vmul.f32 0.1, %v251_v49  ;;  %v181_v59 = vmul.f32 %v613_v50, %v732_v1  ;;  %v182_v60 = vmul.f32 %v614_v51, %v732_v1 }
  0x33   :  { %v183_v61 = vmul.f32 %v617_v54, %v732_v1  ;;  %v184_v62 = vmul.f32 %v618_v55, %v732_v1  ;;  %v442_v0 = vsel %vm314_vm1, %v250_v48, %v378_v57  ;;  %v621_v3 = vunpack.c.l.bf16 %v692_v56 }
  0x34   :  { %v443_v2 = vsel %vm315_vm2, %v251_v49, %v379_v58  ;;  %v622_v4 = vunpack.c.h.bf16 %v692_v56  ;;  %507 = vst.msk [vmem:[%s1219_s3 + $0xf0] sm:$0xff] %vm476_vm0, %v442_v0  ;;  %v252_v5 = vadd.f32 %v746_v7, %v181_v59  ;;  %v253_v6 = vadd.f32 %v746_v7, %v182_v60 }
  0x35   :  { %508 = vst.msk [vmem:[%s1219_s3 + $0xf8] sm:$0xff] %vm476_vm0, %v443_v2  ;;  %v254_v8 = vadd.f32 %v746_v7, %v183_v61  ;;  %v255_v9 = vadd.f32 %v746_v7, %v184_v62  ;;  %v185_v10 = vmul.f32 %v621_v3, %v732_v1  ;;  %v625_v12 = vunpack.c.l.bf16 %v693_v63  ;;  %v698_v3 = vld [vmem:[%s1216_s0 + $0xc0] sm:$0xff]  }
  0x36   :  { %v186_v11 = vmul.f32 %v622_v4, %v732_v1  ;;  %v626_v13 = vunpack.c.h.bf16 %v693_v63  ;;  %vm316_vm3 = vcmp.ge.f32.partialorder %v252_v5, 0.0  ;;  %v380_v14 = vmul.f32 0.1, %v252_v5 }
  0x37   :  { %vm317_vm4 = vcmp.ge.f32.partialorder %v253_v6, 0.0  ;;  %v381_v15 = vmul.f32 0.1, %v253_v6  ;;  %vm318_vm5 = vcmp.ge.f32.partialorder %v254_v8, 0.0  ;;  %v382_v16 = vmul.f32 0.1, %v254_v8 }
  0x38   :  { %vm319_vm6 = vcmp.ge.f32.partialorder %v255_v9, 0.0  ;;  %v383_v17 = vmul.f32 0.1, %v255_v9  ;;  %v444_v18 = vsel %vm316_vm3, %v252_v5, %v380_v14  ;;  %v256_v20 = vadd.f32 %v746_v7, %v185_v10 }
  0x39   :  { %v445_v19 = vsel %vm317_vm4, %v253_v6, %v381_v15  ;;  %v257_v21 = vadd.f32 %v746_v7, %v186_v11  ;;  %509 = vst.msk [vmem:[%s1219_s3 + $0x100] sm:$0xff] %vm476_vm0, %v444_v18  ;;  %v446_v23 = vsel %vm318_vm5, %v254_v8, %v382_v16  ;;  %v187_v25 = vmul.f32 %v625_v12, %v732_v1 }
  0x3a   :  { %510 = vst.msk [vmem:[%s1219_s3 + $0x108] sm:$0xff] %vm476_vm0, %v445_v19  ;;  %v447_v24 = vsel %vm319_vm6, %v255_v9, %v383_v17  ;;  %v188_v26 = vmul.f32 %v626_v13, %v732_v1  ;;  %511 = vst.msk [vmem:[%s1219_s3 + $0x110] sm:$0xff] %vm476_vm0, %v446_v23  ;;  %vm320_vm7 = vcmp.ge.f32.partialorder %v256_v20, 0.0  ;;  %v384_v28 = vmul.f32 0.1, %v256_v20  ;;  %v699_v9 = vld [vmem:[%s1216_s0 + $0xc8] sm:$0xff]  }
  0x3b   :  { %512 = vst.msk [vmem:[%s1219_s3 + $0x118] sm:$0xff] %vm476_vm0, %v447_v24  ;;  %vm321_vm8 = vcmp.ge.f32.partialorder %v257_v21, 0.0  ;;  %v385_v29 = vmul.f32 0.1, %v257_v21  ;;  %v258_v30 = vadd.f32 %v746_v7, %v187_v25  ;;  %v629_v32 = vunpack.c.l.bf16 %v694_v22 }
  0x3c   :  { %v259_v31 = vadd.f32 %v746_v7, %v188_v26  ;;  %v630_v33 = vunpack.c.h.bf16 %v694_v22  ;;  %v448_v34 = vsel %vm320_vm7, %v256_v20, %v384_v28  ;;  %v633_v36 = vunpack.c.l.bf16 %v695_v27  ;;  %v700_v20 = vld [vmem:[%s1216_s0 + $0xd0] sm:$0xff]  }
  0x3d   :  { %v449_v35 = vsel %vm321_vm8, %v257_v21, %v385_v29  ;;  %v634_v37 = vunpack.c.h.bf16 %v695_v27  ;;  %513 = vst.msk [vmem:[%s1219_s3 + $0x120] sm:$0xff] %vm476_vm0, %v448_v34  ;;  %vm322_vm9 = vcmp.ge.f32.partialorder %v258_v30, 0.0  ;;  %v386_v39 = vmul.f32 0.1, %v258_v30  ;;  %v701_v27 = vld [vmem:[%s1216_s0 + $0xd8] sm:$0xff]  }
  0x3e   :  { %514 = vst.msk [vmem:[%s1219_s3 + $0x128] sm:$0xff] %vm476_vm0, %v449_v35  ;;  %vm323_vm10 = vcmp.ge.f32.partialorder %v259_v31, 0.0  ;;  %v387_v40 = vmul.f32 0.1, %v259_v31  ;;  %v189_v41 = vmul.f32 %v629_v32, %v732_v1  ;;  %v190_v42 = vmul.f32 %v630_v33, %v732_v1 }
  0x3f   :  { %v191_v43 = vmul.f32 %v633_v36, %v732_v1  ;;  %v192_v44 = vmul.f32 %v634_v37, %v732_v1  ;;  %v450_v46 = vsel %vm322_vm9, %v258_v30, %v386_v39  ;;  %v637_v48 = vunpack.c.l.bf16 %v696_v38 }
  0x40   :  { %v451_v47 = vsel %vm323_vm10, %v259_v31, %v387_v40  ;;  %v638_v49 = vunpack.c.h.bf16 %v696_v38  ;;  %515 = vst.msk [vmem:[%s1219_s3 + $0x130] sm:$0xff] %vm476_vm0, %v450_v46  ;;  %v260_v50 = vadd.f32 %v746_v7, %v189_v41  ;;  %v261_v51 = vadd.f32 %v746_v7, %v190_v42 }
  0x41   :  { %516 = vst.msk [vmem:[%s1219_s3 + $0x138] sm:$0xff] %vm476_vm0, %v451_v47  ;;  %v262_v52 = vadd.f32 %v746_v7, %v191_v43  ;;  %v263_v53 = vadd.f32 %v746_v7, %v192_v44  ;;  %v193_v54 = vmul.f32 %v637_v48, %v732_v1  ;;  %v641_v56 = vunpack.c.l.bf16 %v697_v45  ;;  %v702_v48 = vld [vmem:[%s1216_s0 + $0xe0] sm:$0xff]  }
  0x42   :  { %v194_v55 = vmul.f32 %v638_v49, %v732_v1  ;;  %v642_v57 = vunpack.c.h.bf16 %v697_v45  ;;  %vm324_vm11 = vcmp.ge.f32.partialorder %v260_v50, 0.0  ;;  %v388_v58 = vmul.f32 0.1, %v260_v50 }
  0x43   :  { %vm325_vm12 = vcmp.ge.f32.partialorder %v261_v51, 0.0  ;;  %v389_v59 = vmul.f32 0.1, %v261_v51  ;;  %vm326_vm13 = vcmp.ge.f32.partialorder %v262_v52, 0.0  ;;  %v390_v60 = vmul.f32 0.1, %v262_v52 }
  0x44   :  { %vm327_vm14 = vcmp.ge.f32.partialorder %v263_v53, 0.0  ;;  %v391_v61 = vmul.f32 0.1, %v263_v53  ;;  %v452_v62 = vsel %vm324_vm11, %v260_v50, %v388_v58  ;;  %v264_v0 = vadd.f32 %v746_v7, %v193_v54 }
  0x45   :  { %v453_v63 = vsel %vm325_vm12, %v261_v51, %v389_v59  ;;  %v265_v2 = vadd.f32 %v746_v7, %v194_v55  ;;  %517 = vst.msk [vmem:[%s1219_s3 + $0x140] sm:$0xff] %vm476_vm0, %v452_v62  ;;  %v454_v4 = vsel %vm326_vm13, %v262_v52, %v390_v60  ;;  %v195_v6 = vmul.f32 %v641_v56, %v732_v1 }
  0x46   :  { %518 = vst.msk [vmem:[%s1219_s3 + $0x148] sm:$0xff] %vm476_vm0, %v453_v63  ;;  %v455_v5 = vsel %vm327_vm14, %v263_v53, %v391_v61  ;;  %v196_v8 = vmul.f32 %v642_v57, %v732_v1  ;;  %519 = vst.msk [vmem:[%s1219_s3 + $0x150] sm:$0xff] %vm476_vm0, %v454_v4  ;;  %vm328_vm15 = vcmp.ge.f32.partialorder %v264_v0, 0.0  ;;  %v392_v10 = vmul.f32 0.1, %v264_v0  ;;  %v703_v53 = vld [vmem:[%s1216_s0 + $0xe8] sm:$0xff]  }
  0x47   :  { %520 = vst.msk [vmem:[%s1219_s3 + $0x158] sm:$0xff] %vm476_vm0, %v455_v5  ;;  %vm329_vm1 = vcmp.ge.f32.partialorder %v265_v2, 0.0  ;;  %v393_v11 = vmul.f32 0.1, %v265_v2  ;;  %v266_v12 = vadd.f32 %v746_v7, %v195_v6  ;;  %v645_v14 = vunpack.c.l.bf16 %v698_v3 }
  0x48   :  { %v267_v13 = vadd.f32 %v746_v7, %v196_v8  ;;  %v646_v15 = vunpack.c.h.bf16 %v698_v3  ;;  %v456_v16 = vsel %vm328_vm15, %v264_v0, %v392_v10  ;;  %v649_v18 = vunpack.c.l.bf16 %v699_v9  ;;  %v704_v0 = vld [vmem:[%s1216_s0 + $0xf0] sm:$0xff]  }
  0x49   :  { %v457_v17 = vsel %vm329_vm1, %v265_v2, %v393_v11  ;;  %v650_v19 = vunpack.c.h.bf16 %v699_v9  ;;  %521 = vst.msk [vmem:[%s1219_s3 + $0x160] sm:$0xff] %vm476_vm0, %v456_v16  ;;  %vm330_vm2 = vcmp.ge.f32.partialorder %v266_v12, 0.0  ;;  %v394_v21 = vmul.f32 0.1, %v266_v12  ;;  %v705_v9 = vld [vmem:[%s1216_s0 + $0xf8] sm:$0xff]  }
  0x4a   :  { %522 = vst.msk [vmem:[%s1219_s3 + $0x168] sm:$0xff] %vm476_vm0, %v457_v17  ;;  %vm331_vm3 = vcmp.ge.f32.partialorder %v267_v13, 0.0  ;;  %v395_v22 = vmul.f32 0.1, %v267_v13  ;;  %v197_v23 = vmul.f32 %v645_v14, %v732_v1  ;;  %v198_v24 = vmul.f32 %v646_v15, %v732_v1 }
  0x4b   :  { %v199_v25 = vmul.f32 %v649_v18, %v732_v1  ;;  %v200_v26 = vmul.f32 %v650_v19, %v732_v1  ;;  %v458_v28 = vsel %vm330_vm2, %v266_v12, %v394_v21  ;;  %v653_v30 = vunpack.c.l.bf16 %v700_v20 }
  0x4c   :  { %v459_v29 = vsel %vm331_vm3, %v267_v13, %v395_v22  ;;  %v654_v31 = vunpack.c.h.bf16 %v700_v20  ;;  %523 = vst.msk [vmem:[%s1219_s3 + $0x170] sm:$0xff] %vm476_vm0, %v458_v28  ;;  %v268_v32 = vadd.f32 %v746_v7, %v197_v23  ;;  %v269_v33 = vadd.f32 %v746_v7, %v198_v24 }
  0x4d   :  { %524 = vst.msk [vmem:[%s1219_s3 + $0x178] sm:$0xff] %vm476_vm0, %v459_v29  ;;  %v270_v34 = vadd.f32 %v746_v7, %v199_v25  ;;  %v271_v35 = vadd.f32 %v746_v7, %v200_v26  ;;  %v201_v36 = vmul.f32 %v653_v30, %v732_v1  ;;  %v657_v38 = vunpack.c.l.bf16 %v701_v27 }
  0x4e   :  { %v202_v37 = vmul.f32 %v654_v31, %v732_v1  ;;  %v658_v39 = vunpack.c.h.bf16 %v701_v27  ;;  %vm332_vm4 = vcmp.ge.f32.partialorder %v268_v32, 0.0  ;;  %v396_v40 = vmul.f32 0.1, %v268_v32 }
  0x4f   :  { %vm333_vm5 = vcmp.ge.f32.partialorder %v269_v33, 0.0  ;;  %v397_v41 = vmul.f32 0.1, %v269_v33  ;;  %vm334_vm6 = vcmp.ge.f32.partialorder %v270_v34, 0.0  ;;  %v398_v42 = vmul.f32 0.1, %v270_v34 }
  0x50   :  { %vm335_vm7 = vcmp.ge.f32.partialorder %v271_v35, 0.0  ;;  %v399_v43 = vmul.f32 0.1, %v271_v35  ;;  %v460_v44 = vsel %vm332_vm4, %v268_v32, %v396_v40  ;;  %v272_v46 = vadd.f32 %v746_v7, %v201_v36 }
  0x51   :  { %v461_v45 = vsel %vm333_vm5, %v269_v33, %v397_v41  ;;  %v273_v47 = vadd.f32 %v746_v7, %v202_v37  ;;  %525 = vst.msk [vmem:[%s1219_s3 + $0x180] sm:$0xff] %vm476_vm0, %v460_v44  ;;  %v462_v49 = vsel %vm334_vm6, %v270_v34, %v398_v42  ;;  %v203_v51 = vmul.f32 %v657_v38, %v732_v1 }
  0x52   :  { %526 = vst.msk [vmem:[%s1219_s3 + $0x188] sm:$0xff] %vm476_vm0, %v461_v45  ;;  %v463_v50 = vsel %vm335_vm7, %v271_v35, %v399_v43  ;;  %v204_v52 = vmul.f32 %v658_v39, %v732_v1  ;;  %527 = vst.msk [vmem:[%s1219_s3 + $0x190] sm:$0xff] %vm476_vm0, %v462_v49  ;;  %vm336_vm8 = vcmp.ge.f32.partialorder %v272_v46, 0.0  ;;  %v400_v54 = vmul.f32 0.1, %v272_v46 }
  0x53   :  { %528 = vst.msk [vmem:[%s1219_s3 + $0x198] sm:$0xff] %vm476_vm0, %v463_v50  ;;  %vm337_vm9 = vcmp.ge.f32.partialorder %v273_v47, 0.0  ;;  %v401_v55 = vmul.f32 0.1, %v273_v47  ;;  %v274_v56 = vadd.f32 %v746_v7, %v203_v51  ;;  %v661_v58 = vunpack.c.l.bf16 %v702_v48 }
  0x54   :  { %v275_v57 = vadd.f32 %v746_v7, %v204_v52  ;;  %v662_v59 = vunpack.c.h.bf16 %v702_v48  ;;  %v464_v60 = vsel %vm336_vm8, %v272_v46, %v400_v54  ;;  %v665_v62 = vunpack.c.l.bf16 %v703_v53 }
  0x55   :  { %v465_v61 = vsel %vm337_vm9, %v273_v47, %v401_v55  ;;  %v666_v63 = vunpack.c.h.bf16 %v703_v53  ;;  %529 = vst.msk [vmem:[%s1219_s3 + $0x1a0] sm:$0xff] %vm476_vm0, %v464_v60  ;;  %vm338_vm10 = vcmp.ge.f32.partialorder %v274_v56, 0.0  ;;  %v402_v2 = vmul.f32 0.1, %v274_v56 }
  0x56   :  { %530 = vst.msk [vmem:[%s1219_s3 + $0x1a8] sm:$0xff] %vm476_vm0, %v465_v61  ;;  %vm339_vm11 = vcmp.ge.f32.partialorder %v275_v57, 0.0  ;;  %v403_v3 = vmul.f32 0.1, %v275_v57  ;;  %v205_v4 = vmul.f32 %v661_v58, %v732_v1  ;;  %v206_v5 = vmul.f32 %v662_v59, %v732_v1 }
  0x57   :  { %v207_v6 = vmul.f32 %v665_v62, %v732_v1  ;;  %v208_v8 = vmul.f32 %v666_v63, %v732_v1  ;;  %v466_v10 = vsel %vm338_vm10, %v274_v56, %v402_v2  ;;  %v669_v12 = vunpack.c.l.bf16 %v704_v0 }
  0x58   :  { %v467_v11 = vsel %vm339_vm11, %v275_v57, %v403_v3  ;;  %v670_v13 = vunpack.c.h.bf16 %v704_v0  ;;  %531 = vst.msk [vmem:[%s1219_s3 + $0x1b0] sm:$0xff] %vm476_vm0, %v466_v10  ;;  %v276_v14 = vadd.f32 %v746_v7, %v205_v4  ;;  %v277_v15 = vadd.f32 %v746_v7, %v206_v5 }
  0x59   :  { %532 = vst.msk [vmem:[%s1219_s3 + $0x1b8] sm:$0xff] %vm476_vm0, %v467_v11  ;;  %v278_v16 = vadd.f32 %v746_v7, %v207_v6  ;;  %v279_v17 = vadd.f32 %v746_v7, %v208_v8  ;;  %v209_v18 = vmul.f32 %v669_v12, %v732_v1  ;;  %v673_v20 = vunpack.c.l.bf16 %v705_v9 }
  0x5a   :  { %v210_v19 = vmul.f32 %v670_v13, %v732_v1  ;;  %v674_v21 = vunpack.c.h.bf16 %v705_v9  ;;  %vm340_vm12 = vcmp.ge.f32.partialorder %v276_v14, 0.0  ;;  %v404_v22 = vmul.f32 0.1, %v276_v14 }
  0x5b   :  { %vm341_vm13 = vcmp.ge.f32.partialorder %v277_v15, 0.0  ;;  %v405_v23 = vmul.f32 0.1, %v277_v15  ;;  %vm342_vm14 = vcmp.ge.f32.partialorder %v278_v16, 0.0  ;;  %v406_v24 = vmul.f32 0.1, %v278_v16 }
  0x5c   :  { %vm343_vm15 = vcmp.ge.f32.partialorder %v279_v17, 0.0  ;;  %v407_v25 = vmul.f32 0.1, %v279_v17  ;;  %v468_v26 = vsel %vm340_vm12, %v276_v14, %v404_v22  ;;  %v280_v28 = vadd.f32 %v746_v7, %v209_v18 }
  0x5d   :  { %v469_v27 = vsel %vm341_vm13, %v277_v15, %v405_v23  ;;  %v281_v29 = vadd.f32 %v746_v7, %v210_v19  ;;  %533 = vst.msk [vmem:[%s1219_s3 + $0x1c0] sm:$0xff] %vm476_vm0, %v468_v26  ;;  %v470_v30 = vsel %vm342_vm14, %v278_v16, %v406_v24  ;;  %v211_v32 = vmul.f32 %v673_v20, %v732_v1 }
  0x5e   :  { %534 = vst.msk [vmem:[%s1219_s3 + $0x1c8] sm:$0xff] %vm476_vm0, %v469_v27  ;;  %v471_v31 = vsel %vm343_vm15, %v279_v17, %v407_v25  ;;  %v212_v33 = vmul.f32 %v674_v21, %v732_v1  ;;  %535 = vst.msk [vmem:[%s1219_s3 + $0x1d0] sm:$0xff] %vm476_vm0, %v470_v30  ;;  %vm344_vm1 = vcmp.ge.f32.partialorder %v280_v28, 0.0  ;;  %v408_v34 = vmul.f32 0.1, %v280_v28 }
  0x5f   :  { %536 = vst.msk [vmem:[%s1219_s3 + $0x1d8] sm:$0xff] %vm476_vm0, %v471_v31  ;;  %vm345_vm2 = vcmp.ge.f32.partialorder %v281_v29, 0.0  ;;  %v409_v35 = vmul.f32 0.1, %v281_v29  ;;  %v282_v36 = vadd.f32 %v746_v7, %v211_v32 }
  0x60   :  { %v283_v37 = vadd.f32 %v746_v7, %v212_v33  ;;  %v472_v38 = vsel %vm344_vm1, %v280_v28, %v408_v34 }
  0x61   :  { %v473_v1 = vsel %vm345_vm2, %v281_v29, %v409_v35  ;;  %537 = vst.msk [vmem:[%s1219_s3 + $0x1e0] sm:$0xff] %vm476_vm0, %v472_v38  ;;  %vm346_vm3 = vcmp.ge.f32.partialorder %v282_v36, 0.0  ;;  %v410_v39 = vmul.f32 0.1, %v282_v36 }
  0x62   :  { %538 = vst.msk [vmem:[%s1219_s3 + $0x1e8] sm:$0xff] %vm476_vm0, %v473_v1  ;;  %vm347_vm4 = vcmp.ge.f32.partialorder %v283_v37, 0.0  ;;  %v411_v40 = vmul.f32 0.1, %v283_v37 }
  0x63   :  { %v474_v41 = vsel %vm346_vm3, %v282_v36, %v410_v39 }
  0x64   :  { %v475_v42 = vsel %vm347_vm4, %v283_v37, %v411_v40  ;;  %539 = vst.msk [vmem:[%s1219_s3 + $0x1f0] sm:$0xff] %vm476_vm0, %v474_v41 }
  0x65   :  { %540 = vst.msk [vmem:[%s1219_s3 + $0x1f8] sm:$0xff] %vm476_vm0, %v475_v42 }

// kernel: conv_block.2
= control target key start
LH: loop header
LB: loop body
LE: loop exit
PB: predicated region body
PF: predicated region fallthrough
CT: control target
= control target key end

     0   :  { %s6448_s12 = smov 0   ;;  %s6450_s13 = smov 0   ;;  %s9142_s0 = inlined_call_operand.vmem [shape: bf16[2,18,18,4], index: 0, kind: input, shape index: {}]   ;;  %s9143_s1 = inlined_call_operand.vmem [shape: bf16[3,3,4,8], index: 1, kind: input, shape index: {}]   ;;  %s9144_s2 = inlined_call_operand.vmem [shape: bf16[2,16,16,8], index: 2, kind: output, shape index: {0}]   ;;  %s9145_s3 = inlined_call_operand.vmem [shape: f32[2,2,8], index: 3, kind: output, shape index: {1}]  }
   0x1   :  { %s6452_s14 = smov 0  }
   0x2 LB: > { %s26_s15 = sadd.s32 1, %s6422_s13  ;;  %p5250_p0 = scmp.ge.s32.totalorder %s6426_s14, 1  ;;  %s6426_s14 = sphi %s6452_s14, %s14_s14   ;;  %s6422_s13 = sphi %s6450_s13, %s9355_s13   ;;  %s6418_s12 = sphi %s6448_s12, %s9354_s12  }
   0x3   : > { %p28_p1 = scmp.ge.s32.totalorder %s26_s15, 2  ;;  %p158_p2 = scmp.lt.s32.totalorder %s6426_s14, 3 }
   0x5   : > { %s9357_s15 = smov (%p28_p1, %s26_s15), 0  ;;  %p159_p3 = pnand %p5250_p0, %p158_p2 }
   0x7   : > { %162 = sbr.rel (%p159_p3) target bundleno = 589 (0x24d), region = 28 }
   0xc   : > { %v5255_v0 = vld [vmem:[%s9143_s1 + $0x2] sm:$0x3]  ;;  %vm742_vm0 = vcmask 1041408   ;;  %p189_p4 = scmp.lt.s32.totalorder %s6418_s12, 1  ;;  %v239_v2 = vld [vmem:[%s9143_s1] sm:$0x3] }
   0xd   : > { %6320 = vmatprep.subr.msk.bf16.mxu1 %vm742_vm0, %v5255_v0  ;;  %6319 = vmatprep.subr.msk.bf16.mxu0 %vm742_vm0, %v5255_v0  ;;  %v744_v1 = vsel %vm742_vm0, %v5255_v0, 0  ;;  %v5336_v3 = vld [vmem:[%s9143_s1 + $0x4] sm:$0x3]  ;;  %vm256_vm1 = vsmask.f32 3328  ;;  %v6489_v4 = vsel %vm742_vm0, %v239_v2, 0 }
   0xe   : > { %6318 = vmatpush3.bf16.msra.mxu1 %v744_v1  ;;  %6012 = vmatpush3.bf16.msra.mxu0 %v744_v1  ;;  %s9359_s12 = smov (!%p189_p4, %s6418_s12), 1  ;;  %vm257_vm2 = vsmask.f32 7440  ;;  %vm693_vm3 = vcmask 31744   ;;  %v6515_v16 = vsel %vm742_vm0, %v5336_v3, 0  ;;  %vm1247_vm5 = vcmask 1042432  }
   0xf   : > { %6321 = vmatprep.subr.msk.bf16.mxu1 %vm742_vm0, %v239_v2  ;;  %6322 = vmatprep.subr.msk.bf16.mxu0 %vm742_vm0, %v5336_v3  ;;  %s6329_s22 = smul.u32 216, %s9359_s12  ;;  %vm6530_vm4 = vmor %vm256_vm1, %vm257_vm2  ;;  %vm1248_vm6 = vcmask 1046532   ;;  %s5825_s11 = sshll.u32 %s9359_s12, 7  ;;  %vm4894_vm8 = vcmask 60416   ;;  %vm4959_vm9 = vcmask 64512   ;;  %vm5134_vm10 = vcmask 57344  }
  0x10   : > { %vm6816_vm7 = vmor %vm1247_vm5, %vm1248_vm6  ;;  %s8935_s18 = scalar_lea.vmem %s9144_s2, %s5825_s11  ;;  %s5254_s19 = sshll.u32 %s9359_s12, 1 }
  0x11   : > { %s6486_s25 = scalar_lea.vmem %s9142_s0, %s6329_s22  ;;  %s205_s22 = scalar_lea.vmem %s9145_s3, %s5254_s19 }
  0x12   : > { %v6492_v5 = vld [vmem:[%s6486_s25] sm:$0xf]  ;;  %v6495_v6 = vld [vmem:[%s6486_s25 + $0x4] sm:$0xf]  ;;  %v6498_v7 = vld [vmem:[%s6486_s25 + $0x8] sm:$0x1] }
  0x13   : > { %v260_v8 = vshrl.u32 %v6492_v5, 16  ;;  %v263_v9 = vshll.u32 %v6492_v5, 16  ;;  %v269_v10 = vshll.u32 %v6495_v6, 16  ;;  %v273_v11 = vshrl.u32 %v6495_v6, 16  ;;  %v6505_v12 = vld [vmem:[%s6486_s25 + $0x60] sm:$0xf] }
  0x14   : > { %v279_v13 = vshll.u32 %v6498_v7, 16  ;;  %v6509_v14 = vld [vmem:[%s6486_s25 + $0x64] sm:$0xf]  ;;  %v6512_v15 = vld [vmem:[%s6486_s25 + $0x68] sm:$0x1]  ;;  %v452_v22 = vshrl.u32 %v6505_v12, 16 }
  0x15   : > { %v262_v17 = vrot.slane %v260_v8, 4  ;;  %v265_v18 = vrot.slane %v263_v9, 5  ;;  %v271_v19 = vrot.slane %v269_v10, 5  ;;  %v275_v20 = vrot.slane %v273_v11, 4  ;;  %v6523_v29 = vld [vmem:[%s6486_s25 + $0xc] sm:$0xf] }
  0x16   : > { %v281_v21 = vrot.slane %v279_v13, 5  ;;  %v455_v23 = vshll.u32 %v6505_v12, 16  ;;  %v461_v24 = vshll.u32 %v6509_v14, 16  ;;  %v465_v27 = vshrl.u32 %v6509_v14, 16  ;;  %v6526_v30 = vld [vmem:[%s6486_s25 + $0x10] sm:$0xf] }
  0x17   : > { %v266_v25 = vor.u32 %v265_v18, %v262_v17  ;;  %v276_v26 = vor.u32 %v275_v20, %v271_v19  ;;  %v471_v28 = vshll.u32 %v6512_v15, 16  ;;  %v454_v33 = vrot.slane %v452_v22, 4  ;;  %v6536_v41 = vld [vmem:[%s6486_s25 + $0x14] sm:$0x1]  ;;  %v6547_v53 = vld [vmem:[%s6486_s25 + $0x6c] sm:$0xf] }
  0x18   : > { %v457_v34 = vrot.slane %v455_v23, 5  ;;  %v463_v35 = vrot.slane %v461_v24, 5  ;;  %v467_v38 = vrot.slane %v465_v27, 4  ;;  %v284_v42 = vshrl.u32 %v6523_v29, 16  ;;  %v6551_v58 = vld [vmem:[%s6486_s25 + $0x70] sm:$0xf] }
  0x19   : > { %v267_v36 = vrot.slane %v266_v25, 4  ;;  %v277_v37 = vrot.slane %v276_v26, 4  ;;  %v473_v39 = vrot.slane %v471_v28, 5  ;;  %v287_v43 = vshll.u32 %v6523_v29, 16  ;;  %v6559_v63 = vld [vmem:[%s6486_s25 + $0x74] sm:$0x1] }
  0x1a   : > { %v458_v40 = vor.u32 %v457_v34, %v454_v33  ;;  %v293_v44 = vshll.u32 %v6526_v30, 16  ;;  %v468_v47 = vor.u32 %v467_v38, %v463_v35  ;;  %v297_v48 = vshrl.u32 %v6526_v30, 16  ;;  %v6565_v8 = vld [vmem:[%s6486_s25 + $0x18] sm:$0xf]  ;;  %v6578_v25 = vld [vmem:[%s6486_s25 + $0x20] sm:$0x1] }
  0x1b   : > { %v272_v45 = vsel %vm6530_vm4, %v267_v36, %v271_v19  ;;  %v282_v46 = vsel %vm6530_vm4, %v277_v37, %v281_v21  ;;  %v286_v51 = vrot.slane %v284_v42, 4  ;;  %v289_v52 = vrot.slane %v287_v43, 5  ;;  %v6572_v21 = vld [vmem:[%s6486_s25 + $0x1c] sm:$0xf] }
  0x1c   : > { %v5256_v49 = vcombine.low %v272_v45, %v282_v46  ;;  %v459_v50 = vrot.slane %v458_v40, 4  ;;  %v469_v54 = vrot.slane %v468_v47, 4  ;;  %v295_v55 = vrot.slane %v293_v44, 5  ;;  %v6591_v40 = vld [vmem:[%s9143_s1 + $0x8] sm:$0x3] }
  0x1d   : > { %v299_v56 = vrot.slane %v297_v48, 4  ;;  %v303_v57 = vshll.u32 %v6536_v41, 16  ;;  %v290_v60 = vor.u32 %v289_v52, %v286_v51  ;;  %v476_v3 = vshrl.u32 %v6547_v53, 16  ;;  %v6596_v46 = vld [vmem:[%s6486_s25 + $0x7c] sm:$0xf] }
  0x1e   : > { %6013 = vmatprep.mubr.msk.bf16.mxu0 %vm693_vm3, %v5256_v49  ;;  %v464_v59 = vsel %vm6530_vm4, %v459_v50, %v463_v35  ;;  %v474_v0 = vsel %vm6530_vm4, %v469_v54, %v473_v39  ;;  %v479_v11 = vshll.u32 %v6547_v53, 16  ;;  %v485_v13 = vshll.u32 %v6551_v58, 16  ;;  %v6585_v35 = vld [vmem:[%s6486_s25 + $0x78] sm:$0xf] }
  0x1f   : > { %v300_v1 = vor.u32 %v299_v56, %v295_v55  ;;  %v305_v2 = vrot.slane %v303_v57, 5  ;;  %v5264_v9 = vcombine.low %v464_v59, %v474_v0  ;;  %v291_v10 = vrot.slane %v290_v60, 4  ;;  %v6603_v56 = vld [vmem:[%s6486_s25 + $0x80] sm:$0x1] }
  0x20   : > { %v478_v18 = vrot.slane %v476_v3, 4  ;;  %v489_v19 = vshrl.u32 %v6551_v58, 16  ;;  %v495_v20 = vshll.u32 %v6559_v63, 16  ;;  %v481_v23 = vrot.slane %v479_v11, 5  ;;  %9181 = vst [vmem:[#allocation2_spill] sm:$0xff] %v6603_v56 }
  0x21   : > { %v301_v17 = vrot.slane %v300_v1, 4  ;;  %6029 = vmatprep.mubr.msk.bf16.mxu1 %vm693_vm3, %v5264_v9  ;;  %v296_v22 = vsel %vm6530_vm4, %v291_v10, %v295_v55  ;;  %v487_v24 = vrot.slane %v485_v13, 5  ;;  %v308_v26 = vshrl.u32 %v6565_v8, 16  ;;  %v6609_v1 = vld [vmem:[%s6486_s25 + $0x24] sm:$0xf] }
  0x22   : > { %v491_v28 = vrot.slane %v489_v19, 4  ;;  %v497_v33 = vrot.slane %v495_v20, 5  ;;  %v311_v34 = vshll.u32 %v6565_v8, 16  ;;  %v482_v37 = vor.u32 %v481_v23, %v478_v18  ;;  %v6617_v10 = vld [vmem:[%s6486_s25 + $0x28] sm:$0xf] }
  0x23   : > { %v306_v27 = vsel %vm6530_vm4, %v301_v17, %v305_v2  ;;  %v310_v38 = vrot.slane %v308_v26, 4  ;;  %v317_v39 = vshll.u32 %v6572_v21, 16  ;;  %v321_v44 = vshrl.u32 %v6572_v21, 16  ;;  %v6623_v19 = vld [vmem:[%s9143_s1 + $0x6] sm:$0x3] }
  0x24   : > { %v5257_v36 = vcombine.low %v296_v22, %v306_v27  ;;  %v492_v42 = vor.u32 %v491_v28, %v487_v24  ;;  %v313_v43 = vrot.slane %v311_v34, 5  ;;  %v327_v45 = vshll.u32 %v6578_v25, 16 }
  0x25   : > { %v483_v47 = vrot.slane %v482_v37, 4  ;;  %v319_v48 = vrot.slane %v317_v39, 5  ;;  %v500_v49 = vshrl.u32 %v6585_v35, 16  ;;  %v503_v50 = vshll.u32 %v6585_v35, 16 }
  0x26   : > { %6014 = vmatmul.mubr.msk.bf16.vlgmr.msra.gmra.mxu0 %vm693_vm3, %v5257_v36  ;;  %v493_v51 = vrot.slane %v492_v42, 4  ;;  %v314_v52 = vor.u32 %v313_v43, %v310_v38  ;;  %v323_v54 = vrot.slane %v321_v44, 4  ;;  %v329_v55 = vrot.slane %v327_v45, 5  ;;  %v6635_v36 = vld [vmem:[%s6486_s25 + $0x84] sm:$0xf] }
  0x27   : > { %6080 = vmatpush3.bf16.msra.mxu0 %v6515_v16  ;;  %v488_v57 = vsel %vm6530_vm4, %v483_v47, %v487_v24  ;;  %v502_v59 = vrot.slane %v500_v49, 4  ;;  %v505_v60 = vrot.slane %v503_v50, 5  ;;  %v509_v0 = vshll.u32 %v6596_v46, 16  ;;  %v6628_v24 = vld [vmem:[%s6486_s25 + $0x2c] sm:$0x1] }
  0x28   : > { %6324 = vmatprep.subr.msk.bf16.mxu0 %vm742_vm0, %v6591_v40  ;;  %v498_v16 = vsel %vm6530_vm4, %v493_v51, %v497_v33  ;;  %v315_v2 = vrot.slane %v314_v52, 4  ;;  %v324_v3 = vor.u32 %v323_v54, %v319_v48  ;;  %v513_v9 = vshrl.u32 %v6596_v46, 16  ;;  %v6642_v43 = vld [vmem:[%s6486_s25 + $0x88] sm:$0xf]  ;;  %v6650_v51 = vld [vmem:[%s6486_s25 + $0x8c] sm:$0x1] }
  0x29   : > { %v5265_v11 = vcombine.low %v488_v57, %v498_v16  ;;  %v506_v13 = vor.u32 %v505_v60, %v502_v59  ;;  %v511_v17 = vrot.slane %v509_v0, 5  ;;  %v519_v18 = vshll.u32 %v6603_v56, 16  ;;  %9182 = vst [vmem:[#allocation3_spill] sm:$0xff] %v6650_v51  ;;  %v6658_v60 = vld [vmem:[%s6486_s25 + $0x30] sm:$0xf] }
  0x2a   : > { %v320_v20 = vsel %vm6530_vm4, %v315_v2, %v319_v48  ;;  %v325_v22 = vrot.slane %v324_v3, 4  ;;  %v515_v23 = vrot.slane %v513_v9, 4  ;;  %v332_v26 = vshrl.u32 %v6609_v1, 16  ;;  %v6663_v9 = vld [vmem:[%s6486_s25 + $0x34] sm:$0xf] }
  0x2b   : > { %6030 = vmatmul.mubr.msk.bf16.vlgmr.msra.gmra.mxu1 %vm693_vm3, %v5265_v11  ;;  %v507_v27 = vrot.slane %v506_v13, 4  ;;  %v521_v28 = vrot.slane %v519_v18, 5  ;;  %v335_v33 = vshll.u32 %v6609_v1, 16  ;;  %v341_v34 = vshll.u32 %v6617_v10, 16 }
  0x2c   : > { %6046 = vmatpush3.bf16.msra.mxu1 %v6489_v4  ;;  %v330_v37 = vsel %vm6530_vm4, %v325_v22, %v329_v55  ;;  %v516_v38 = vor.u32 %v515_v23, %v511_v17  ;;  %v334_v39 = vrot.slane %v332_v26, 4  ;;  %v345_v42 = vshrl.u32 %v6617_v10, 16 }
  0x2d   : > { %v5258_v44 = vcombine.low %v320_v20, %v330_v37  ;;  %v512_v45 = vsel %vm6530_vm4, %v507_v27, %v511_v17  ;;  %v337_v47 = vrot.slane %v335_v33, 5  ;;  %v343_v48 = vrot.slane %v341_v34, 5  ;;  %6323 = vmatprep.subr.msk.bf16.mxu1 %vm742_vm0, %v6623_v19  ;;  %v6671_v33 = vld [vmem:[%s6486_s25 + $0x38] sm:$0x1] }
  0x2e   : > { %v517_v4 = vrot.slane %v516_v38, 4  ;;  %v347_v49 = vrot.slane %v345_v42, 4  ;;  %v351_v50 = vshll.u32 %v6628_v24, 16  ;;  %v524_v52 = vshrl.u32 %v6635_v36, 16  ;;  %v6676_v38 = vld [vmem:[%s6486_s25 + $0x90] sm:$0xf] }
  0x2f   : > { %6017 = vmatprep.mubr.msk.bf16.mxu0 %vm693_vm3, %v5258_v44  ;;  %v338_v54 = vor.u32 %v337_v47, %v334_v39  ;;  %v527_v55 = vshll.u32 %v6635_v36, 16  ;;  %v533_v57 = vshll.u32 %v6642_v43, 16  ;;  %v537_v59 = vshrl.u32 %v6642_v43, 16  ;;  %9183 = vst [vmem:[#allocation4_spill] sm:$0xff] %v6676_v38  ;;  %v6681_v47 = vld [vmem:[%s6486_s25 + $0x94] sm:$0xf] }
  0x30   : > { %v522_v0 = vsel %vm6530_vm4, %v517_v4, %v521_v28  ;;  %v348_v16 = vor.u32 %v347_v49, %v343_v48  ;;  %v353_v2 = vrot.slane %v351_v50, 5  ;;  %v526_v3 = vrot.slane %v524_v52, 4  ;;  %9184 = vst [vmem:[#allocation5_spill] sm:$0xff] %v6681_v47 }
  0x31   : > { %v5266_v11 = vcombine.low %v512_v45, %v522_v0  ;;  %v339_v13 = vrot.slane %v338_v54, 4  ;;  %v529_v17 = vrot.slane %v527_v55, 5  ;;  %v535_v18 = vrot.slane %v533_v57, 5 }
  0x32   : > { %v349_v20 = vrot.slane %v348_v16, 4  ;;  %v539_v22 = vrot.slane %v537_v59, 4  ;;  %v543_v23 = vshll.u32 %v6650_v51, 16  ;;  %v356_v26 = vshrl.u32 %v6658_v60, 16  ;;  %v6690_v16 = vld [vmem:[%s6486_s25 + $0x98] sm:$0x1] }
  0x33   : > { %6033 = vmatprep.mubr.msk.bf16.mxu1 %vm693_vm3, %v5266_v11  ;;  %v344_v27 = vsel %vm6530_vm4, %v339_v13, %v343_v48  ;;  %v530_v28 = vor.u32 %v529_v17, %v526_v3  ;;  %v359_v34 = vshll.u32 %v6658_v60, 16  ;;  %v365_v37 = vshll.u32 %v6663_v9, 16  ;;  %9185 = vst [vmem:[#allocation6_spill] sm:$0xff] %v6690_v16  ;;  %v6695_v11 = vld [vmem:[%s6486_s25 + $0x3c] sm:$0xf] }
  0x34   : > { %v354_v39 = vsel %vm6530_vm4, %v349_v20, %v353_v2  ;;  %v540_v42 = vor.u32 %v539_v22, %v535_v18  ;;  %v545_v44 = vrot.slane %v543_v23, 5  ;;  %v358_v45 = vrot.slane %v356_v26, 4  ;;  %v6700_v23 = vld [vmem:[%s6486_s25 + $0x40] sm:$0xf]  ;;  %v1200_v51 = vld [vmem:[%s6486_s25 + $0xc] sm:$0xe] }
  0x35   : > { %v5259_v48 = vcombine.low %v344_v27, %v354_v39  ;;  %v531_v4 = vrot.slane %v530_v28, 4  ;;  %v361_v49 = vrot.slane %v359_v34, 5  ;;  %v367_v50 = vrot.slane %v365_v37, 5 }
  0x36   : > { %v541_v52 = vrot.slane %v540_v42, 4  ;;  %v369_v54 = vshrl.u32 %v6663_v9, 16  ;;  %v375_v55 = vshll.u32 %v6671_v33, 16  ;;  %v548_v57 = vshrl.u32 %v6676_v38, 16 }
  0x37   : > { %6018 = vmatmul.mubr.msk.bf16.gmra.mxu0 %vm693_vm3, %v5259_v48  ;;  %v536_v59 = vsel %vm6530_vm4, %v531_v4, %v535_v18  ;;  %v362_v0 = vor.u32 %v361_v49, %v358_v45  ;;  %v551_v2 = vshll.u32 %v6676_v38, 16  ;;  %v557_v3 = vshll.u32 %v6681_v47, 16  ;;  %v6709_v48 = vld [vmem:[%s6486_s25 + $0x44] sm:$0x1] }
  0x38   : > { %v546_v13 = vsel %vm6530_vm4, %v541_v52, %v545_v44  ;;  %v371_v17 = vrot.slane %v369_v54, 4  ;;  %v377_v20 = vrot.slane %v375_v55, 5  ;;  %v550_v22 = vrot.slane %v548_v57, 4  ;;  %v6714_v52 = vld [vmem:[%s6486_s25 + $0x9c] sm:$0xf] }
  0x39   : > { %v5267_v18 = vcombine.low %v536_v59, %v546_v13  ;;  %v363_v26 = vrot.slane %v362_v0, 4  ;;  %v553_v27 = vrot.slane %v551_v2, 5  ;;  %v559_v28 = vrot.slane %v557_v3, 5  ;;  %9186 = vst [vmem:[#allocation7_spill] sm:$0xff] %v6714_v52  ;;  %v6718_v13 = vld [vmem:[%s6486_s25 + $0xa0] sm:$0xf] }
  0x3a   : > { %v372_v34 = vor.u32 %v371_v17, %v367_v50  ;;  %v561_v37 = vshrl.u32 %v6681_v47, 16  ;;  %v567_v39 = vshll.u32 %v6690_v16, 16  ;;  %v380_v42 = vshrl.u32 %v6695_v11, 16  ;;  %9187 = vst [vmem:[#allocation8_spill] sm:$0xff] %v6718_v13 }
  0x3b   : > { %6034 = vmatmul.mubr.msk.bf16.gmra.mxu1 %vm693_vm3, %v5267_v18  ;;  %v368_v44 = vsel %vm6530_vm4, %v363_v26, %v367_v50  ;;  %v554_v45 = vor.u32 %v553_v27, %v550_v22  ;;  %v383_v4 = vshll.u32 %v6695_v11, 16  ;;  %v389_v49 = vshll.u32 %v6700_v23, 16  ;;  %v6724_v26 = vld [vmem:[%s6486_s25 + $0xa4] sm:$0x1] }
  0x3c   : > { %v373_v54 = vrot.slane %v372_v34, 4  ;;  %v563_v55 = vrot.slane %v561_v37, 4  ;;  %v569_v57 = vrot.slane %v567_v39, 5  ;;  %v382_v59 = vrot.slane %v380_v42, 4  ;;  %9188 = vst [vmem:[#allocation9_spill] sm:$0xff] %v6724_v26 }
  0x3d   : > { %v555_v0 = vrot.slane %v554_v45, 4  ;;  %v385_v2 = vrot.slane %v383_v4, 5  ;;  %v391_v3 = vrot.slane %v389_v49, 5  ;;  %v393_v50 = vshrl.u32 %v6700_v23, 16  ;;  %v6728_v34 = vld [vmem:[%s6486_s25 + $0x48] sm:$0xf] }
  0x3e   : > { %v378_v17 = vsel %vm6530_vm4, %v373_v54, %v377_v20  ;;  %v564_v22 = vor.u32 %v563_v55, %v559_v28  ;;  %v399_v18 = vshll.u32 %v6709_v48, 16  ;;  %v572_v27 = vshrl.u32 %v6714_v52, 16 }
  0x3f   : > { %v5260_v37 = vcombine.low %v368_v44, %v378_v17  ;;  %v560_v39 = vsel %vm6530_vm4, %v555_v0, %v559_v28  ;;  %v386_v42 = vor.u32 %v385_v2, %v382_v59  ;;  %v395_v45 = vrot.slane %v393_v50, 4  ;;  %v6737_v17 = vld [vmem:[%s6486_s25 + $0x4c] sm:$0xf]  ;;  %v6743_v2 = vld [vmem:[%s6486_s25 + $0x50] sm:$0x1] }
  0x40   : > { %v565_v4 = vrot.slane %v564_v22, 4  ;;  %v401_v49 = vrot.slane %v399_v18, 5  ;;  %v574_v20 = vrot.slane %v572_v27, 4  ;;  %v575_v54 = vshll.u32 %v6714_v52, 16 }
  0x41   : > { %6021 = vmatprep.mubr.msk.bf16.mxu0 %vm693_vm3, %v5260_v37  ;;  %v387_v55 = vrot.slane %v386_v42, 4  ;;  %v396_v62 = vor.u32 %v395_v45, %v391_v3  ;;  %v581_v32 = vshll.u32 %v6718_v13, 16  ;;  %v585_v44 = vshrl.u32 %v6718_v13, 16  ;;  %v6749_v42 = vld [vmem:[%s6486_s25 + $0xa8] sm:$0xf] }
  0x42   : > { %v570_v28 = vsel %vm6530_vm4, %v565_v4, %v569_v57  ;;  %v577_v59 = vrot.slane %v575_v54, 5  ;;  %v591_v0 = vshll.u32 %v6724_v26, 16  ;;  %v404_v50 = vshrl.u32 %v6728_v34, 16  ;;  %9189 = vst [vmem:[#allocation10_spill] sm:$0xff] %v6749_v42 }
  0x43   : > { %v5268_v22 = vcombine.low %v560_v39, %v570_v28  ;;  %v392_v18 = vsel %vm6530_vm4, %v387_v55, %v391_v3  ;;  %v397_v27 = vrot.slane %v396_v62, 4  ;;  %v583_v37 = vrot.slane %v581_v32, 5 }
  0x44   : > { %v578_v45 = vor.u32 %v577_v59, %v574_v20  ;;  %v587_v61 = vrot.slane %v585_v44, 4  ;;  %v593_v57 = vrot.slane %v591_v0, 5  ;;  %v406_v4 = vrot.slane %v404_v50, 4  ;;  %v6759_v44 = vld [vmem:[%s6486_s25 + $0xac] sm:$0xf] }
  0x45   : > { %6037 = vmatprep.mubr.msk.bf16.mxu1 %vm693_vm3, %v5268_v22  ;;  %v402_v54 = vsel %vm6530_vm4, %v397_v27, %v401_v49  ;;  %v407_v39 = vshll.u32 %v6728_v34, 16  ;;  %v413_v28 = vshll.u32 %v6737_v17, 16  ;;  %v417_v62 = vshrl.u32 %v6737_v17, 16  ;;  %9190 = vst [vmem:[#allocation11_spill] sm:$0xff] %v6759_v44  ;;  %v6762_v22 = vld [vmem:[%s6486_s25 + $0xb0] sm:$0x1] }
  0x46   : > { %v5261_v3 = vcombine.low %v392_v18, %v402_v54  ;;  %v579_v32 = vrot.slane %v578_v45, 4  ;;  %v588_v55 = vor.u32 %v587_v61, %v583_v37  ;;  %v423_v20 = vshll.u32 %v6743_v2, 16  ;;  %9191 = vst [vmem:[#allocation12_spill] sm:$0xff] %v6762_v22 }
  0x47   : > { %v409_v59 = vrot.slane %v407_v39, 5  ;;  %v415_v0 = vrot.slane %v413_v28, 5  ;;  %v419_v50 = vrot.slane %v417_v62, 4  ;;  %v596_v49 = vshrl.u32 %v6749_v42, 16  ;;  %v6771_v62 = vld [vmem:[%s6486_s25 + $0x54] sm:$0xf] }
  0x48   : > { %6022 = vmatmul.mubr.msk.bf16.gmra.mxu0 %vm693_vm3, %v5261_v3  ;;  %v584_v18 = vsel %vm6530_vm4, %v579_v32, %v583_v37  ;;  %v589_v27 = vrot.slane %v588_v55, 4  ;;  %v425_v61 = vrot.slane %v423_v20, 5  ;;  %v599_v45 = vshll.u32 %v6749_v42, 16  ;;  %v6778_v55 = vld [vmem:[%s6486_s25 + $0x58] sm:$0xf] }
  0x49   : > { %v410_v54 = vor.u32 %v409_v59, %v406_v4  ;;  %v420_v56 = vor.u32 %v419_v50, %v415_v0  ;;  %v598_v39 = vrot.slane %v596_v49, 4  ;;  %v605_v28 = vshll.u32 %v6759_v44, 16  ;;  %v6781_v49 = vld [vmem:[%s6486_s25 + $0x5c] sm:$0x1] }
  0x4a   : > { %v594_v3 = vsel %vm6530_vm4, %v589_v27, %v593_v57  ;;  %v601_v26 = vrot.slane %v599_v45, 5  ;;  %v609_v37 = vshrl.u32 %v6759_v44, 16  ;;  %v615_v32 = vshll.u32 %v6762_v22, 16  ;;  %v1199_v22 = vld [vmem:[%s6486_s25] sm:$0xe] }
  0x4b   : > { %v5269_v4 = vcombine.low %v584_v18, %v594_v3  ;;  %v411_v20 = vrot.slane %v410_v54, 4  ;;  %v421_v59 = vrot.slane %v420_v56, 4  ;;  %v607_v50 = vrot.slane %v605_v28, 5  ;;  %v6792_v54 = vld [vmem:[%s6486_s25 + $0xb4] sm:$0xf] }
  0x4c   : > { %v602_v42 = vor.u32 %v601_v26, %v598_v39  ;;  %v611_v52 = vrot.slane %v609_v37, 4  ;;  %v617_v13 = vrot.slane %v615_v32, 5  ;;  %v428_v57 = vshrl.u32 %v6771_v62, 16  ;;  %9192 = vst [vmem:[#allocation13_spill] sm:$0xff] %v6792_v54  ;;  %v6795_v37 = vld [vmem:[%s6486_s25 + $0xb8] sm:$0xf] }
  0x4d   : > { %6038 = vmatmul.mubr.msk.bf16.gmra.mxu1 %vm693_vm3, %v5269_v4  ;;  %v416_v27 = vsel %vm6530_vm4, %v411_v20, %v415_v0  ;;  %v426_v18 = vsel %vm6530_vm4, %v421_v59, %v425_v61  ;;  %v431_v56 = vshll.u32 %v6771_v62, 16  ;;  %v437_v45 = vshll.u32 %v6778_v55, 16  ;;  %v6800_v61 = vld [vmem:[%s6486_s25 + $0xbc] sm:$0x1] }
  0x4e   : > { %v5262_v26 = vcombine.low %v416_v27, %v426_v18  ;;  %v603_v39 = vrot.slane %v602_v42, 4  ;;  %v612_v28 = vor.u32 %v611_v52, %v607_v50  ;;  %v430_v3 = vrot.slane %v428_v57, 4 }
  0x4f   : > { %v433_v32 = vrot.slane %v431_v56, 5  ;;  %v439_v4 = vrot.slane %v437_v45, 5  ;;  %v441_v0 = vshrl.u32 %v6778_v55, 16  ;;  %v447_v20 = vshll.u32 %v6781_v49, 16 }
  0x50   : > { %6025 = vmatprep.mubr.msk.bf16.mxu0 %vm693_vm3, %v5262_v26  ;;  %v608_v59 = vsel %vm6530_vm4, %v603_v39, %v607_v50  ;;  %v613_v27 = vrot.slane %v612_v28, 4  ;;  %v620_v52 = vshrl.u32 %v6792_v54, 16  ;;  %v623_v42 = vshll.u32 %v6792_v54, 16 }
  0x51   : > { %v434_v57 = vor.u32 %v433_v32, %v430_v3  ;;  %v443_v18 = vrot.slane %v441_v0, 4  ;;  %v449_v56 = vrot.slane %v447_v20, 5  ;;  %v629_v45 = vshll.u32 %v6795_v37, 16 }
  0x52   : > { %v618_v44 = vsel %vm6530_vm4, %v613_v27, %v617_v13  ;;  %v622_v16 = vrot.slane %v620_v52, 4  ;;  %v625_v26 = vrot.slane %v623_v42, 5  ;;  %v633_v38 = vshrl.u32 %v6795_v37, 16 }
  0x53   : > { %v5270_v50 = vcombine.low %v608_v59, %v618_v44  ;;  %v435_v39 = vrot.slane %v434_v57, 4  ;;  %v444_v28 = vor.u32 %v443_v18, %v439_v4  ;;  %v631_v47 = vrot.slane %v629_v45, 5  ;;  %v1201_v57 = vld [vmem:[%s6486_s25 + $0x18] sm:$0xe] }
  0x54   : > { %v626_v54 = vor.u32 %v625_v26, %v622_v16  ;;  %v635_v3 = vrot.slane %v633_v38, 4  ;;  %v639_v32 = vshll.u32 %v6800_v61, 16  ;;  %v5320_v13 = vrot.slane %v1199_v22, 9 }
  0x55   : > { %6041 = vmatprep.mubr.msk.bf16.mxu1 %vm693_vm3, %v5270_v50  ;;  %v440_v44 = vsel %vm6530_vm4, %v435_v39, %v439_v4  ;;  %v445_v20 = vrot.slane %v444_v28, 4  ;;  %v1252_v59 = vrot.slane %v6495_v6, 5  ;;  %v5289_v38 = vcombine.low %v6523_v29, %v6526_v30 }
  0x56   : > { %v627_v16 = vrot.slane %v626_v54, 4  ;;  %v636_v27 = vor.u32 %v635_v3, %v631_v47  ;;  %v641_v52 = vrot.slane %v639_v32, 5  ;;  %v5321_v42 = vrot.slane %v1200_v51, 9 }
  0x57   : > { %v450_v18 = vsel %vm6530_vm4, %v445_v20, %v449_v56  ;;  %v1253_v22 = vsel %vm6816_vm7, %v5320_v13, %v1252_v59  ;;  %v1254_v45 = vrot.slane %v1252_v59, 4  ;;  %v9195_v4 = vrot.slane %v6526_v30, 5 }
  0x58   : > { %v5263_v50 = vcombine.low %v440_v44, %v450_v18  ;;  %v632_v54 = vsel %vm6530_vm4, %v627_v16, %v631_v47  ;;  %v637_v39 = vrot.slane %v636_v27, 4  ;;  %v5288_v51 = vcombine.low %v6492_v5, %v6495_v6  ;;  %v1202_v27 = vld [vmem:[%s6486_s25 + $0x24] sm:$0xe] }
  0x59   : > { %v1261_v26 = vrot.slane %v9195_v4, 4  ;;  %v9196_v28 = vrot.slane %v6498_v7, 5  ;;  %v9197_v3 = vmov %v9195_v4  ;;  %v5290_v13 = vcombine.low %v6565_v8, %v6572_v21  ;;  %v1204_v4 = vld [vmem:[%s6486_s25 + $0x3c] sm:$0xe] }
  0x5a   : > { %v1260_v32 = vsel %vm6816_vm7, %v5321_v42, %v9197_v3  ;;  %v5322_v44 = vrot.slane %v1201_v57, 9  ;;  %6026 = vmatmul.mubr.msk.bf16.gmra.mxu0 %vm693_vm3, %v5263_v50  ;;  %v642_v47 = vsel %vm6530_vm4, %v637_v39, %v641_v52  ;;  %v9198_v6 = vrot.slane %v6536_v41, 5  ;;  %v1203_v42 = vld [vmem:[%s6486_s25 + $0x30] sm:$0xe]  ;;  %v1205_v39 = vld [vmem:[%s6486_s25 + $0x48] sm:$0xe] }
  0x5b   : > { %v1256_v56 = vsel %vm6816_vm7, %v1254_v45, %v9196_v28  ;;  %v1266_v20 = vrot.slane %v6572_v21, 5  ;;  %v5271_v59 = vcombine.low %v632_v54, %v642_v47  ;;  %v1269_v16 = vrot.slane %v6578_v25, 5  ;;  %v1206_v47 = vld [vmem:[%s6486_s25 + $0x54] sm:$0xe]  ;;  %v7111_v21 = vld [vmem:[%s6486_s25 + $0x2c] sm:$0x1] }
  0x5c   : > { %v5337_v5 = vcombine.low %v1253_v22, %v1256_v56  ;;  %v1263_v7 = vsel %vm6816_vm7, %v1261_v26, %v9198_v6  ;;  %v1820_v52 = vsel %vm742_vm0, %v6623_v19, 0  ;;  %v1273_v18 = vrot.slane %v6617_v10, 5 }
  0x5d   : > { %v1267_v41 = vsel %vm6816_vm7, %v5322_v44, %v1266_v20  ;;  %v1268_v57 = vrot.slane %v1266_v20, 4  ;;  %6042 = vmatmul.mubr.msk.bf16.gmra.mxu1 %vm693_vm3, %v5271_v59  ;;  %v5338_v22 = vcombine.low %v1260_v32, %v1263_v7  ;;  %v2546_v25 = vsel %vm742_vm0, %v6591_v40, 0 }
  0x5e   : > { %6081 = vmatprep.mubr.msk.bf16.mxu0 %vm693_vm3, %v5337_v5  ;;  %v1280_v45 = vrot.slane %v6663_v9, 5  ;;  %6047 = vmatprep.mubr.msk.bf16.mxu1 %vm693_vm3, %v5288_v51  ;;  %v5323_v26 = vrot.slane %v1202_v27, 9  ;;  %v1276_v50 = vrot.slane %v6628_v24, 5  ;;  %v5324_v54 = vrot.slane %v1203_v42, 9  ;;  %v6883_v24 = vld [vmem:[%s9143_s1 + $0xc] sm:$0x3] }
  0x5f   : > { %v1270_v19 = vsel %vm6816_vm7, %v1268_v57, %v1269_v16  ;;  %v1275_v56 = vrot.slane %v1273_v18, 4  ;;  %v1283_v32 = vrot.slane %v6671_v33, 5  ;;  %v5325_v44 = vrot.slane %v1204_v4, 9 }
  0x60   : > { %v5339_v28 = vcombine.low %v1267_v41, %v1270_v19  ;;  %v1282_v3 = vrot.slane %v1280_v45, 4  ;;  %v1287_v40 = vrot.slane %v6700_v23, 5  ;;  %v1311_v5 = vrot.slane %v6512_v15, 5 }
  0x61   : > { %v1290_v51 = vrot.slane %v6709_v48, 5  ;;  %v5326_v6 = vrot.slane %v1205_v39, 9  ;;  %v1294_v7 = vrot.slane %v6737_v17, 5  ;;  %v5291_v33 = vcombine.low %v6609_v1, %v6617_v10  ;;  %v1207_v1 = vld [vmem:[%s6486_s25 + $0x60] sm:$0xe] }
  0x62   : > { %6082 = vmatmul.mubr.msk.bf16.vlgmr.msra.gmra.mxu0 %vm693_vm3, %v5338_v22  ;;  %v1274_v20 = vsel %vm6816_vm7, %v5323_v26, %v1273_v18  ;;  %v1289_v59 = vrot.slane %v1287_v40, 4  ;;  %v1297_v16 = vrot.slane %v6743_v2, 5  ;;  %v1277_v48 = vsel %vm6816_vm7, %v1275_v56, %v1276_v50  ;;  %v6911_v22 = vld [vmem:[%s9143_s1 + $0xa] sm:$0x3]  ;;  %v6936_v50 = vld [vmem:[%s6486_s25 + $0x6c] sm:$0xe] }
  0x63   : > { %6148 = vmatpush3.bf16.msra.mxu0 %v2546_v25  ;;  %6085 = vmatprep.mubr.msk.bf16.mxu0 %vm693_vm3, %v5339_v28  ;;  %v1281_v27 = vsel %vm6816_vm7, %v5324_v54, %v1280_v45  ;;  %v1284_v42 = vsel %vm6816_vm7, %v1282_v3, %v1283_v32  ;;  %v1296_v41 = vrot.slane %v1294_v7, 4  ;;  %v6901_v10 = vsel %vm6816_vm7, %v5325_v44, %v1287_v40  ;;  %v1210_v39 = vld [vmem:[%s6486_s25 + $0x84] sm:$0xe]  ;;  %v6965_v44 = vld [vmem:[%s6486_s25 + $0x78] sm:$0xe] }
  0x64   : > { %v6905_v2 = vsel %vm6816_vm7, %v5326_v6, %v1294_v7  ;;  %v5327_v57 = vrot.slane %v1206_v47, 9  ;;  %v1301_v18 = vrot.slane %v6778_v55, 5  ;;  %6326 = vmatprep.subr.msk.bf16.mxu0 %vm742_vm0, %v6883_v24  ;;  %v6921_v25 = vsel %vm6816_vm7, %v1289_v59, %v1290_v51  ;;  %v1211_v40 = vld [vmem:[%s6486_s25 + $0x90] sm:$0xe] }
  0x65   : > { %6048 = vmatmul.mubr.msk.bf16.vlgmr.msra.gmra.mxu1 %vm693_vm3, %v5289_v38  ;;  %v6925_v45 = vsel %vm6816_vm7, %v1296_v41, %v1297_v16  ;;  %v1304_v4 = vrot.slane %v6781_v49, 5  ;;  %v1308_v19 = vrot.slane %v6509_v14, 5  ;;  %v5340_v29 = vcombine.low %v1274_v20, %v1277_v48  ;;  %v9199_v48 = vld [vmem:[#allocation3_spill] sm:$0xff] }
  0x66   : > { %6114 = vmatpush3.bf16.msra.mxu1 %v1820_v52  ;;  %6051 = vmatprep.mubr.msk.bf16.mxu1 %vm693_vm3, %v5290_v13  ;;  %v5292_v30 = vcombine.low %v6658_v60, %v6663_v9  ;;  %v1303_v38 = vrot.slane %v1301_v18, 4  ;;  %v5328_v26 = vrot.slane %v1207_v1, 9  ;;  %v5341_v49 = vcombine.low %v1281_v27, %v1284_v42  ;;  %v1212_v42 = vld [vmem:[%s6486_s25 + $0x9c] sm:$0xe] }
  0x67   : > { %v5293_v52 = vcombine.low %v6695_v11, %v6700_v23  ;;  %v5294_v8 = vcombine.low %v6728_v34, %v6737_v17  ;;  %6325 = vmatprep.subr.msk.bf16.mxu1 %vm742_vm0, %v6911_v22  ;;  %v5342_v60 = vcombine.low %v6901_v10, %v6921_v25  ;;  %v5343_v9 = vcombine.low %v6905_v2, %v6925_v45  ;;  %v9200_v10 = vld [vmem:[#allocation5_spill] sm:$0xff]  ;;  %v9201_v2 = vld [vmem:[#allocation4_spill] sm:$0xff] }
  0x68   : > { %v1310_v54 = vrot.slane %v1308_v19, 4  ;;  %v6955_v28 = vsel %vm6816_vm7, %v5327_v57, %v1301_v18  ;;  %v6959_v56 = vsel %vm6816_vm7, %v1303_v38, %v1304_v4  ;;  %v5329_v32 = vrot.slane %v6936_v50, 9  ;;  %v1213_v18 = vld [vmem:[%s6486_s25 + $0xa8] sm:$0xe]  ;;  %v9203_v38 = vld [vmem:[#allocation8_spill] sm:$0xff] }
  0x69   : > { %v6971_v47 = vsel %vm6816_vm7, %v5328_v26, %v1308_v19  ;;  %v1315_v51 = vrot.slane %v6551_v58, 5  ;;  %v1318_v6 = vrot.slane %v6559_v63, 5  ;;  %v5331_v59 = vrot.slane %v1210_v39, 9  ;;  %v9202_v19 = vld [vmem:[#allocation6_spill] sm:$0xff]  ;;  %v9204_v26 = vld [vmem:[#allocation7_spill] sm:$0xff] }
  0x6a   : > { %6086 = vmatmul.mubr.msk.bf16.gmra.mxu0 %vm693_vm3, %v5340_v29  ;;  %v1329_v16 = vrot.slane %v6642_v43, 5  ;;  %v1332_v27 = vrot.slane %v9199_v48, 5  ;;  %v5344_v41 = vcombine.low %v6955_v28, %v6959_v56  ;;  %v6989_v63 = vsel %vm6816_vm7, %v1310_v54, %v1311_v5  ;;  %v9206_v48 = vld [vmem:[#allocation11_spill] sm:$0xff] }
  0x6b   : > { %6089 = vmatprep.mubr.msk.bf16.mxu0 %vm693_vm3, %v5341_v49  ;;  %v5330_v1 = vrot.slane %v6965_v44, 9  ;;  %v5332_v4 = vrot.slane %v1211_v40, 9  ;;  %v1336_v15 = vrot.slane %v9200_v10, 5  ;;  %v1317_v5 = vrot.slane %v1315_v51, 4  ;;  %v5434_v57 = vld [vmem:[%s6486_s25 + $0xc] sm:$0xf] }
  0x6c   : > { %v6998_v25 = vsel %vm6816_vm7, %v5331_v59, %v1329_v16  ;;  %v1331_v45 = vrot.slane %v1329_v16, 4  ;;  %v1339_v29 = vrot.slane %v9202_v19, 5  ;;  %v5333_v49 = vrot.slane %v1212_v42, 9  ;;  %v9205_v59 = vld [vmem:[#allocation9_spill] sm:$0xff]  ;;  %v9207_v42 = vld [vmem:[#allocation10_spill] sm:$0xff] }
  0x6d   : > { %6052 = vmatmul.mubr.msk.bf16.gmra.mxu1 %vm693_vm3, %v5291_v33  ;;  %v1322_v33 = vrot.slane %v6596_v46, 5  ;;  %v7012_v39 = vsel %vm6816_vm7, %v5332_v4, %v1336_v15  ;;  %v1338_v44 = vrot.slane %v1336_v15, 4  ;;  %v1343_v40 = vrot.slane %v9203_v38, 5  ;;  %v9208_v15 = vld [vmem:[#allocation12_spill] sm:$0xff] }
  0x6e   : > { %6055 = vmatprep.mubr.msk.bf16.mxu1 %vm693_vm3, %v5292_v30  ;;  %v7008_v54 = vsel %vm6816_vm7, %v1331_v45, %v1332_v27  ;;  %v1346_v16 = vrot.slane %v9205_v59, 5  ;;  %v5334_v45 = vrot.slane %v1213_v18, 9  ;;  %v1350_v4 = vrot.slane %v9206_v48, 5 }
  0x6f   : > { %v7022_v27 = vsel %vm6816_vm7, %v1338_v44, %v1339_v29  ;;  %v1353_v50 = vrot.slane %v9208_v15, 5  ;;  %v7032_v19 = vsel %vm6816_vm7, %v5333_v49, %v1343_v40  ;;  %v1345_v7 = vrot.slane %v1343_v40, 4  ;;  %v9209_v29 = vld [vmem:[#allocation13_spill] sm:$0xff]  ;;  %v9210_v15 = vld [vmem:[#allocation2_spill] sm:$0xff]  ;;  %v7047_v49 = vld [vmem:[%s6486_s25 + $0x10] sm:$0xf] }
  0x70   : > { %v7039_v18 = vsel %vm6816_vm7, %v5329_v32, %v1315_v51  ;;  %v7044_v59 = vsel %vm6816_vm7, %v5334_v45, %v1350_v4  ;;  %v1352_v30 = vrot.slane %v1350_v4, 4  ;;  %v5437_v40 = vld [vmem:[%s6486_s25 + $0x18] sm:$0xf]  ;;  %v1324_v20 = vrot.slane %v1322_v33, 4 }
  0x71   : > { %v2064_v44 = vshrl.u32 %v5434_v57, 16  ;;  %v2067_v32 = vshll.u32 %v5434_v57, 16  ;;  %v5345_v51 = vcombine.low %v6971_v47, %v6989_v63  ;;  %v7062_v45 = vsel %vm6816_vm7, %v1317_v5, %v1318_v6  ;;  %v1214_v57 = vld [vmem:[%s6486_s25 + $0xb4] sm:$0xe]  ;;  %v7083_v47 = vld [vmem:[%s6486_s25 + $0x14] sm:$0x1] }
  0x72   : > { %6090 = vmatmul.mubr.msk.bf16.gmra.mxu0 %vm693_vm3, %v5342_v60  ;;  %v1325_v60 = vrot.slane %v9210_v15, 5  ;;  %v7077_v11 = vsel %vm6816_vm7, %v5330_v1, %v1322_v33  ;;  %v2073_v6 = vshll.u32 %v7047_v49, 16  ;;  %v5438_v63 = vld [vmem:[%s6486_s25 + $0x1c] sm:$0xf]  ;;  %v2077_v17 = vshrl.u32 %v7047_v49, 16 }
  0x73   : > { %6093 = vmatprep.mubr.msk.bf16.mxu0 %vm693_vm3, %v5343_v9  ;;  %v7052_v9 = vsel %vm6816_vm7, %v1345_v7, %v1346_v16  ;;  %v7068_v7 = vsel %vm6816_vm7, %v1352_v30, %v1353_v50  ;;  %v2066_v5 = vrot.slane %v2064_v44, 4  ;;  %v2069_v34 = vrot.slane %v2067_v32, 5  ;;  %v5440_v15 = vld [vmem:[%s6486_s25 + $0x24] sm:$0xf]  ;;  %v7096_v44 = vld [vmem:[%s6486_s25 + $0x28] sm:$0xf] }
  0x74   : > { %v2088_v50 = vshrl.u32 %v5437_v40, 16  ;;  %v1326_v1 = vsel %vm6816_vm7, %v1324_v20, %v1325_v60  ;;  %v5335_v33 = vrot.slane %v1214_v57, 9  ;;  %v7091_v30 = vrot.slane %v2073_v6, 5 }
  0x75   : > { %6056 = vmatmul.mubr.msk.bf16.gmra.mxu1 %vm693_vm3, %v5293_v52  ;;  %v1357_v52 = vrot.slane %v6795_v37, 5  ;;  %v2091_v16 = vshll.u32 %v5437_v40, 16  ;;  %v1360_v23 = vrot.slane %v6800_v61, 5  ;;  %v2079_v4 = vrot.slane %v2077_v17, 4 }
  0x76   : > { %6059 = vmatprep.mubr.msk.bf16.mxu1 %vm693_vm3, %v5294_v8  ;;  %v5439_v8 = vld [vmem:[%s6486_s25 + $0x20] sm:$0x1]  ;;  %v2090_v3 = vrot.slane %v2088_v50, 4  ;;  %v2097_v13 = vshll.u32 %v5438_v63, 16  ;;  %v2083_v20 = vshll.u32 %v7083_v47, 16  ;;  %v2101_v57 = vshrl.u32 %v5438_v63, 16 }
  0x77   : > { %v1359_v32 = vrot.slane %v1357_v52, 4  ;;  %v2093_v60 = vrot.slane %v2091_v16, 5  ;;  %v5346_v61 = vcombine.low %v7039_v18, %v7062_v45  ;;  %v5347_v40 = vcombine.low %v7077_v11, %v1326_v1 }
  0x78   : > { %v2070_v6 = vor.u32 %v2069_v34, %v2066_v5  ;;  %v7107_v17 = vrot.slane %v2097_v13, 5  ;;  %v2080_v28 = vor.u32 %v2079_v4, %v7091_v30  ;;  %v2107_v50 = vshll.u32 %v5439_v8, 16  ;;  %v7134_v5 = vld [vmem:[%s6486_s25 + $0x34] sm:$0xf] }
  0x79   : > { %v2094_v56 = vor.u32 %v2093_v60, %v2090_v3  ;;  %v7119_v18 = vsel %vm6816_vm7, %v5335_v33, %v1357_v52  ;;  %v2112_v13 = vshrl.u32 %v5440_v15, 16  ;;  %v2115_v45 = vshll.u32 %v5440_v15, 16  ;;  %v5443_v52 = vld [vmem:[%s6486_s25 + $0x30] sm:$0xf] }
  0x7a   : > { %6094 = vmatmul.mubr.msk.bf16.gmra.mxu0 %vm693_vm3, %v5344_v41  ;;  %v2103_v41 = vrot.slane %v2101_v57, 4  ;;  %v2121_v11 = vshll.u32 %v7096_v44, 16  ;;  %v9212_v3 = vcombine.low %v6505_v12, %v6509_v14  ;;  %v7128_v4 = vsel %vm6816_vm7, %v1359_v32, %v1360_v23 }
  0x7b   : > { %6097 = vmatprep.mubr.msk.bf16.mxu0 %vm693_vm3, %v5345_v51  ;;  %v9211_v51 = vcombine.low %v6771_v62, %v6778_v55  ;;  %v2085_v62 = vrot.slane %v2083_v20, 5  ;;  %v2125_v63 = vshrl.u32 %v7096_v44, 16  ;;  %v2071_v34 = vrot.slane %v2070_v6, 4 }
  0x7c   : > { %v2104_v55 = vor.u32 %v2103_v41, %v7107_v17  ;;  %v2114_v8 = vrot.slane %v2112_v13, 4  ;;  %v2117_v1 = vrot.slane %v2115_v45, 5  ;;  %v7136_v33 = vrot.slane %v2121_v11, 5  ;;  %v7142_v41 = vld [vmem:[%s6486_s25 + $0x38] sm:$0x1] }
  0x7d   : > { %6060 = vmatmul.mubr.msk.bf16.gmra.mxu1 %vm693_vm3, %v9211_v51  ;;  %v2081_v12 = vrot.slane %v2080_v28, 4  ;;  %v2095_v14 = vrot.slane %v2094_v56, 4  ;;  %v2109_v16 = vrot.slane %v2107_v50, 5  ;;  %v2127_v23 = vrot.slane %v2125_v63, 4  ;;  %v5446_v13 = vld [vmem:[%s6486_s25 + $0x3c] sm:$0xf] }
  0x7e   : > { %6063 = vmatprep.mubr.msk.bf16.mxu1 %vm693_vm3, %v9212_v3  ;;  %v2105_v15 = vrot.slane %v2104_v55, 4  ;;  %v2131_v32 = vshll.u32 %v7111_v21, 16  ;;  %v2136_v20 = vshrl.u32 %v5443_v52, 16  ;;  %v2139_v60 = vshll.u32 %v5443_v52, 16 }
  0x7f   : > { %v2118_v57 = vor.u32 %v2117_v1, %v2114_v8  ;;  %v2128_v6 = vor.u32 %v2127_v23, %v7136_v33  ;;  %v2145_v28 = vshll.u32 %v7134_v5, 16  ;;  %v2149_v56 = vshrl.u32 %v7134_v5, 16  ;;  %v5449_v8 = vld [vmem:[%s6486_s25 + $0x48] sm:$0xf]  ;;  %v7169_v1 = vld [vmem:[%s6486_s25 + $0x4c] sm:$0xf] }
  0x80   : > { %v2138_v50 = vrot.slane %v2136_v20, 4  ;;  %v2141_v51 = vrot.slane %v2139_v60, 5  ;;  %v9213_v3 = vcombine.low %v6547_v53, %v6551_v58  ;;  %v5352_v55 = vcombine.low %v7119_v18, %v7128_v4 }
  0x81   : > { %v7148_v45 = vrot.slane %v2145_v28, 5  ;;  %v2151_v11 = vrot.slane %v2149_v56, 4  ;;  %v2086_v63 = vsel %vm6530_vm4, %v2081_v12, %v2085_v62  ;;  %v2100_v52 = vsel %vm6530_vm4, %v2095_v14, %v7107_v17 }
  0x82   : > { %6098 = vmatmul.mubr.msk.bf16.gmra.mxu0 %vm693_vm3, %v5346_v61  ;;  %v7151_v61 = vld [vmem:[%s6486_s25 + $0x40] sm:$0xf]  ;;  %v9214_v53 = vcombine.low %v6585_v35, %v6596_v46  ;;  %v2110_v58 = vsel %vm6530_vm4, %v2105_v15, %v2109_v16  ;;  %v2119_v23 = vrot.slane %v2118_v57, 4  ;;  %v2142_v20 = vor.u32 %v2141_v51, %v2138_v50  ;;  %v7203_v50 = vld [vmem:[%s6486_s25 + $0x44] sm:$0x1] }
  0x83   : > { %6101 = vmatprep.mubr.msk.bf16.mxu0 %vm693_vm3, %v5347_v40  ;;  %v2076_v40 = vsel %vm6530_vm4, %v2071_v34, %v7091_v30  ;;  %v2129_v30 = vrot.slane %v2128_v6, 4  ;;  %v2133_v34 = vrot.slane %v2131_v32, 5  ;;  %v2155_v62 = vshll.u32 %v7142_v41, 16  ;;  %v5452_v51 = vld [vmem:[%s6486_s25 + $0x54] sm:$0xf] }
  0x84   : > { %v2160_v12 = vshrl.u32 %v5446_v13, 16  ;;  %v2163_v17 = vshll.u32 %v5446_v13, 16  ;;  %v7180_v14 = vsel %vm742_vm0, %v6911_v22, 0  ;;  %v2152_v35 = vor.u32 %v2151_v11, %v7148_v45 }
  0x85   : > { %6064 = vmatmul.mubr.msk.bf16.gmra.mxu1 %vm693_vm3, %v9213_v3  ;;  %v2169_v46 = vshll.u32 %v7151_v61, 16  ;;  %v2173_v16 = vshrl.u32 %v7151_v61, 16  ;;  %v7185_v15 = vcombine.low %v2076_v40, %v2086_v63  ;;  %v7189_v32 = vsel %vm742_vm0, %v6883_v24, 0  ;;  %v7212_v40 = vld [vmem:[%s6486_s25 + $0x58] sm:$0xf] }
  0x86   : > { %6067 = vmatprep.mubr.msk.bf16.mxu1 %vm693_vm3, %v9214_v53  ;;  %v2184_v60 = vshrl.u32 %v5449_v8, 16  ;;  %v2187_v57 = vshll.u32 %v5449_v8, 16  ;;  %v9215_v6 = vcombine.low %v6998_v25, %v7008_v54  ;;  %v7195_v22 = vcombine.low %v2100_v52, %v2110_v58  ;;  %v7217_v8 = vld [vmem:[%s6486_s25 + $0x50] sm:$0x1] }
  0x87   : > { %v2124_v28 = vsel %vm6530_vm4, %v2119_v23, %v7136_v33  ;;  %v2134_v56 = vsel %vm6530_vm4, %v2129_v30, %v2133_v34  ;;  %v2193_v24 = vshll.u32 %v7169_v1, 16  ;;  %v9216_v25 = vcombine.low %v7012_v39, %v7022_v27  ;;  %v5455_v34 = vld [vmem:[%s6486_s25 + $0x60] sm:$0xf] }
  0x88   : > { %v2143_v54 = vrot.slane %v2142_v20, 4  ;;  %v2157_v13 = vrot.slane %v2155_v62, 5  ;;  %v2162_v11 = vrot.slane %v2160_v12, 4  ;;  %v2165_v3 = vrot.slane %v2163_v17, 5 }
  0x89   : > { %v2153_v33 = vrot.slane %v2152_v35, 4  ;;  %v7214_v63 = vrot.slane %v2169_v46, 5  ;;  %v2175_v52 = vrot.slane %v2173_v16, 4  ;;  %v2197_v53 = vshrl.u32 %v7169_v1, 16  ;;  %v7234_v35 = vld [vmem:[%s6486_s25 + $0x5c] sm:$0x1] }
  0x8a   : > { %6102 = vmatmul.mubr.msk.bf16.gmra.mxu0 %vm693_vm3, %v9215_v6  ;;  %v9217_v39 = vcombine.low %v6635_v36, %v6642_v43  ;;  %v2186_v27 = vrot.slane %v2184_v60, 4  ;;  %v2189_v58 = vrot.slane %v2187_v57, 5  ;;  %v2208_v23 = vshrl.u32 %v5452_v51, 16 }
  0x8b   : > { %6105 = vmatprep.mubr.msk.bf16.mxu0 %vm693_vm3, %v9216_v25  ;;  %v2211_v30 = vshll.u32 %v5452_v51, 16  ;;  %v9218_v20 = vcombine.low %v9201_v2, %v9200_v10  ;;  %v7229_v62 = vcombine.low %v2124_v28, %v2134_v56  ;;  %v7231_v12 = vrot.slane %v2193_v24, 5  ;;  %v7247_v28 = vld [vmem:[%s6486_s25 + $0x64] sm:$0xf] }
  0x8c   : > { %v2199_v17 = vrot.slane %v2197_v53, 4  ;;  %v2217_v36 = vshll.u32 %v7212_v40, 16  ;;  %v2179_v43 = vshll.u32 %v7203_v50, 16  ;;  %v2210_v46 = vrot.slane %v2208_v23, 4 }
  0x8d   : > { %6068 = vmatmul.mubr.msk.bf16.gmra.mxu1 %vm693_vm3, %v9217_v39  ;;  %v2213_v16 = vrot.slane %v2211_v30, 5  ;;  %v2221_v60 = vshrl.u32 %v7212_v40, 16  ;;  %v2148_v10 = vsel %vm6530_vm4, %v2143_v54, %v7148_v45  ;;  %v2158_v2 = vsel %vm6530_vm4, %v2153_v33, %v2157_v13  ;;  %v7269_v30 = vld [vmem:[%s6486_s25 + $0x68] sm:$0x1] }
  0x8e   : > { %6071 = vmatprep.mubr.msk.bf16.mxu1 %vm693_vm3, %v9218_v20  ;;  %v2166_v57 = vor.u32 %v2165_v3, %v2162_v11  ;;  %v7244_v6 = vrot.slane %v2217_v36, 5  ;;  %v2176_v56 = vor.u32 %v2175_v52, %v7214_v63  ;;  %v2190_v24 = vor.u32 %v2189_v58, %v2186_v27  ;;  %v5458_v3 = vld [vmem:[%s6486_s25 + $0x6c] sm:$0xf]  ;;  %v7266_v27 = vld [vmem:[%s6486_s25 + $0x70] sm:$0xf] }
  0x8f   : > { %v2203_v51 = vshll.u32 %v7217_v8, 16  ;;  %v2223_v25 = vrot.slane %v2221_v60, 4  ;;  %v9219_v53 = vcombine.low %v7032_v19, %v7052_v9  ;;  %v2200_v45 = vor.u32 %v2199_v17, %v7231_v12 }
  0x90   : > { %v2214_v54 = vor.u32 %v2213_v16, %v2210_v46  ;;  %v2232_v13 = vshrl.u32 %v5455_v34, 16  ;;  %v2235_v11 = vshll.u32 %v5455_v34, 16  ;;  %v9220_v33 = vcombine.low %v7044_v59, %v7068_v7  ;;  %v5461_v16 = vld [vmem:[%s6486_s25 + $0x78] sm:$0xf] }
  0x91   : > { %v2224_v52 = vor.u32 %v2223_v25, %v7244_v6  ;;  %v2227_v39 = vshll.u32 %v7234_v35, 16  ;;  %v2241_v19 = vshll.u32 %v7247_v28, 16  ;;  %v2245_v9 = vshrl.u32 %v7247_v28, 16 }
  0x92   : > { %6106 = vmatmul.mubr.msk.bf16.gmra.mxu0 %vm693_vm3, %v9219_v53  ;;  %v2167_v58 = vrot.slane %v2166_v57, 4  ;;  %v2181_v23 = vrot.slane %v2179_v43, 5  ;;  %v2234_v34 = vrot.slane %v2232_v13, 4  ;;  %v2237_v20 = vrot.slane %v2235_v11, 5 }
  0x93   : > { %6109 = vmatprep.mubr.msk.bf16.mxu0 %vm693_vm3, %v9220_v33  ;;  %v9221_v59 = vcombine.low %v9204_v26, %v9203_v38  ;;  %v7275_v7 = vcombine.low %v2148_v10, %v2158_v2  ;;  %v2177_v17 = vrot.slane %v2176_v56, 4  ;;  %v2191_v36 = vrot.slane %v2190_v24, 4  ;;  %v7285_v2 = vld [vmem:[%s6486_s25 + $0x7c] sm:$0xf] }
  0x94   : > { %v7277_v46 = vrot.slane %v2241_v19, 5  ;;  %v9222_v43 = vcombine.low %v9207_v42, %v9206_v48  ;;  %v2201_v60 = vrot.slane %v2200_v45, 4  ;;  %v2205_v57 = vrot.slane %v2203_v51, 5  ;;  %9223 = vst [vmem:[#allocation3_spill] sm:$0xff] %v7285_v2  ;;  %v5464_v19 = vld [vmem:[%s6486_s25 + $0x84] sm:$0xf] }
  0x95   : > { %6072 = vmatmul.mubr.msk.bf16.gmra.mxu1 %vm693_vm3, %v9221_v59  ;;  %v2215_v25 = vrot.slane %v2214_v54, 4  ;;  %v2247_v38 = vrot.slane %v2245_v9, 4  ;;  %v2225_v26 = vrot.slane %v2224_v52, 4  ;;  %v2229_v53 = vrot.slane %v2227_v39, 5 }
  0x96   : > { %6075 = vmatprep.mubr.msk.bf16.mxu1 %vm693_vm3, %v9222_v43  ;;  %v2238_v13 = vor.u32 %v2237_v20, %v2234_v34  ;;  %v2256_v10 = vshrl.u32 %v5458_v3, 16  ;;  %v2172_v56 = vsel %vm6530_vm4, %v2167_v58, %v7214_v63  ;;  %v2259_v24 = vshll.u32 %v5458_v3, 16  ;;  %v6370_v63 = vld [vmem:[%s6486_s25 + $0xc] sm:$0xff]   ;;  %v7319_v34 = vld [vmem:[%s6486_s25 + $0x88] sm:$0xf] }
  0x97   : > { %v2265_v48 = vshll.u32 %v7266_v27, 16  ;;  %v2269_v42 = vshrl.u32 %v7266_v27, 16  ;;  %v2182_v51 = vsel %vm6530_vm4, %v2177_v17, %v2181_v23  ;;  %v2196_v45 = vsel %vm6530_vm4, %v2191_v36, %v7231_v12  ;;  %9224 = vst [vmem:[#allocation5_spill] sm:$0xff] %v7319_v34  ;;  %v7328_v36 = vld [vmem:[%s6486_s25 + $0x74] sm:$0x1] }
  0x98   : > { %v2248_v54 = vor.u32 %v2247_v38, %v7277_v46  ;;  %v2251_v11 = vshll.u32 %v7269_v30, 16  ;;  %v2206_v3 = vsel %vm6530_vm4, %v2201_v60, %v2205_v57  ;;  %v2220_v33 = vsel %vm6530_vm4, %v2215_v25, %v7244_v6  ;;  %9226 = vst [vmem:[#allocation4_spill] sm:$0xff] %v7328_v36  ;;  %v7338_v38 = vld [vmem:[%s6486_s25 + $0x80] sm:$0x1] }
  0x99   : > { %v2280_v52 = vshrl.u32 %v5461_v16, 16  ;;  %v2283_v12 = vshll.u32 %v5461_v16, 16  ;;  %v2230_v18 = vsel %vm6530_vm4, %v2225_v26, %v2229_v53  ;;  %v2239_v4 = vrot.slane %v2238_v13, 4  ;;  %9227 = vst [vmem:[#allocation6_spill] sm:$0xff] %v7338_v38  ;;  %v7341_v26 = vld [vmem:[%s6486_s25 + $0x8c] sm:$0x1] }
  0x9a   : > { %6110 = vmatmul.mubr.msk.bf16.gmra.mxu0 %vm693_vm3, %v5352_v55  ;;  %v2258_v55 = vrot.slane %v2256_v10, 4  ;;  %v2289_v39 = vshll.u32 %v7285_v2, 16  ;;  %v2261_v9 = vrot.slane %v2259_v24, 5  ;;  %v7315_v58 = vrot.slane %v2265_v48, 5  ;;  %9228 = vst [vmem:[#allocation8_spill] sm:$0xff] %v7341_v26  ;;  %v6371_v10 = vld [vmem:[%s6486_s25 + $0x18] sm:$0xff]  }
  0x9b   : > { %6149 = vmatprep.mubr.msk.bf16.mxu0 %vm693_vm3, %v7185_v15  ;;  %v2271_v23 = vrot.slane %v2269_v42, 4  ;;  %v2293_v6 = vshrl.u32 %v7285_v2, 16  ;;  %v9225_v15 = vcombine.low %v9209_v29, %v6795_v37  ;;  %v7325_v20 = vcombine.low %v2172_v56, %v2182_v51  ;;  %v5467_v51 = vld [vmem:[%s6486_s25 + $0x90] sm:$0xf] }
  0x9c   : > { %v2249_v59 = vrot.slane %v2248_v54, 4  ;;  %v2253_v17 = vrot.slane %v2251_v11, 5  ;;  %v2282_v16 = vrot.slane %v2280_v52, 4  ;;  %v2285_v43 = vrot.slane %v2283_v12, 5 }
  0x9d   : > { %6076 = vmatmul.mubr.msk.bf16.gmra.mxu1 %vm693_vm3, %v9225_v15  ;;  %v7331_v60 = vrot.slane %v2289_v39, 5  ;;  %v2295_v57 = vrot.slane %v2293_v6, 4  ;;  %v2304_v25 = vshrl.u32 %v5464_v19, 16  ;;  %v7333_v37 = vcombine.low %v2196_v45, %v2206_v3  ;;  %v7352_v45 = vld [vmem:[%s6486_s25 + $0x94] sm:$0xf] }
  0x9e   : > { %6115 = vmatprep.mubr.msk.bf16.mxu1 %vm693_vm3, %v6370_v63  ;;  %v7335_v29 = vcombine.low %v2220_v33, %v2230_v18  ;;  %v2307_v53 = vshll.u32 %v5464_v19, 16  ;;  %v2313_v13 = vshll.u32 %v7319_v34, 16  ;;  %v2244_v56 = vsel %vm6530_vm4, %v2239_v4, %v7277_v46  ;;  %9229 = vst [vmem:[#allocation7_spill] sm:$0xff] %v7352_v45  ;;  %v7360_v33 = vld [vmem:[%s9143_s1 + $0x10] sm:$0x3]  ;;  %v6372_v46 = vld [vmem:[%s6486_s25 + $0x24] sm:$0xff]  }
  0x9f   : > { %v2262_v24 = vor.u32 %v2261_v9, %v2258_v55  ;;  %v2272_v48 = vor.u32 %v2271_v23, %v7315_v58  ;;  %v2275_v42 = vshll.u32 %v7328_v36, 16  ;;  %v2306_v54 = vrot.slane %v2304_v25, 4  ;;  %9230 = vst [vmem:[#allocation9_spill] sm:$0xff] %v7360_v33 }
  0xa0   : > { %v2309_v11 = vrot.slane %v2307_v53, 5  ;;  %v7354_v63 = vrot.slane %v2313_v13, 5  ;;  %v2317_v3 = vshrl.u32 %v7319_v34, 16  ;;  %v2254_v52 = vsel %vm6530_vm4, %v2249_v59, %v2253_v17 }
  0xa1   : > { %v2286_v12 = vor.u32 %v2285_v43, %v2282_v16  ;;  %v2296_v18 = vor.u32 %v2295_v57, %v7331_v60  ;;  %v2299_v4 = vshll.u32 %v7338_v38, 16  ;;  %v2328_v19 = vshrl.u32 %v5467_v51, 16  ;;  %v7394_v57 = vld [vmem:[%s6486_s25 + $0xa0] sm:$0xf] }
  0xa2   : > { %6150 = vmatmul.mubr.msk.bf16.vlgmr.msra.gmra.mxu0 %vm693_vm3, %v7195_v22  ;;  %v2310_v55 = vor.u32 %v2309_v11, %v2306_v54  ;;  %v2319_v39 = vrot.slane %v2317_v3, 4  ;;  %v2331_v9 = vshll.u32 %v5467_v51, 16  ;;  %v5470_v22 = vld [vmem:[%s6486_s25 + $0x9c] sm:$0xf]  ;;  %v7373_v23 = vrot.slane %v2262_v24, 4  ;;  %9232 = vst [vmem:[#allocation10_spill] sm:$0xff] %v7394_v57 }
  0xa3   : > { %6216 = vmatpush3.bf16.msra.mxu0 %v7189_v32  ;;  %6153 = vmatprep.mubr.msk.bf16.mxu0 %vm693_vm3, %v7229_v62  ;;  %v7375_v6 = vrot.slane %v2275_v42, 5  ;;  %v2323_v15 = vshll.u32 %v7341_v26, 16  ;;  %v2337_v59 = vshll.u32 %v7352_v45, 16  ;;  %v7382_v32 = vld [vmem:[%s9143_s1 + $0xe] sm:$0x3]  ;;  %v7387_v62 = vcombine.low %v2244_v56, %v2254_v52 }
  0xa4   : > { %9231 = vst [vmem:[#allocation11_spill] sm:$0xff] %v7382_v32  ;;  %6328 = vmatprep.subr.msk.bf16.mxu0 %vm742_vm0, %v7360_v33  ;;  %v7389_v17 = vrot.slane %v2272_v48, 4  ;;  %v2320_v16 = vor.u32 %v2319_v39, %v7354_v63  ;;  %v2341_v43 = vshrl.u32 %v7352_v45, 16  ;;  %v7398_v25 = vrot.slane %v2286_v12, 4  ;;  %v7407_v56 = vld [vmem:[%s6486_s25 + $0x98] sm:$0x1] }
  0xa5   : > { %6116 = vmatmul.mubr.msk.bf16.vlgmr.msra.gmra.mxu1 %vm693_vm3, %v6371_v10  ;;  %v7400_v53 = vrot.slane %v2296_v18, 4  ;;  %v7402_v13 = vrot.slane %v2299_v4, 5  ;;  %v7404_v10 = vrot.slane %v2310_v55, 4  ;;  %9233 = vst [vmem:[#allocation12_spill] sm:$0xff] %v7407_v56  ;;  %v2330_v24 = vrot.slane %v2328_v19, 4  ;;  %v6374_v19 = vld [vmem:[%s6486_s25 + $0x3c] sm:$0xff]  }
  0xa6   : > { %6182 = vmatpush3.bf16.msra.mxu1 %v7180_v14  ;;  %6119 = vmatprep.mubr.msk.bf16.mxu1 %vm693_vm3, %v6372_v46  ;;  %v2333_v48 = vrot.slane %v2331_v9, 5  ;;  %v2352_v42 = vshrl.u32 %v5470_v22, 16  ;;  %v2355_v51 = vshll.u32 %v5470_v22, 16  ;;  %v6373_v14 = vld [vmem:[%s6486_s25 + $0x30] sm:$0xff]   ;;  %v7416_v11 = vrot.slane %v2323_v15, 5 }
  0xa7   : > { %6327 = vmatprep.subr.msk.bf16.mxu1 %vm742_vm0, %v7382_v32  ;;  %v7418_v3 = vrot.slane %v2337_v59, 5  ;;  %v2361_v46 = vshll.u32 %v7394_v57, 16  ;;  %v5473_v52 = vld [vmem:[%s6486_s25 + $0xa8] sm:$0xf]  ;;  %v7422_v12 = vrot.slane %v2320_v16, 4  ;;  %v2343_v18 = vrot.slane %v2341_v43, 4 }
  0xa8   : > { %v2347_v4 = vshll.u32 %v7407_v56, 16  ;;  %v2365_v55 = vshrl.u32 %v7394_v57, 16  ;;  %v7427_v39 = vld [vmem:[%s6486_s25 + $0xac] sm:$0xf]  ;;  %v2334_v59 = vor.u32 %v2333_v48, %v2330_v24  ;;  %v7451_v16 = vld [vmem:[%s6486_s25 + $0xa4] sm:$0x1] }
  0xa9   : > { %9234 = vst [vmem:[#allocation13_spill] sm:$0xff] %v7427_v39  ;;  %9235 = vst [vmem:[#allocation2_spill] sm:$0xff] %v7451_v16  ;;  %v2354_v43 = vrot.slane %v2352_v42, 4  ;;  %v2357_v22 = vrot.slane %v2355_v51, 5  ;;  %v2376_v54 = vshrl.u32 %v5473_v52, 16  ;;  %v7453_v9 = vrot.slane %v2361_v46, 5 }
  0xaa   : > { %6154 = vmatmul.mubr.msk.bf16.gmra.mxu0 %vm693_vm3, %v7275_v7  ;;  %v2367_v32 = vrot.slane %v2365_v55, 4  ;;  %v2379_v15 = vshll.u32 %v5473_v52, 16  ;;  %v2385_v33 = vshll.u32 %v7427_v39, 16  ;;  %v5476_v57 = vld [vmem:[%s6486_s25 + $0xb4] sm:$0xf]  ;;  %v2344_v24 = vor.u32 %v2343_v18, %v7418_v3 }
  0xab   : > { %6157 = vmatprep.mubr.msk.bf16.mxu0 %vm693_vm3, %v7325_v20  ;;  %v2326_v20 = vsel %vm6530_vm4, %v7422_v12, %v7416_v11  ;;  %v7463_v48 = vrot.slane %v2347_v4, 5  ;;  %v7466_v42 = vld [vmem:[%s6486_s25 + $0xb0] sm:$0x1]  ;;  %v2378_v51 = vrot.slane %v2376_v54, 4  ;;  %v7469_v46 = vld [vmem:[%s6486_s25 + $0xb8] sm:$0xf]  ;;  %v2358_v18 = vor.u32 %v2357_v22, %v2354_v43 }
  0xac   : > { %9236 = vst [vmem:[#allocation14_spill] sm:$0xff] %v7466_v42  ;;  %9237 = vst [vmem:[#allocation15_spill] sm:$0xff] %v7469_v46  ;;  %v2381_v52 = vrot.slane %v2379_v15, 5  ;;  %v7473_v55 = vrot.slane %v2385_v33, 5  ;;  %v2389_v11 = vshrl.u32 %v7427_v39, 16  ;;  %v7476_v12 = vrot.slane %v2334_v59, 4 }
  0xad   : > { %6120 = vmatmul.mubr.msk.bf16.gmra.mxu1 %vm693_vm3, %v6373_v14  ;;  %v2371_v14 = vshll.u32 %v7451_v16, 16  ;;  %v7479_v4 = vld [vmem:[%s6486_s25 + $0xbc] sm:$0x1]  ;;  %v2400_v54 = vshrl.u32 %v5476_v57, 16  ;;  %v2403_v7 = vshll.u32 %v5476_v57, 16  ;;  %v2368_v56 = vor.u32 %v2367_v32, %v7453_v9  ;;  %v6375_v16 = vld [vmem:[%s6486_s25 + $0x48] sm:$0xff]  }
  0xae   : > { %6123 = vmatprep.mubr.msk.bf16.mxu1 %vm693_vm3, %v6374_v19  ;;  %v2391_v45 = vrot.slane %v2389_v11, 4  ;;  %v2395_v19 = vshll.u32 %v7466_v42, 16  ;;  %v2409_v15 = vshll.u32 %v7469_v46, 16  ;;  %v5479_v33 = vld [vmem:[%s6486_s25 + $0xc0] sm:$0xf]  ;;  %v2382_v26 = vor.u32 %v2381_v52, %v2378_v51  ;;  %v6376_v57 = vld [vmem:[%s6486_s25 + $0x54] sm:$0xff]  }
  0xaf   : > { %v2402_v39 = vrot.slane %v2400_v54, 4  ;;  %v2405_v34 = vrot.slane %v2403_v7, 5  ;;  %v2413_v59 = vshrl.u32 %v7469_v46, 16  ;;  %v7488_v22 = vld [vmem:[%s6486_s25 + $0xc4] sm:$0xf]  ;;  %v2345_v43 = vrot.slane %v2344_v24, 4 }
  0xb0   : > { %v2373_v32 = vrot.slane %v2371_v14, 5  ;;  %v2392_v11 = vor.u32 %v2391_v45, %v7473_v55  ;;  %v2411_v42 = vrot.slane %v2409_v15, 5  ;;  %v2419_v7 = vshll.u32 %v7479_v4, 16  ;;  %v7500_v45 = vld [vmem:[%s6486_s25 + $0xc8] sm:$0x1] }
  0xb1   : > { %v2406_v51 = vor.u32 %v2405_v34, %v2402_v39  ;;  %v2415_v52 = vrot.slane %v2413_v59, 4  ;;  %v2424_v54 = vshrl.u32 %v5479_v33, 16  ;;  %v2359_v46 = vrot.slane %v2358_v18, 4 }
  0xb2   : > { %6158 = vmatmul.mubr.msk.bf16.gmra.mxu0 %vm693_vm3, %v7333_v37  ;;  %v2369_v38 = vrot.slane %v2368_v56, 4  ;;  %v2427_v2 = vshll.u32 %v5479_v33, 16  ;;  %v2433_v37 = vshll.u32 %v7488_v22, 16  ;;  %v2383_v24 = vrot.slane %v2382_v26, 4 }
  0xb3   : > { %6161 = vmatprep.mubr.msk.bf16.mxu0 %vm693_vm3, %v7335_v29  ;;  %v2397_v14 = vrot.slane %v2395_v19, 5  ;;  %v2416_v36 = vor.u32 %v2415_v52, %v2411_v42  ;;  %v2426_v15 = vrot.slane %v2424_v54, 4  ;;  %v2393_v34 = vrot.slane %v2392_v11, 4 }
  0xb4   : > { %v2429_v29 = vrot.slane %v2427_v2, 5  ;;  %v7503_v39 = vrot.slane %v2433_v37, 5  ;;  %v2437_v56 = vshrl.u32 %v7488_v22, 16  ;;  %v9238_v26 = vsel %vm6530_vm4, %v7389_v17, %v7375_v6 }
  0xb5   : > { %6124 = vmatmul.mubr.msk.bf16.gmra.mxu1 %vm693_vm3, %v6375_v16  ;;  %v9239_v16 = vsel %vm6530_vm4, %v7373_v23, %v7315_v58  ;;  %v2407_v19 = vrot.slane %v2406_v51, 4  ;;  %v2417_v33 = vrot.slane %v2416_v36, 4  ;;  %v2421_v2 = vrot.slane %v2419_v7, 5  ;;  %v6377_v23 = vld [vmem:[%s6486_s25 + $0x60] sm:$0xff]  }
  0xb6   : > { %6127 = vmatprep.mubr.msk.bf16.mxu1 %vm693_vm3, %v6376_v57  ;;  %v5491_v18 = vcombine.low %v9239_v16, %v9238_v26  ;;  %v9240_v59 = vsel %vm6530_vm4, %v7400_v53, %v7402_v13  ;;  %v9241_v6 = vsel %vm6530_vm4, %v7398_v25, %v7331_v60  ;;  %v2430_v57 = vor.u32 %v2429_v29, %v2426_v15  ;;  %v5517_v13 = vld [vmem:[%s6486_s25 + $0x24] sm:$0xe]  ;;  %v5520_v26 = vld [vmem:[%s6486_s25 + $0x48] sm:$0xe] }
  0xb7   : > { %v5492_v17 = vcombine.low %v9241_v6, %v9240_v59  ;;  %v2439_v11 = vrot.slane %v2437_v56, 4  ;;  %v2443_v58 = vshll.u32 %v7500_v45, 16  ;;  %v9242_v36 = vsel %vm6530_vm4, %v7404_v10, %v7354_v63  ;;  %v6378_v63 = vld [vmem:[%s6486_s25 + $0x6c] sm:$0xff]   ;;  %v5521_v6 = vld [vmem:[%s6486_s25 + $0x54] sm:$0xe] }
  0xb8   : > { %v5493_v51 = vcombine.low %v9242_v36, %v2326_v20  ;;  %v2340_v53 = vsel %vm6530_vm4, %v7476_v12, %v7418_v3  ;;  %v2350_v60 = vsel %vm6530_vm4, %v2345_v43, %v7463_v48  ;;  %v2364_v25 = vsel %vm6530_vm4, %v2359_v46, %v7453_v9  ;;  %v7556_v12 = vld [vmem:[%s6486_s25 + $0xc] sm:$0xe] }
  0xb9   : > { %v2374_v10 = vsel %vm6530_vm4, %v2369_v38, %v2373_v32  ;;  %v2388_v3 = vsel %vm6530_vm4, %v2383_v24, %v7473_v55  ;;  %v2398_v20 = vsel %vm6530_vm4, %v2393_v34, %v2397_v14  ;;  %v2440_v48 = vor.u32 %v2439_v11, %v7503_v39  ;;  %v5518_v55 = vld [vmem:[%s6486_s25 + $0x30] sm:$0xe]  ;;  %v5519_v14 = vld [vmem:[%s6486_s25 + $0x3c] sm:$0xe] }
  0xba   : > { %6162 = vmatmul.mubr.msk.bf16.gmra.mxu0 %vm693_vm3, %v7387_v62  ;;  %v2412_v62 = vsel %vm6530_vm4, %v2407_v19, %v2411_v42  ;;  %v2422_v38 = vsel %vm6530_vm4, %v2417_v33, %v2421_v2  ;;  %v7563_v9 = vrot.slane %v2430_v57, 4  ;;  %v2807_v46 = vrot.slane %v7047_v49, 5  ;;  %v6379_v57 = vld [vmem:[%s6486_s25 + $0x78] sm:$0xff]  }
  0xbb   : > { %6165 = vmatprep.mubr.msk.bf16.mxu0 %vm693_vm3, %v5491_v18  ;;  %v7567_v43 = vcombine.low %v2340_v53, %v2350_v60  ;;  %v7569_v32 = vrot.slane %v2440_v48, 4  ;;  %v7571_v52 = vrot.slane %v2443_v58, 5  ;;  %v5533_v7 = vrot.slane %v5517_v13, 9  ;;  %v6380_v53 = vld [vmem:[%s6486_s25 + $0x84] sm:$0xff]   ;;  %v5522_v13 = vld [vmem:[%s6486_s25 + $0x60] sm:$0xe] }
  0xbc   : > { %v7574_v54 = vcombine.low %v2364_v25, %v2374_v10  ;;  %v7576_v42 = vcombine.low %v2388_v3, %v2398_v20  ;;  %v5531_v37 = vrot.slane %v7556_v12, 9  ;;  %v2821_v24 = vrot.slane %v7096_v44, 5  ;;  %v6386_v49 = vld [vmem:[%s6486_s25 + $0x18] sm:$0xff]  }
  0xbd   : > { %6128 = vmatmul.mubr.msk.bf16.gmra.mxu1 %vm693_vm3, %v6377_v23  ;;  %v7582_v15 = vcombine.low %v2412_v62, %v2422_v38  ;;  %v2810_v34 = vrot.slane %v7083_v47, 5  ;;  %v2824_v29 = vrot.slane %v7111_v21, 5  ;;  %v5534_v56 = vrot.slane %v5518_v55, 9  ;;  %v5524_v55 = vld [vmem:[%s6486_s25 + $0x78] sm:$0xe] }
  0xbe   : > { %6131 = vmatprep.mubr.msk.bf16.mxu1 %vm693_vm3, %v6378_v63  ;;  %v2436_v16 = vsel %vm6530_vm4, %v7563_v9, %v7503_v39  ;;  %v7593_v44 = vrot.slane %v2807_v46, 4  ;;  %v7597_v18 = vsel %vm6816_vm7, %v5533_v7, %v2821_v24  ;;  %v2823_v19 = vrot.slane %v2821_v24, 4 }
  0xbf   : > { %v2446_v21 = vsel %vm6530_vm4, %v7569_v32, %v7571_v52  ;;  %v2828_v33 = vrot.slane %v7134_v5, 5  ;;  %v2831_v2 = vrot.slane %v7142_v41, 5  ;;  %v5535_v59 = vrot.slane %v5519_v14, 9  ;;  %v6385_v52 = vld [vmem:[%s6486_s25 + $0xc0] sm:$0xff]  }
  0xc0   : > { %v7609_v11 = vsel %vm6816_vm7, %v2823_v19, %v2824_v29  ;;  %v2835_v58 = vrot.slane %v7151_v61, 5  ;;  %v2838_v23 = vrot.slane %v7203_v50, 5  ;;  %v5536_v36 = vrot.slane %v5520_v26, 9  ;;  %v5525_v19 = vld [vmem:[%s6486_s25 + $0x84] sm:$0xe] }
  0xc1   : > { %v5550_v5 = vcombine.low %v7597_v18, %v7609_v11  ;;  %v7619_v41 = vsel %vm6816_vm7, %v5534_v56, %v2828_v33  ;;  %v2830_v60 = vrot.slane %v2828_v33, 4  ;;  %v2842_v25 = vrot.slane %v7169_v1, 5 }
  0xc2   : > { %6166 = vmatmul.mubr.msk.bf16.gmra.mxu0 %vm693_vm3, %v5492_v17  ;;  %v7626_v61 = vsel %vm6816_vm7, %v5535_v59, %v2835_v58  ;;  %v2837_v50 = vrot.slane %v2835_v58, 4  ;;  %v2845_v17 = vrot.slane %v7217_v8, 5  ;;  %v5537_v63 = vrot.slane %v5521_v6, 9  ;;  %v9243_v59 = vld [vmem:[#allocation4_spill] sm:$0xff] }
  0xc3   : > { %6169 = vmatprep.mubr.msk.bf16.mxu0 %vm693_vm3, %v5493_v51  ;;  %v7631_v10 = vsel %vm6816_vm7, %v2830_v60, %v2831_v2  ;;  %v7635_v3 = vsel %vm6816_vm7, %v5536_v36, %v2842_v25  ;;  %v2844_v1 = vrot.slane %v2842_v25, 4  ;;  %v2849_v20 = vrot.slane %v7212_v40, 5  ;;  %v5523_v51 = vld [vmem:[%s6486_s25 + $0x6c] sm:$0xe]  ;;  %v6381_v58 = vld [vmem:[%s6486_s25 + $0x90] sm:$0xff]  }
  0xc4   : > { %v5551_v48 = vcombine.low %v7619_v41, %v7631_v10  ;;  %v7644_v8 = vsel %vm6816_vm7, %v2837_v50, %v2838_v23  ;;  %v2852_v62 = vrot.slane %v7234_v35, 5  ;;  %v5538_v38 = vrot.slane %v5522_v13, 9  ;;  %v9244_v36 = vld [vmem:[#allocation3_spill] sm:$0xff]  ;;  %v5526_v60 = vld [vmem:[%s6486_s25 + $0x90] sm:$0xe]  ;;  %v9245_v50 = vld [vmem:[#allocation6_spill] sm:$0xff] }
  0xc5   : > { %6132 = vmatmul.mubr.msk.bf16.gmra.mxu1 %vm693_vm3, %v6379_v57  ;;  %v5552_v40 = vcombine.low %v7626_v61, %v7644_v8  ;;  %v7653_v7 = vsel %vm6816_vm7, %v2844_v1, %v2845_v17  ;;  %v7657_v24 = vsel %vm6816_vm7, %v5537_v63, %v2849_v20  ;;  %v2851_v14 = vrot.slane %v2849_v20, 4 }
  0xc6   : > { %6135 = vmatprep.mubr.msk.bf16.mxu1 %vm693_vm3, %v6380_v53  ;;  %v5553_v35 = vcombine.low %v7635_v3, %v7653_v7  ;;  %v2856_v29 = vrot.slane %v7247_v28, 5  ;;  %v2859_v56 = vrot.slane %v7269_v30, 5  ;;  %v5539_v26 = vrot.slane %v5523_v51, 9  ;;  %v9246_v51 = vld [vmem:[#allocation5_spill] sm:$0xff]  ;;  %v5657_v3 = vld [vmem:[%s6486_s25 + $0x48] sm:$0xf] }
  0xc7   : > { %v7666_v33 = vsel %vm6816_vm7, %v2851_v14, %v2852_v62  ;;  %v2863_v2 = vrot.slane %v7266_v27, 5  ;;  %v2866_v6 = vrot.slane %v9243_v59, 5  ;;  %v5540_v57 = vrot.slane %v5524_v55, 9  ;;  %v6382_v27 = vld [vmem:[%s6486_s25 + $0x9c] sm:$0xff]   ;;  %v9254_v55 = vld [vmem:[#allocation15_spill] sm:$0xff] }
  0xc8   : > { %v5554_v23 = vcombine.low %v7657_v24, %v7666_v33  ;;  %v7675_v28 = vsel %vm6816_vm7, %v5538_v38, %v2856_v29  ;;  %v2858_v30 = vrot.slane %v2856_v29, 4  ;;  %v2870_v53 = vrot.slane %v9244_v36, 5  ;;  %v5527_v38 = vld [vmem:[%s6486_s25 + $0x9c] sm:$0xe]  ;;  %v9249_v36 = vld [vmem:[#allocation12_spill] sm:$0xff] }
  0xc9   : > { %v7684_v25 = vsel %vm6816_vm7, %v5539_v26, %v2863_v2  ;;  %v2865_v13 = vrot.slane %v2863_v2, 4  ;;  %v2873_v17 = vrot.slane %v9245_v50, 5  ;;  %v5541_v63 = vrot.slane %v5525_v19, 9  ;;  %v5528_v26 = vld [vmem:[%s6486_s25 + $0xa8] sm:$0xe] }
  0xca   : > { %6170 = vmatmul.mubr.msk.bf16.gmra.mxu0 %vm693_vm3, %v7567_v43  ;;  %v7691_v1 = vsel %vm6816_vm7, %v2858_v30, %v2859_v56  ;;  %v7695_v43 = vsel %vm6816_vm7, %v5540_v57, %v2870_v53  ;;  %v2872_v20 = vrot.slane %v2870_v53, 4  ;;  %v2877_v62 = vrot.slane %v9246_v51, 5  ;;  %v5530_v57 = vld [vmem:[%s6486_s25 + $0xc0] sm:$0xe]  ;;  %v6383_v19 = vld [vmem:[%s6486_s25 + $0xa8] sm:$0xff]  }
  0xcb   : > { %6173 = vmatprep.mubr.msk.bf16.mxu0 %vm693_vm3, %v7574_v54  ;;  %v7703_v14 = vsel %vm6816_vm7, %v2865_v13, %v2866_v6  ;;  %v9247_v54 = vld [vmem:[#allocation8_spill] sm:$0xff]  ;;  %v5542_v56 = vrot.slane %v5526_v60, 9  ;;  %v2887_v53 = vrot.slane %v9249_v36, 5  ;;  %v5543_v60 = vrot.slane %v5527_v38, 9  ;;  %v9252_v38 = vld [vmem:[#allocation13_spill] sm:$0xff] }
  0xcc   : > { %v2880_v29 = vrot.slane %v9247_v54, 5  ;;  %v7712_v2 = vsel %vm6816_vm7, %v2872_v20, %v2873_v17  ;;  %v7716_v59 = vsel %vm6816_vm7, %v5541_v63, %v2877_v62  ;;  %v2879_v6 = vrot.slane %v2877_v62, 4  ;;  %v5529_v13 = vld [vmem:[%s6486_s25 + $0xb4] sm:$0xe]  ;;  %v9250_v17 = vld [vmem:[#allocation10_spill] sm:$0xff] }
  0xcd   : > { %6136 = vmatmul.mubr.msk.bf16.gmra.mxu1 %vm693_vm3, %v6381_v58  ;;  %v9248_v58 = vld [vmem:[#allocation7_spill] sm:$0xff]  ;;  %v2891_v63 = vrot.slane %v9250_v17, 5  ;;  %v9251_v20 = vld [vmem:[#allocation2_spill] sm:$0xff]  ;;  %v5544_v62 = vrot.slane %v5528_v26, 9  ;;  %v2898_v36 = vrot.slane %v9252_v38, 5  ;;  %v5545_v26 = vrot.slane %v5529_v13, 9 }
  0xce   : > { %6139 = vmatprep.mubr.msk.bf16.mxu1 %vm693_vm3, %v6382_v27  ;;  %v2884_v30 = vrot.slane %v9248_v58, 5  ;;  %v7726_v50 = vsel %vm6816_vm7, %v2879_v6, %v2880_v29  ;;  %v2894_v51 = vrot.slane %v9251_v20, 5  ;;  %v9253_v17 = vld [vmem:[#allocation14_spill] sm:$0xff]  ;;  %v6384_v27 = vld [vmem:[%s6486_s25 + $0xb4] sm:$0xff]   ;;  %v2811_v39 = vsel %vm6816_vm7, %v7593_v44, %v2810_v34  ;;  %v7943_v7 = vld [vmem:[%s6486_s25 + $0x4c] sm:$0xf] }
  0xcf   : > { %v7741_v29 = vsel %vm6816_vm7, %v5543_v60, %v2891_v63  ;;  %v2893_v6 = vrot.slane %v2891_v63, 4  ;;  %v2901_v20 = vrot.slane %v9253_v17, 5  ;;  %v2900_v38 = vrot.slane %v2898_v36, 4  ;;  %v6403_v44 = vld [vmem:[%s6486_s25 + $0x20] sm:$0x1] }
  0xd0   : > { %v7734_v54 = vsel %vm6816_vm7, %v5542_v56, %v2884_v30  ;;  %v2886_v58 = vrot.slane %v2884_v30, 4  ;;  %v7753_v30 = vsel %vm6816_vm7, %v5544_v62, %v2898_v36  ;;  %v2905_v60 = vrot.slane %v9254_v55, 5 }
  0xd1   : > { %v5546_v63 = vrot.slane %v5530_v57, 9  ;;  %v7769_v55 = vsel %vm6816_vm7, %v2900_v38, %v2901_v20  ;;  %v2912_v57 = vrot.slane %v7488_v22, 5  ;;  %v2808_v22 = vsel %vm6816_vm7, %v5531_v37, %v2807_v46  ;;  %v6388_v38 = vld [vmem:[%s6486_s25 + $0x30] sm:$0xff]  }
  0xd2   : > { %6174 = vmatmul.mubr.msk.bf16.gmra.mxu0 %vm693_vm3, %v7576_v42  ;;  %v7749_v56 = vsel %vm6816_vm7, %v2886_v58, %v2887_v53  ;;  %v7762_v42 = vsel %vm6816_vm7, %v2893_v6, %v2894_v51  ;;  %v2908_v53 = vrot.slane %v7479_v4, 5  ;;  %v2907_v58 = vrot.slane %v2905_v60, 4 }
  0xd3   : > { %6177 = vmatprep.mubr.msk.bf16.mxu0 %vm693_vm3, %v7582_v15  ;;  %v7773_v15 = vsel %vm6816_vm7, %v5545_v26, %v2905_v60  ;;  %v2915_v51 = vrot.slane %v7500_v45, 5  ;;  %v5516_v45 = vld [vmem:[%s6486_s25 + $0x18] sm:$0xe]  ;;  %v7813_v9 = vsel %vm6816_vm7, %v5546_v63, %v2912_v57  ;;  %v2914_v46 = vrot.slane %v2912_v57, 4  ;;  %v6387_v26 = vld [vmem:[%s6486_s25 + $0x24] sm:$0xff]  }
  0xd4   : > { %v7801_v32 = vsel %vm6816_vm7, %v2907_v58, %v2908_v53  ;;  %v5532_v37 = vrot.slane %v5516_v45, 9  ;;  %v5548_v34 = vcombine.low %v2808_v22, %v2811_v39  ;;  %v9255_v60 = vld [vmem:[#allocation9_spill] sm:$0xff] }
  0xd5   : > { %6140 = vmatmul.mubr.msk.bf16.gmra.mxu1 %vm693_vm3, %v6383_v19  ;;  %v5498_v19 = vcombine.low %v2436_v16, %v2446_v21  ;;  %v7818_v47 = vsel %vm6816_vm7, %v2914_v46, %v2915_v51  ;;  %v2817_v21 = vrot.slane %v6403_v44, 5  ;;  %v4571_v53 = vsel %vm742_vm0, %v9255_v60, 0  ;;  %v5645_v63 = vld [vmem:[%s6486_s25 + $0x18] sm:$0xf]  ;;  %v5646_v57 = vld [vmem:[%s6486_s25 + $0x1c] sm:$0xf] }
  0xd6   : > { %6143 = vmatprep.mubr.msk.bf16.mxu1 %vm693_vm3, %v6384_v27  ;;  %v6402_v27 = vld [vmem:[%s6486_s25 + $0x1c] sm:$0xf]  ;;  %v5648_v51 = vld [vmem:[%s6486_s25 + $0x24] sm:$0xf]  ;;  %v3619_v45 = vshrl.u32 %v5645_v63, 16  ;;  %v3628_v39 = vshll.u32 %v5646_v57, 16 }
  0xd7   : > { %v2814_v36 = vrot.slane %v6402_v27, 5  ;;  %v3622_v27 = vshll.u32 %v5645_v63, 16  ;;  %v3643_v46 = vshrl.u32 %v5648_v51, 16  ;;  %v6390_v44 = vld [vmem:[%s6486_s25 + $0x48] sm:$0xff]   ;;  %v5726_v60 = vld [vmem:[%s6486_s25 + $0x18] sm:$0xe] }
  0xd8   : > { %v7859_v63 = vld [vmem:[%s6486_s25 + $0x2c] sm:$0x1] }
  0xd9   : > { %v2816_v16 = vrot.slane %v2814_v36, 4  ;;  %v2815_v17 = vsel %vm6816_vm7, %v5532_v37, %v2814_v36  ;;  %v7843_v36 = vld [vmem:[%s6486_s25 + $0x28] sm:$0xf]  ;;  %v6389_v37 = vld [vmem:[%s6486_s25 + $0x3c] sm:$0xff]   ;;  %v3645_v18 = vrot.slane %v3643_v46, 4 }
  0xda   : > { %6178 = vmatmul.mubr.msk.bf16.gmra.mxu0 %vm693_vm3, %v5498_v19  ;;  %v9256_v19 = vld [vmem:[#allocation11_spill] sm:$0xff] }
  0xdb   : > { %6217 = vmatprep.mubr.msk.bf16.mxu0 %vm693_vm3, %v6386_v49  ;;  %v2818_v20 = vsel %vm6816_vm7, %v2816_v16, %v2817_v21  ;;  %v4101_v22 = vsel %vm742_vm0, %v9256_v19, 0  ;;  %v3632_v49 = vshrl.u32 %v5646_v57, 16  ;;  %v3656_v16 = vshrl.u32 %v7843_v36, 16  ;;  %v5647_v21 = vld [vmem:[%s6486_s25 + $0x20] sm:$0x1] }
  0xdc   : > { %v5549_v58 = vcombine.low %v2815_v17, %v2818_v20  ;;  %v3621_v17 = vrot.slane %v3619_v45, 4  ;;  %v3624_v20 = vrot.slane %v3622_v27, 5  ;;  %v5651_v19 = vld [vmem:[%s6486_s25 + $0x30] sm:$0xf]  ;;  %v3638_v45 = vshll.u32 %v5647_v21, 16 }
  0xdd   : > { %6144 = vmatmul.mubr.msk.bf16.gmra.mxu1 %vm693_vm3, %v6385_v52  ;;  %v3646_v52 = vshll.u32 %v5648_v51, 16  ;;  %v3658_v51 = vrot.slane %v3656_v16, 4  ;;  %v5742_v27 = vrot.slane %v5726_v60, 9  ;;  %v4365_v46 = vrot.slane %v5647_v21, 5  ;;  %v5727_v16 = vld [vmem:[%s6486_s25 + $0x24] sm:$0xe] }
  0xde   : > { %6183 = vmatprep.mubr.msk.bf16.mxu1 %vm693_vm3, %v5548_v34  ;;  %v3652_v34 = vshll.u32 %v7843_v36, 16  ;;  %v6391_v21 = vld [vmem:[%s6486_s25 + $0x54] sm:$0xff]   ;;  %v3670_v10 = vshll.u32 %v5651_v19, 16  ;;  %v6392_v60 = vld [vmem:[%s6486_s25 + $0x60] sm:$0xff]  }
  0xdf   : > { %v3648_v11 = vrot.slane %v3646_v52, 5  ;;  %v3662_v52 = vshll.u32 %v7859_v63, 16 }
  0xe2   : > { %6218 = vmatmul.mubr.msk.bf16.vlgmr.msra.gmra.mxu0 %vm693_vm3, %v6387_v26  ;;  %v7855_v26 = vrot.slane %v3628_v39, 5 }
  0xe3   : > { %6284 = vmatpush3.bf16.msra.mxu0 %v4571_v53  ;;  %6221 = vmatprep.mubr.msk.bf16.mxu0 %vm693_vm3, %v6388_v38  ;;  %v3634_v38 = vrot.slane %v3632_v49, 4  ;;  %v4362_v53 = vrot.slane %v5646_v57, 5  ;;  %v7869_v57 = vld [vmem:[%s6486_s25 + $0x34] sm:$0xf] }
  0xe5   : > { %6184 = vmatmul.mubr.msk.bf16.vlgmr.msra.gmra.mxu1 %vm693_vm3, %v5549_v58  ;;  %v7864_v58 = vrot.slane %v3652_v34, 5  ;;  %v3635_v39 = vor.u32 %v3634_v38, %v7855_v26  ;;  %v4364_v49 = vrot.slane %v4362_v53, 4  ;;  %v3649_v34 = vor.u32 %v3648_v11, %v3645_v18 }
  0xe6   : > { %6250 = vmatpush3.bf16.msra.mxu1 %v4101_v22  ;;  %6187 = vmatprep.mubr.msk.bf16.mxu1 %vm693_vm3, %v5550_v5  ;;  %v7862_v5 = vpop.f32.mrf.mxu0  ;;  %v3625_v22 = vor.u32 %v3624_v20, %v3621_v17  ;;  %v3667_v17 = vshrl.u32 %v5651_v19, 16  ;;  %v3680_v38 = vshrl.u32 %v7869_v57, 16  ;;  %v7894_v61 = vsel %vm6816_vm7, %v5742_v27, %v4362_v53  ;;  %v5654_v19 = vld [vmem:[%s6486_s25 + $0x3c] sm:$0xf] }
  0xe7   : > { %v3659_v41 = vor.u32 %v3658_v51, %v7864_v58  ;;  %v3636_v8 = vrot.slane %v3635_v39, 4  ;;  %v3664_v11 = vrot.slane %v3662_v52, 5  ;;  %v5743_v51 = vrot.slane %v5727_v16, 9  ;;  %v7908_v39 = vld [vmem:[%s6486_s25 + $0x38] sm:$0x1] }
  0xe8   : > { %v7886_v20 = vpop.f32.mrf.mxu0  ;;  %v3626_v18 = vrot.slane %v3625_v22, 4  ;;  %v3650_v12 = vrot.slane %v3649_v34, 4  ;;  %v4372_v22 = vrot.slane %v7859_v63, 5  ;;  %v3682_v52 = vrot.slane %v3680_v38, 4 }
  0xe9   : > { %v3660_v27 = vrot.slane %v3659_v41, 4  ;;  %v3691_v34 = vshrl.u32 %v5654_v19, 16  ;;  %v3694_v16 = vshll.u32 %v5654_v19, 16  ;;  %v7921_v41 = vld [vmem:[%s6486_s25 + $0x40] sm:$0xf] }
  0xea   : > { %6222 = vmatmul.mubr.msk.bf16.gmra.mxu0 %vm693_vm3, %v6389_v37  ;;  %v7905_v53 = vpop.f32.mrf.mxu0  ;;  %v3631_v63 = vsel %vm6530_vm4, %v3626_v18, %v7855_v26  ;;  %v3655_v26 = vsel %vm6530_vm4, %v3650_v12, %v7864_v58  ;;  %v5728_v18 = vld [vmem:[%s6486_s25 + $0x30] sm:$0xe]  ;;  %v3700_v24 = vshll.u32 %v7921_v41, 16  ;;  %v3704_v33 = vshrl.u32 %v7921_v41, 16 }
  0xeb   : > { %6225 = vmatprep.mubr.msk.bf16.mxu0 %vm693_vm3, %v6390_v44  ;;  %v7877_v37 = vpop.f32.mrf.mxu1  ;;  %v4369_v44 = vrot.slane %v7843_v36, 5  ;;  %v3640_v36 = vrot.slane %v3638_v45, 5  ;;  %v3669_v45 = vrot.slane %v3667_v17, 4  ;;  %v3665_v58 = vsel %vm6530_vm4, %v3660_v27, %v3664_v11 }
  0xec   : > { %9257 = vst [vmem:[#allocation4_spill] sm:$0xff] %v7877_v37  ;;  %v7950_v12 = vpop.f32.mrf.mxu0  ;;  %v3696_v19 = vrot.slane %v3694_v16, 5  ;;  %v3728_v11 = vshrl.u32 %v7943_v7, 16 }
  0xed   : > { %6188 = vmatmul.mubr.msk.bf16.gmra.mxu1 %vm693_vm3, %v5551_v48  ;;  %v3676_v48 = vshll.u32 %v7869_v57, 16  ;;  %v7901_v6 = vpop.f32.mrf.mxu1  ;;  %v4371_v4 = vrot.slane %v4369_v44, 4  ;;  %v3641_v17 = vsel %vm6530_vm4, %v3636_v8, %v3640_v36  ;;  %v4376_v36 = vrot.slane %v7869_v57, 5  ;;  %v6394_v8 = vld [vmem:[%s6486_s25 + $0x78] sm:$0xff]  }
  0xee   : > { %6191 = vmatprep.mubr.msk.bf16.mxu1 %vm693_vm3, %v5552_v40  ;;  %v7898_v40 = vsel %vm6816_vm7, %v4364_v49, %v4365_v46  ;;  %9258 = vst [vmem:[#allocation3_spill] sm:$0xff] %v7901_v6  ;;  %v3672_v49 = vrot.slane %v3670_v10, 5  ;;  %v7964_v27 = vcombine.low %v3631_v63, %v3641_v17  ;;  %v7966_v57 = vcombine.low %v3655_v26, %v3665_v58  ;;  %v7980_v17 = vld [vmem:[%s6486_s25 + $0x58] sm:$0xf]  ;;  %v7986_v58 = vld [vmem:[%s6486_s25 + $0x44] sm:$0x1] }
  0xef   : > { %v7910_v46 = vrot.slane %v3676_v48, 5  ;;  %v7927_v10 = vpop.f32.mrf.mxu1  ;;  %v7934_v48 = vsel %vm6816_vm7, %v5743_v51, %v4369_v44  ;;  %v7938_v38 = vsel %vm6816_vm7, %v4371_v4, %v4372_v22  ;;  %v3693_v51 = vrot.slane %v3691_v34, 4  ;;  %v5660_v34 = vld [vmem:[%s6486_s25 + $0x54] sm:$0xf] }
  0xf0   : > { %9259 = vst [vmem:[#allocation6_spill] sm:$0xff] %v7927_v10  ;;  %v3673_v44 = vor.u32 %v3672_v49, %v3669_v45  ;;  %v3718_v22 = vshll.u32 %v5657_v3, 16  ;;  %v4378_v13 = vrot.slane %v4376_v36, 4  ;;  %v4379_v63 = vrot.slane %v7908_v39, 5  ;;  %v5729_v49 = vld [vmem:[%s6486_s25 + $0x3c] sm:$0xe] }
  0xf1   : > { %v3683_v4 = vor.u32 %v3682_v52, %v7910_v46  ;;  %v7962_v45 = vpop.f32.mrf.mxu1  ;;  %v5744_v52 = vrot.slane %v5728_v18, 9  ;;  %v3697_v18 = vor.u32 %v3696_v19, %v3693_v51  ;;  %v9262_v6 = vcombine.low %v7675_v28, %v7691_v1 }
  0xf2   : > { %6226 = vmatmul.mubr.msk.bf16.gmra.mxu0 %vm693_vm3, %v6391_v21  ;;  %v3724_v21 = vshll.u32 %v7943_v7, 16  ;;  %9260 = vst [vmem:[#allocation5_spill] sm:$0xff] %v7962_v45  ;;  %v3720_v45 = vrot.slane %v3718_v22, 5  ;;  %v3739_v51 = vshrl.u32 %v5660_v34, 16  ;;  %v3742_v19 = vshll.u32 %v5660_v34, 16 }
  0xf3   : > { %6229 = vmatprep.mubr.msk.bf16.mxu0 %vm693_vm3, %v6392_v60  ;;  %v3686_v60 = vshll.u32 %v7908_v39, 16  ;;  %v7983_v26 = vrot.slane %v3683_v4, 4  ;;  %v3730_v39 = vrot.slane %v3728_v11, 4  ;;  %v8021_v22 = vsel %vm6816_vm7, %v4378_v13, %v4379_v63 }
  0xf4   : > { %v7991_v10 = vrot.slane %v3724_v21, 5  ;;  %v9264_v21 = vcombine.low %v7684_v25, %v7703_v14  ;;  %v4383_v25 = vrot.slane %v7921_v41, 5  ;;  %v6396_v14 = vld [vmem:[%s6486_s25 + $0x90] sm:$0xff]   ;;  %v5745_v1 = vrot.slane %v5729_v49, 9  ;;  %v5663_v41 = vld [vmem:[%s6486_s25 + $0x60] sm:$0xf] }
  0xf5   : > { %6192 = vmatmul.mubr.msk.bf16.gmra.mxu1 %vm693_vm3, %v5553_v35  ;;  %v6393_v35 = vld [vmem:[%s6486_s25 + $0x6c] sm:$0xff]   ;;  %v7976_v62 = vrot.slane %v3686_v60, 5  ;;  %v3741_v37 = vrot.slane %v3739_v51, 4 }
  0xf6   : > { %6195 = vmatprep.mubr.msk.bf16.mxu1 %vm693_vm3, %v5554_v23  ;;  %v3715_v23 = vshrl.u32 %v5657_v3, 16  ;;  %v7974_v3 = vrot.slane %v3673_v44, 4  ;;  %v3706_v44 = vrot.slane %v3704_v33, 4  ;;  %v3752_v33 = vshrl.u32 %v7980_v17, 16 }
  0xf7   : > { %v7972_v16 = vpop.f32.mrf.mxu0  ;;  %v3731_v13 = vor.u32 %v3730_v39, %v7991_v10  ;;  %v4390_v39 = vrot.slane %v7943_v7, 5  ;;  %v9268_v7 = vcombine.low %v7695_v43, %v7712_v2  ;;  %v9270_v43 = vcombine.low %v7716_v59, %v7726_v50  ;;  %v6397_v2 = vld [vmem:[%s6486_s25 + $0x9c] sm:$0xff]  }
  0xf8   : > { %9261 = vst [vmem:[#allocation8_spill] sm:$0xff] %v7972_v16  ;;  %v3717_v60 = vrot.slane %v3715_v23, 4  ;;  %v6395_v23 = vld [vmem:[%s6486_s25 + $0x84] sm:$0xff]   ;;  %v8048_v16 = vld [vmem:[%s6486_s25 + $0x5c] sm:$0x1]  ;;  %v4397_v59 = vrot.slane %v7980_v17, 5 }
  0xf9   : > { %v8009_v28 = vpop.f32.mrf.mxu0 }
  0xfa   : > { %6230 = vmatmul.mubr.msk.bf16.gmra.mxu0 %vm693_vm3, %v6393_v35  ;;  %v7988_v35 = vrot.slane %v3700_v24, 5  ;;  %v3748_v24 = vshll.u32 %v7980_v17, 16  ;;  %9265 = vst [vmem:[#allocation12_spill] sm:$0xff] %v8009_v28  ;;  %v3744_v28 = vrot.slane %v3742_v19, 5 }
  0xfb   : > { %6233 = vmatprep.mubr.msk.bf16.mxu0 %vm693_vm3, %v6394_v8  ;;  %v7997_v4 = vpop.f32.mrf.mxu1  ;;  %v8000_v8 = vld [vmem:[%s6486_s25 + $0x50] sm:$0x1]  ;;  %v8041_v49 = vpop.f32.mrf.mxu0 }
  0xfc   : > { %9263 = vst [vmem:[#allocation7_spill] sm:$0xff] %v7997_v4  ;;  %v3707_v34 = vor.u32 %v3706_v44, %v7988_v35  ;;  %v8031_v4 = vrot.slane %v3697_v18, 4  ;;  %v8038_v11 = vrot.slane %v3748_v24, 5  ;;  %v3754_v44 = vrot.slane %v3752_v33, 4  ;;  %9267 = vst [vmem:[#allocation2_spill] sm:$0xff] %v8041_v49 }
  0xfd   : > { %6196 = vmatmul.mubr.msk.bf16.gmra.mxu1 %vm693_vm3, %v9262_v6  ;;  %v8017_v6 = vsel %vm6816_vm7, %v5744_v52, %v4376_v36  ;;  %v3721_v36 = vor.u32 %v3720_v45, %v3717_v60  ;;  %v3734_v52 = vshll.u32 %v8000_v8, 16  ;;  %v8036_v63 = vpop.f32.mrf.mxu1  ;;  %v4385_v18 = vrot.slane %v4383_v25, 4  ;;  %v5730_v24 = vld [vmem:[%s6486_s25 + $0x48] sm:$0xe] }
  0xfe   : > { %6199 = vmatprep.mubr.msk.bf16.mxu1 %vm693_vm3, %v9264_v21  ;;  %v3710_v21 = vshll.u32 %v7986_v58, 16  ;;  %9266 = vst [vmem:[#allocation10_spill] sm:$0xff] %v8036_v63  ;;  %v4386_v60 = vrot.slane %v7986_v58, 5  ;;  %v3708_v51 = vrot.slane %v3707_v34, 4  ;;  %v3763_v33 = vshrl.u32 %v5663_v41, 16 }
  0xff   : > { %v8054_v63 = vsel %vm6816_vm7, %v5745_v1, %v4383_v25  ;;  %v3722_v45 = vrot.slane %v3721_v36, 4  ;;  %v3732_v49 = vrot.slane %v3731_v13, 4  ;;  %v3736_v58 = vrot.slane %v3734_v52, 5  ;;  %v8069_v36 = vld [vmem:[%s6486_s25 + $0x64] sm:$0xf]  ;;  %v8076_v13 = vpop.f32.mrf.mxu0 }
 0x100   : > { %v3712_v19 = vrot.slane %v3710_v21, 5  ;;  %v3703_v34 = vsel %vm6530_vm4, %v8031_v4, %v7988_v35  ;;  %v3745_v21 = vor.u32 %v3744_v28, %v3741_v37  ;;  %v3755_v1 = vor.u32 %v3754_v44, %v8038_v11  ;;  %9271 = vst [vmem:[#allocation14_spill] sm:$0xff] %v8076_v13  ;;  %v5731_v28 = vld [vmem:[%s6486_s25 + $0x54] sm:$0xe]  ;;  %v6401_v13 = vld [vmem:[%s6486_s25 + $0xcc] sm:$0xff]  }
 0x101   : > { %v3758_v25 = vshll.u32 %v8048_v16, 16  ;;  %v8080_v52 = vsel %vm6816_vm7, %v4385_v18, %v4386_v60  ;;  %v5746_v35 = vrot.slane %v5730_v24, 9  ;;  %v4392_v37 = vrot.slane %v4390_v39, 4 }
 0x102   : > { %6234 = vmatmul.mubr.msk.bf16.gmra.mxu0 %vm693_vm3, %v6395_v23  ;;  %v3766_v23 = vshll.u32 %v5663_v41, 16  ;;  %v4393_v4 = vrot.slane %v8000_v8, 5  ;;  %v6398_v41 = vld [vmem:[%s6486_s25 + $0xa8] sm:$0xff]   ;;  %v3713_v44 = vsel %vm6530_vm4, %v3708_v51, %v3712_v19  ;;  %v3765_v50 = vrot.slane %v3763_v33, 4 }
 0x103   : > { %6237 = vmatprep.mubr.msk.bf16.mxu0 %vm693_vm3, %v6396_v14  ;;  %v8060_v14 = vpop.f32.mrf.mxu1  ;;  %v3737_v18 = vsel %vm6530_vm4, %v3732_v49, %v3736_v58  ;;  %v3772_v60 = vshll.u32 %v8069_v36, 16  ;;  %v3776_v8 = vshrl.u32 %v8069_v36, 16  ;;  %v3756_v51 = vrot.slane %v3755_v1, 4  ;;  %v8098_v33 = vld [vmem:[%s6486_s25 + $0x68] sm:$0x1] }
 0x104   : > { %9269 = vst [vmem:[#allocation13_spill] sm:$0xff] %v8060_v14  ;;  %v3746_v14 = vrot.slane %v3745_v21, 4  ;;  %v3760_v17 = vrot.slane %v3758_v25, 5  ;;  %v5747_v19 = vrot.slane %v5731_v28, 9  ;;  %v9274_v49 = vsel %vm6530_vm4, %v7983_v26, %v7976_v62  ;;  %v5666_v25 = vld [vmem:[%s6486_s25 + $0x6c] sm:$0xf] }
 0x105   : > { %6200 = vmatmul.mubr.msk.bf16.gmra.mxu1 %vm693_vm3, %v9268_v7  ;;  %v3768_v7 = vrot.slane %v3766_v23, 5  ;;  %v8095_v24 = vpop.f32.mrf.mxu1  ;;  %v8119_v21 = vsel %vm6816_vm7, %v5746_v35, %v4390_v39  ;;  %v8123_v1 = vsel %vm6816_vm7, %v4392_v37, %v4393_v4  ;;  %v8126_v62 = vcombine.low %v3703_v34, %v3713_v44  ;;  %v5732_v4 = vld [vmem:[%s6486_s25 + $0x60] sm:$0xe]  ;;  %v5672_v44 = vld [vmem:[%s6486_s25 + $0x84] sm:$0xf] }
 0x106   : > { %6203 = vmatprep.mubr.msk.bf16.mxu1 %vm693_vm3, %v9270_v43  ;;  %v3727_v43 = vsel %vm6530_vm4, %v3722_v45, %v7991_v10  ;;  %9272 = vst [vmem:[#allocation15_spill] sm:$0xff] %v8095_v24  ;;  %v9275_v45 = vsel %vm6530_vm4, %v7974_v3, %v7910_v46  ;;  %v4399_v46 = vrot.slane %v4397_v59, 4  ;;  %v4400_v3 = vrot.slane %v8048_v16, 5 }
 0x107   : > { %v8113_v23 = vcombine.low %v9275_v45, %v9274_v49  ;;  %9276 = vst [vmem:[#allocation11_spill] sm:$0xff] %v8126_v62  ;;  %v3769_v26 = vor.u32 %v3768_v7, %v3765_v50  ;;  %v8133_v28 = vcombine.low %v3727_v43, %v3737_v18  ;;  %v8135_v39 = vrot.slane %v3772_v60, 5 }
 0x108   : > { %v8101_v10 = vpop.f32.mrf.mxu0  ;;  %v8137_v35 = vrot.slane %v3776_v8, 4  ;;  %v3782_v37 = vshll.u32 %v8098_v33, 16  ;;  %v9278_v34 = vcombine.low %v7734_v54, %v7749_v56  ;;  %v3751_v50 = vsel %vm6530_vm4, %v3746_v14, %v8038_v11  ;;  %v5669_v54 = vld [vmem:[%s6486_s25 + $0x78] sm:$0xf] }
 0x109   : > { %9273 = vst [vmem:[#allocation9_spill] sm:$0xff] %v8101_v10  ;;  %9277 = vst [vmem:[#allocation16_spill] sm:$0xff] %v8133_v28  ;;  %v3761_v7 = vsel %vm6530_vm4, %v3756_v51, %v3760_v17  ;;  %v8157_v43 = vsel %vm6816_vm7, %v5747_v19, %v4397_v59  ;;  %v9280_v56 = vcombine.low %v7741_v29, %v7762_v42  ;;  %v3787_v60 = vshrl.u32 %v5666_v25, 16  ;;  %v8169_v51 = vld [vmem:[%s6486_s25 + $0x7c] sm:$0xf]  ;;  %v6400_v59 = vld [vmem:[%s6486_s25 + $0xc0] sm:$0xff]  }
 0x10a   : > { %6238 = vmatmul.mubr.msk.bf16.gmra.mxu0 %vm693_vm3, %v6397_v2  ;;  %v8131_v2 = vld [vmem:[%s6486_s25 + $0x70] sm:$0xf]  ;;  %v8164_v18 = vpop.f32.mrf.mxu0  ;;  %v3790_v8 = vshll.u32 %v5666_v25, 16  ;;  %v8174_v17 = vsel %vm6816_vm7, %v4399_v46, %v4400_v3  ;;  %v8176_v29 = vrot.slane %v3769_v26, 4  ;;  %v5748_v42 = vrot.slane %v5732_v4, 9 }
 0x10b   : > { %6241 = vmatprep.mubr.msk.bf16.mxu0 %vm693_vm3, %v6398_v41  ;;  %v6399_v41 = vld [vmem:[%s6486_s25 + $0xb4] sm:$0xff]   ;;  %9281 = vst [vmem:[#allocation18_spill] sm:$0xff] %v8164_v18  ;;  %v3796_v11 = vshll.u32 %v8131_v2, 16  ;;  %v3800_v14 = vshrl.u32 %v8131_v2, 16  ;;  %v4404_v19 = vrot.slane %v8069_v36, 5  ;;  %v8179_v49 = vcombine.low %v3751_v50, %v3761_v7 }
 0x10c   : > { %v3779_v45 = vor.u32 %v8137_v35, %v8135_v39  ;;  %v8183_v25 = vrot.slane %v3782_v37, 5  ;;  %v3811_v46 = vshrl.u32 %v5669_v54, 16  ;;  %v3814_v3 = vshll.u32 %v5669_v54, 16  ;;  %v8195_v4 = vld [vmem:[%s6486_s25 + $0x88] sm:$0xf]  ;;  %v8198_v35 = vpop.f32.mrf.mxu0 }
 0x10d   : > { %6204 = vmatmul.mubr.msk.bf16.gmra.mxu1 %vm693_vm3, %v9278_v34  ;;  %v8145_v16 = vpop.f32.mrf.mxu1  ;;  %9282 = vst [vmem:[#allocation19_spill] sm:$0xff] %v8179_v49  ;;  %v4407_v34 = vrot.slane %v8098_v33, 5  ;;  %v3820_v36 = vshll.u32 %v8169_v51, 16  ;;  %v3824_v26 = vshrl.u32 %v8169_v51, 16  ;;  %9284 = vst [vmem:[#allocation21_spill] sm:$0xff] %v8198_v35  ;;  %v3789_v33 = vrot.slane %v3787_v60, 4 }
 0x10e   : > { %9279 = vst [vmem:[#allocation17_spill] sm:$0xff] %v8145_v16  ;;  %6207 = vmatprep.mubr.msk.bf16.mxu1 %vm693_vm3, %v9280_v56  ;;  %v8187_v56 = vld [vmem:[%s6486_s25 + $0x74] sm:$0x1]  ;;  %v3792_v37 = vrot.slane %v3790_v8, 5  ;;  %v8200_v50 = vrot.slane %v3796_v11, 5  ;;  %v3802_v7 = vrot.slane %v3800_v14, 4  ;;  %v9285_v54 = vcombine.low %v7753_v30, %v7769_v55  ;;  %v8228_v49 = vpop.f32.mrf.mxu0 }
 0x10f   : > { %v8190_v58 = vpop.f32.mrf.mxu1  ;;  %v4406_v16 = vrot.slane %v4404_v19, 4  ;;  %v8213_v60 = vld [vmem:[%s6486_s25 + $0x80] sm:$0x1]  ;;  %v8216_v8 = vld [vmem:[%s6486_s25 + $0x6c] sm:$0xe]  ;;  %v3835_v11 = vshrl.u32 %v5672_v44, 16 }
 0x110   : > { %9283 = vst [vmem:[#allocation20_spill] sm:$0xff] %v8190_v58  ;;  %v8209_v58 = vsel %vm6816_vm7, %v5748_v42, %v4404_v19  ;;  %v3838_v14 = vshll.u32 %v5672_v44, 16  ;;  %v3848_v24 = vshrl.u32 %v8195_v4, 16  ;;  %v3813_v19 = vrot.slane %v3811_v46, 4  ;;  %9287 = vst [vmem:[#allocation23_spill] sm:$0xff] %v8228_v49 }
 0x111   : > { %v8224_v42 = vpop.f32.mrf.mxu1  ;;  %v3816_v35 = vrot.slane %v3814_v3, 5  ;;  %v8226_v18 = vrot.slane %v3820_v36, 5  ;;  %v3826_v10 = vrot.slane %v3824_v26, 4  ;;  %v9288_v44 = vcombine.low %v7773_v15, %v7801_v32  ;;  %v8247_v32 = vld [vmem:[%s6486_s25 + $0x8c] sm:$0x1] }
 0x112   : > { %6242 = vmatmul.mubr.msk.bf16.gmra.mxu0 %vm693_vm3, %v6399_v41  ;;  %v3806_v41 = vshll.u32 %v8187_v56, 16  ;;  %9286 = vst [vmem:[#allocation22_spill] sm:$0xff] %v8224_v42  ;;  %v3793_v30 = vor.u32 %v3792_v37, %v3789_v33  ;;  %v3803_v55 = vor.u32 %v3802_v7, %v8200_v50  ;;  %v3830_v46 = vshll.u32 %v8213_v60, 16  ;;  %v5734_v33 = vld [vmem:[%s6486_s25 + $0x78] sm:$0xe] }
 0x113   : > { %6245 = vmatprep.mubr.msk.bf16.mxu0 %vm693_vm3, %v6400_v59  ;;  %v3844_v59 = vshll.u32 %v8195_v4, 16  ;;  %v8238_v3 = vrot.slane %v3779_v45, 4  ;;  %v8242_v36 = vsel %vm6816_vm7, %v4406_v16, %v4407_v34  ;;  %v5749_v26 = vrot.slane %v8216_v8, 9  ;;  %v8252_v42 = vpop.f32.mrf.mxu1  ;;  %v5675_v8 = vld [vmem:[%s6486_s25 + $0x90] sm:$0xf] }
 0x114   : > { %v4418_v15 = vrot.slane %v8169_v51, 5  ;;  %v3837_v37 = vrot.slane %v3835_v11, 4  ;;  %v3840_v7 = vrot.slane %v3838_v14, 5  ;;  %9289 = vst [vmem:[#allocation24_spill] sm:$0xff] %v8252_v42  ;;  %v3808_v45 = vrot.slane %v3806_v41, 5 }
 0x115   : > { %6208 = vmatmul.mubr.msk.bf16.gmra.mxu1 %vm693_vm3, %v9285_v54  ;;  %v4411_v54 = vrot.slane %v8131_v2, 5  ;;  %v8250_v2 = vrot.slane %v3844_v59, 5  ;;  %v4414_v49 = vrot.slane %v8187_v56, 5  ;;  %v3817_v16 = vor.u32 %v3816_v35, %v3813_v19  ;;  %v8261_v59 = vld [vmem:[%s6486_s25 + $0x94] sm:$0xf] }
 0x116   : > { %6211 = vmatprep.mubr.msk.bf16.mxu1 %vm693_vm3, %v9288_v44  ;;  %v3850_v44 = vrot.slane %v3848_v24, 4  ;;  %v3827_v34 = vor.u32 %v3826_v10, %v8226_v18  ;;  %v3794_v51 = vrot.slane %v3793_v30, 4  ;;  %v3804_v11 = vrot.slane %v3803_v55, 4 }
 0x117   : > { %v4413_v62 = vrot.slane %v4411_v54, 4  ;;  %v3832_v14 = vrot.slane %v3830_v46, 5  ;;  %v9290_v24 = vcombine.low %v7894_v61, %v7898_v40  ;;  %v5750_v56 = vrot.slane %v5734_v33, 9 }
 0x118   : > { %v4420_v35 = vrot.slane %v4418_v15, 4  ;;  %v4421_v10 = vrot.slane %v8213_v60, 5  ;;  %v3854_v41 = vshll.u32 %v8247_v32, 16  ;;  %v3851_v30 = vor.u32 %v3850_v44, %v8250_v2 }
 0x119   : > { %v3859_v55 = vshrl.u32 %v5675_v8, 16  ;;  %v3862_v46 = vshll.u32 %v5675_v8, 16  ;;  %v9292_v61 = vcombine.low %v7813_v9, %v7818_v47  ;;  %v3818_v40 = vrot.slane %v3817_v16, 4 }
 0x11a   : > { %v8257_v28 = vpop.f32.mrf.mxu0  ;;  %6246 = vmatmul.mubr.msk.bf16.gmra.mxu0 %vm693_vm3, %v6401_v13  ;;  %v3841_v13 = vor.u32 %v3840_v7, %v3837_v37  ;;  %v3828_v33 = vrot.slane %v3827_v34, 4  ;;  %v3868_v60 = vshll.u32 %v8261_v59, 16  ;;  %v3785_v37 = vsel %vm6530_vm4, %v8238_v3, %v8183_v25 }
 0x11b   : > { %6285 = vmatprep.mubr.msk.bf16.mxu0 %vm693_vm3, %v9290_v24  ;;  %v3872_v24 = vshrl.u32 %v8261_v59, 16  ;;  %v3799_v9 = vsel %vm6530_vm4, %v3794_v51, %v8200_v50  ;;  %v8293_v47 = vsel %vm6816_vm7, %v5749_v26, %v4411_v54  ;;  %v8297_v7 = vsel %vm6816_vm7, %v4413_v62, %v4414_v49  ;;  %v5735_v54 = vld [vmem:[%s6486_s25 + $0x84] sm:$0xe]  ;;  %v9331_v31 = vld [vmem:[#allocation24_spill] sm:$0xff] }
 0x11c   : > { %v8269_v19 = vpop.f32.mrf.mxu0  ;;  %v8305_v25 = vsel %vm6816_vm7, %v5750_v56, %v4418_v15  ;;  %v8309_v50 = vsel %vm6816_vm7, %v4420_v35, %v4421_v10  ;;  %v3856_v3 = vrot.slane %v3854_v41, 5  ;;  %v3842_v62 = vrot.slane %v3841_v13, 4  ;;  %v8333_v13 = vld [vmem:[%s6486_s25 + $0x98] sm:$0x1] }
 0x11d   : > { %9291 = vst [vmem:[#allocation25_spill] sm:$0xff] %v8269_v19  ;;  %v8272_v42 = vpop.f32.mrf.mxu1  ;;  %6212 = vmatmul.mubr.msk.bf16.gmra.mxu1 %vm693_vm3, %v9292_v61  ;;  %v3852_v49 = vrot.slane %v3851_v30, 4  ;;  %v3861_v16 = vrot.slane %v3859_v55, 4  ;;  %v3864_v34 = vrot.slane %v3862_v46, 5  ;;  %v3823_v15 = vsel %vm6530_vm4, %v3818_v40, %v8226_v18  ;;  %v5678_v30 = vld [vmem:[%s6486_s25 + $0x9c] sm:$0xf] }
 0x11e   : > { %v8280_v19 = vpop.f32.mrf.mxu0  ;;  %6251 = vmatprep.mubr.msk.bf16.mxu1 %vm693_vm3, %v7964_v27  ;;  %v3809_v27 = vsel %vm6530_vm4, %v3804_v11, %v3808_v45  ;;  %v3833_v45 = vsel %vm6530_vm4, %v3828_v33, %v3832_v14  ;;  %v8321_v51 = vrot.slane %v3868_v60, 5  ;;  %v3874_v11 = vrot.slane %v3872_v24, 4  ;;  %v8364_v24 = vld [vmem:[%s6486_s25 + $0xa0] sm:$0xf] }
 0x11f   : > { %v8299_v44 = vpop.f32.mrf.mxu1  ;;  %v9293_v35 = vcombine.low %v7934_v48, %v7938_v38  ;;  %v5764_v10 = vcombine.low %v8157_v43, %v8174_v17  ;;  %v5765_v41 = vcombine.low %v8209_v58, %v8242_v36  ;;  %v5751_v18 = vrot.slane %v5735_v54, 9 }
 0x120   : > { %v8312_v26 = vpop.f32.mrf.mxu0  ;;  %v4425_v14 = vrot.slane %v8195_v4, 5  ;;  %v9294_v48 = vcombine.low %v8017_v6, %v8021_v22  ;;  %v9295_v38 = vsel %vm6530_vm4, %v8176_v29, %v8135_v39  ;;  %v8349_v61 = vcombine.low %v3799_v9, %v3809_v27  ;;  %v5736_v29 = vld [vmem:[%s6486_s25 + $0x90] sm:$0xe]  ;;  %v9302_v4 = vld [vmem:[#allocation2_spill] sm:$0xff] }
 0x121   : > { %v8314_v8 = vpop.f32.mrf.mxu1  ;;  %v8347_v46 = vcombine.low %v9295_v38, %v3785_v37  ;;  %v8355_v60 = vcombine.low %v3823_v15, %v3833_v45  ;;  %v3847_v6 = vsel %vm6530_vm4, %v3842_v62, %v8250_v2  ;;  %v3857_v22 = vsel %vm6530_vm4, %v3852_v49, %v3856_v3 }
 0x122   : > { %v6083_v56 = vpop.f32.mrf.mxu0  ;;  %6286 = vmatmul.mubr.msk.bf16.vlgmr.msra.gmra.mxu0 %vm693_vm3, %v9293_v35  ;;  %v3865_v39 = vor.u32 %v3864_v34, %v3861_v16  ;;  %v3875_v9 = vor.u32 %v3874_v11, %v8321_v51  ;;  %v3878_v27 = vshll.u32 %v8333_v13, 16  ;;  %v3883_v54 = vshrl.u32 %v5678_v30, 16 }
 0x123   : > { %v8336_v55 = vpop.f32.mrf.mxu1  ;;  %6289 = vmatprep.mubr.msk.bf16.mxu0 %vm693_vm3, %v9294_v48  ;;  %v3886_v15 = vshll.u32 %v5678_v30, 16  ;;  %v8375_v3 = vsel %vm6816_vm7, %v5751_v18, %v4425_v14  ;;  %v4427_v62 = vrot.slane %v4425_v14, 4  ;;  %v4428_v49 = vrot.slane %v8247_v32, 5 }
 0x124   : > { %v1497_v33 = vpop.f32.mrf.mxu0  ;;  %v5752_v16 = vrot.slane %v5736_v29, 9  ;;  %v4432_v34 = vrot.slane %v8261_v59, 5  ;;  %v3892_v11 = vshll.u32 %v8364_v24, 16  ;;  %v3896_v35 = vshrl.u32 %v8364_v24, 16 }
 0x125   : > { %v6049_v37 = vpop.f32.mrf.mxu1  ;;  %6252 = vmatmul.mubr.msk.bf16.vlgmr.msra.gmra.mxu1 %vm693_vm3, %v7966_v57  ;;  %v8384_v48 = vcombine.low %v3847_v6, %v3857_v22  ;;  %v8386_v18 = vrot.slane %v3865_v39, 4  ;;  %v3876_v32 = vrot.slane %v3875_v9, 4  ;;  %v3880_v38 = vrot.slane %v3878_v27, 5  ;;  %v5681_v22 = vld [vmem:[%s6486_s25 + $0xa8] sm:$0xf] }
 0x126   : > { %v1081_v45 = vadd.f32 %v6049_v37, %v7862_v5  ;;  %v6084_v2 = vpop.f32.mrf.mxu0  ;;  %6255 = vmatprep.mubr.msk.bf16.mxu1 %vm693_vm3, %v8113_v23  ;;  %v3885_v29 = vrot.slane %v3883_v54, 4  ;;  %v3888_v59 = vrot.slane %v3886_v15, 5  ;;  %v4435_v6 = vrot.slane %v8333_v13, 5  ;;  %v8412_v27 = vld [vmem:[%s6486_s25 + $0xac] sm:$0xf] }
 0x127   : > { %v1072_v57 = vpop.f32.mrf.mxu1  ;;  %v3898_v9 = vrot.slane %v3896_v35, 4  ;;  %v9299_v35 = vld [vmem:[#allocation8_spill] sm:$0xff] }
 0x128   : > { %v8381_v5 = vadd.f32 %v6083_v56, %v1081_v45  ;;  %v1073_v23 = vadd.f32 %v1072_v57, %v7886_v20  ;;  %v1500_v30 = vpop.f32.mrf.mxu0  ;;  %v9296_v45 = vcombine.low %v8054_v63, %v8080_v52  ;;  %v8397_v20 = vsel %vm6816_vm7, %v4427_v62, %v4428_v49  ;;  %v5737_v62 = vld [vmem:[%s6486_s25 + $0x9c] sm:$0xe] }
 0x129   : > { %v6050_v14 = vpop.f32.mrf.mxu1  ;;  %v4434_v63 = vrot.slane %v4432_v34, 4  ;;  %v8409_v52 = vrot.slane %v3892_v11, 5  ;;  %v4439_v49 = vrot.slane %v8364_v24, 5  ;;  %v3916_v24 = vshll.u32 %v8412_v27, 16 }
 0x12a   : > { %v8388_v37 = vadd.f32 %v1497_v33, %v1073_v23  ;;  %v1084_v40 = vadd.f32 %v6050_v14, %v7905_v53  ;;  %v6087_v56 = vpop.f32.mrf.mxu0  ;;  %6290 = vmatmul.mubr.msk.bf16.gmra.mxu0 %vm693_vm3, %v9296_v45  ;;  %v9297_v33 = vcombine.low %v8119_v21, %v8123_v1  ;;  %v8407_v53 = vsel %vm6816_vm7, %v5752_v16, %v4432_v34  ;;  %v5680_v1 = vld [vmem:[%s6486_s25 + $0xa4] sm:$0x1]  ;;  %v9298_v16 = vld [vmem:[#allocation11_spill] sm:$0xff] }
 0x12b   : > { %v1075_v39 = vpop.f32.mrf.mxu1  ;;  %v3871_v21 = vsel %vm6530_vm4, %v8386_v18, %v8321_v51  ;;  %v3907_v34 = vshrl.u32 %v5681_v22, 16  ;;  %v9300_v51 = vld [vmem:[#allocation16_spill] sm:$0xff]  ;;  %v3920_v18 = vshrl.u32 %v8412_v27, 16 }
 0x12c   : > { %6293 = vmatprep.mubr.msk.bf16.mxu0 %vm693_vm3, %v9297_v33  ;;  %v8414_v54 = vadd.f32 %v6084_v2, %v1084_v40  ;;  %v1076_v13 = vadd.f32 %v1075_v39, %v7950_v12  ;;  %v1513_v15 = vpop.f32.mrf.mxu0  ;;  %v3881_v40 = vsel %vm6530_vm4, %v3876_v32, %v3880_v38  ;;  %v3889_v2 = vor.u32 %v3888_v59, %v3885_v29  ;;  %v9301_v59 = vld [vmem:[#allocation12_spill] sm:$0xff] }
 0x12d   : > { %v6053_v57 = vpop.f32.mrf.mxu1  ;;  %6256 = vmatmul.mubr.msk.bf16.gmra.mxu1 %vm693_vm3, %v9298_v16  ;;  %v3910_v12 = vshll.u32 %v5681_v22, 16  ;;  %v8437_v39 = vsel %vm6816_vm7, %v4434_v63, %v4435_v6  ;;  %v3899_v32 = vor.u32 %v3898_v9, %v8409_v52  ;;  %v3902_v38 = vshll.u32 %v5680_v1, 16 }
 0x12e   : > { %v8428_v11 = vadd.f32 %v1500_v30, %v1076_v13  ;;  %v1097_v23 = vadd.f32 %v6053_v57, %v9299_v35  ;;  %v6088_v14 = vpop.f32.mrf.mxu0  ;;  %6259 = vmatprep.mubr.msk.bf16.mxu1 %vm693_vm3, %v9300_v51  ;;  %v5753_v30 = vrot.slane %v5737_v62, 9  ;;  %v4441_v13 = vrot.slane %v4439_v49, 4 }
 0x12f   : > { %v1088_v45 = vpop.f32.mrf.mxu1  ;;  %v4442_v57 = vrot.slane %v5680_v1, 5  ;;  %v8445_v51 = vrot.slane %v3889_v2, 4  ;;  %v3909_v6 = vrot.slane %v3907_v34, 4  ;;  %v3912_v63 = vrot.slane %v3910_v12, 5  ;;  %v8455_v1 = vld [vmem:[%s6486_s25 + $0xb0] sm:$0x1] }
 0x130   : > { %v8440_v29 = vadd.f32 %v6087_v56, %v1097_v23  ;;  %v1089_v22 = vadd.f32 %v1088_v45, %v9301_v59  ;;  %v1516_v33 = vpop.f32.mrf.mxu0  ;;  %v8457_v23 = vrot.slane %v3916_v24, 5  ;;  %v3922_v2 = vrot.slane %v3920_v18, 4  ;;  %v9303_v12 = vld [vmem:[#allocation14_spill] sm:$0xff] }
 0x131   : > { %v6054_v16 = vpop.f32.mrf.mxu1  ;;  %v8467_v43 = vrot.slane %v3899_v32, 4  ;;  %v8469_v17 = vrot.slane %v3902_v38, 5  ;;  %v8477_v58 = vsel %vm6816_vm7, %v5753_v30, %v4439_v49  ;;  %v8481_v36 = vsel %vm6816_vm7, %v4441_v13, %v4442_v57  ;;  %v8493_v30 = vld [vmem:[%s6486_s25 + $0xb8] sm:$0xf] }
 0x132   : > { %v8447_v9 = vadd.f32 %v1513_v15, %v1089_v22  ;;  %v1100_v62 = vadd.f32 %v6054_v16, %v9302_v4  ;;  %v6091_v56 = vpop.f32.mrf.mxu0  ;;  %6294 = vmatmul.mubr.msk.bf16.gmra.mxu0 %vm693_vm3, %v5764_v10  ;;  %v8463_v15 = vcombine.low %v3871_v21, %v3881_v40  ;;  %v5738_v10 = vld [vmem:[%s6486_s25 + $0xa8] sm:$0xe]  ;;  %v3913_v32 = vor.u32 %v3912_v63, %v3909_v6  ;;  %v9305_v22 = vld [vmem:[#allocation9_spill] sm:$0xff] }
 0x133   : > { %v1091_v45 = vpop.f32.mrf.mxu1  ;;  %6297 = vmatprep.mubr.msk.bf16.mxu0 %vm693_vm3, %v5765_v41  ;;  %v5684_v41 = vld [vmem:[%s6486_s25 + $0xb4] sm:$0xf]  ;;  %v9304_v40 = vld [vmem:[#allocation19_spill] sm:$0xff]  ;;  %v3926_v38 = vshll.u32 %v8455_v1, 16  ;;  %v4446_v49 = vrot.slane %v8412_v27, 5  ;;  %v3923_v16 = vor.u32 %v3922_v2, %v8457_v23  ;;  %v3905_v27 = vsel %vm6530_vm4, %v8467_v43, %v8469_v17 }
 0x134   : > { %v8472_v34 = vadd.f32 %v6088_v14, %v1100_v62  ;;  %v1092_v24 = vadd.f32 %v1091_v45, %v9303_v12  ;;  %v1529_v18 = vpop.f32.mrf.mxu0  ;;  %v5754_v62 = vrot.slane %v5738_v10, 9  ;;  %v3931_v6 = vshrl.u32 %v5684_v41, 16 }
 0x135   : > { %v6057_v21 = vpop.f32.mrf.mxu1  ;;  %6260 = vmatmul.mubr.msk.bf16.gmra.mxu1 %vm693_vm3, %v9304_v40  ;;  %v3934_v63 = vshll.u32 %v5684_v41, 16  ;;  %v3940_v2 = vshll.u32 %v8493_v30, 16  ;;  %v3944_v10 = vshrl.u32 %v8493_v30, 16  ;;  %v5687_v40 = vld [vmem:[%s6486_s25 + $0xc0] sm:$0xf]  ;;  %v3914_v4 = vrot.slane %v3913_v32, 4 }
 0x136   : > { %v8495_v59 = vadd.f32 %v1516_v33, %v1092_v24  ;;  %v1113_v13 = vadd.f32 %v6057_v21, %v9305_v22  ;;  %v6092_v57 = vpop.f32.mrf.mxu0  ;;  %6263 = vmatprep.mubr.msk.bf16.mxu1 %vm693_vm3, %v8347_v46  ;;  %v9307_v24 = vld [vmem:[#allocation18_spill] sm:$0xff]  ;;  %v3928_v43 = vrot.slane %v3926_v38, 5  ;;  %v4448_v17 = vrot.slane %v4446_v49, 4 }
 0x137   : > { %v1104_v45 = vpop.f32.mrf.mxu1  ;;  %v4449_v33 = vrot.slane %v8455_v1, 5  ;;  %v8523_v14 = vsel %vm6816_vm7, %v5754_v62, %v4446_v49  ;;  %v8526_v32 = vld [vmem:[%s6486_s25 + $0xc4] sm:$0xf]  ;;  %v9311_v1 = vcombine.low %v8305_v25, %v8309_v50  ;;  %v8538_v62 = vrot.slane %v3940_v2, 5 }
 0x138   : > { %v8507_v12 = vadd.f32 %v6091_v56, %v1113_v13  ;;  %v1105_v21 = vadd.f32 %v1104_v45, %v9307_v24  ;;  %v1532_v46 = vpop.f32.mrf.mxu0  ;;  %v9309_v56 = vld [vmem:[#allocation21_spill] sm:$0xff]  ;;  %v9310_v45 = vcombine.low %v8293_v47, %v8297_v7  ;;  %v3924_v24 = vrot.slane %v3923_v16, 4  ;;  %v9312_v16 = vld [vmem:[#allocation23_spill] sm:$0xff] }
 0x139   : > { %v6058_v22 = vpop.f32.mrf.mxu1  ;;  %v3955_v47 = vshrl.u32 %v5687_v40, 16  ;;  %v3958_v7 = vshll.u32 %v5687_v40, 16  ;;  %v3919_v25 = vsel %vm6530_vm4, %v3914_v4, %v8457_v23  ;;  %v8547_v50 = vsel %vm6816_vm7, %v4448_v17, %v4449_v33  ;;  %v5739_v40 = vld [vmem:[%s6486_s25 + $0xb4] sm:$0xe] }
 0x13a   : > { %9306 = vst [vmem:[#allocation11_spill] sm:$0xff] %v8507_v12  ;;  %v8514_v35 = vadd.f32 %v1529_v18, %v1105_v21  ;;  %v1116_v41 = vadd.f32 %v6058_v22, %v9309_v56  ;;  %v6095_v13 = vpop.f32.mrf.mxu0  ;;  %6298 = vmatmul.mubr.msk.bf16.gmra.mxu0 %vm693_vm3, %v9310_v45  ;;  %v8533_v18 = vld [vmem:[%s6486_s25 + $0xbc] sm:$0x1]  ;;  %v3933_v21 = vrot.slane %v3931_v6, 4  ;;  %v3936_v22 = vrot.slane %v3934_v63, 5 }
 0x13b   : > { %v1107_v38 = vpop.f32.mrf.mxu1  ;;  %6301 = vmatprep.mubr.msk.bf16.mxu0 %vm693_vm3, %v9311_v1  ;;  %v3968_v6 = vshrl.u32 %v8526_v32, 16  ;;  %v3950_v23 = vshll.u32 %v8533_v18, 16  ;;  %v4453_v17 = vrot.slane %v8493_v30, 5  ;;  %v9313_v1 = vld [vmem:[#allocation25_spill] sm:$0xff] }
 0x13c   : > { %9308 = vst [vmem:[#allocation8_spill] sm:$0xff] %v8514_v35  ;;  %v8535_v56 = vadd.f32 %v6092_v57, %v1116_v41  ;;  %v1108_v45 = vadd.f32 %v1107_v38, %v9312_v16  ;;  %v1545_v49 = vpop.f32.mrf.mxu0  ;;  %v3946_v35 = vrot.slane %v3944_v10, 4  ;;  %v3964_v57 = vshll.u32 %v8526_v32, 16 }
 0x13d   : > { %v6061_v12 = vpop.f32.mrf.mxu1  ;;  %6264 = vmatmul.mubr.msk.bf16.gmra.mxu1 %vm693_vm3, %v8349_v61  ;;  %v3929_v61 = vsel %vm6530_vm4, %v3924_v24, %v3928_v43  ;;  %v3937_v33 = vor.u32 %v3936_v22, %v3933_v21  ;;  %v3957_v41 = vrot.slane %v3955_v47, 4  ;;  %v3960_v38 = vrot.slane %v3958_v7, 5 }
 0x13e   : > { %v8551_v63 = vadd.f32 %v1532_v46, %v1108_v45  ;;  %v1129_v2 = vadd.f32 %v6061_v12, %v8257_v28  ;;  %v6096_v10 = vpop.f32.mrf.mxu0  ;;  %6267 = vmatprep.mubr.msk.bf16.mxu1 %vm693_vm3, %v8355_v60  ;;  %v9314_v60 = vsel %vm6530_vm4, %v8445_v51, %v8409_v52  ;;  %v3947_v24 = vor.u32 %v3946_v35, %v8538_v62 }
 0x13f   : > { %v1120_v4 = vpop.f32.mrf.mxu1  ;;  %v8569_v43 = vcombine.low %v9314_v60, %v3905_v27  ;;  %v8572_v30 = vcombine.low %v3919_v25, %v3929_v61  ;;  %v8576_v22 = vrot.slane %v3964_v57, 5  ;;  %v3970_v47 = vrot.slane %v3968_v6, 4  ;;  %v5689_v27 = vld [vmem:[%s6486_s25 + $0xc8] sm:$0x1] }
 0x140   : > { %v8561_v46 = vadd.f32 %v6095_v13, %v1129_v2  ;;  %v1121_v28 = vadd.f32 %v1120_v4, %v9313_v1  ;;  %v1548_v12 = vpop.f32.mrf.mxu0  ;;  %v5771_v13 = vcombine.low %v8523_v14, %v8547_v50  ;;  %v9315_v52 = vcombine.low %v8375_v3, %v8397_v20  ;;  %v5690_v14 = vld [vmem:[%s6486_s25 + $0xcc] sm:$0xf]  ;;  %v8597_v20 = vld [vmem:[%s6486_s25 + $0xd0] sm:$0xf]  ;;  %v5740_v4 = vld [vmem:[%s6486_s25 + $0xc0] sm:$0xe] }
 0x141   : > { %v6062_v21 = vpop.f32.mrf.mxu1  ;;  %v8585_v35 = vrot.slane %v3950_v23, 5  ;;  %v5755_v51 = vrot.slane %v5739_v40, 9  ;;  %v9316_v50 = vcombine.low %v8407_v53, %v8437_v39  ;;  %v4456_v57 = vrot.slane %v8533_v18, 5 }
 0x142   : > { %v8578_v7 = vadd.f32 %v1545_v49, %v1121_v28  ;;  %v1132_v16 = vadd.f32 %v6062_v21, %v8280_v19  ;;  %v6099_v45 = vpop.f32.mrf.mxu0  ;;  %6302 = vmatmul.mubr.msk.bf16.gmra.mxu0 %vm693_vm3, %v9315_v52  ;;  %v8593_v49 = vrot.slane %v3937_v33, 4  ;;  %v4455_v19 = vrot.slane %v4453_v17, 4 }
 0x143   : > { %v1123_v25 = vpop.f32.mrf.mxu1  ;;  %6305 = vmatprep.mubr.msk.bf16.mxu0 %vm693_vm3, %v9316_v50  ;;  %v3961_v3 = vor.u32 %v3960_v38, %v3957_v41  ;;  %v8602_v23 = vrot.slane %v3947_v24, 4  ;;  %v4460_v53 = vrot.slane %v8526_v32, 5  ;;  %v3971_v33 = vor.u32 %v3970_v47, %v8576_v22 }
 0x144   : > { %v8599_v6 = vadd.f32 %v6096_v10, %v1132_v16  ;;  %v1124_v2 = vadd.f32 %v1123_v25, %v8312_v26  ;;  %v1561_v61 = vpop.f32.mrf.mxu0  ;;  %v3974_v18 = vshll.u32 %v5689_v27, 16  ;;  %v3979_v40 = vshrl.u32 %v5690_v14, 16  ;;  %v9319_v10 = vld [vmem:[#allocation4_spill] sm:$0xff]  ;;  %v9320_v16 = vld [vmem:[#allocation3_spill] sm:$0xff] }
 0x145   : > { %v6065_v39 = vpop.f32.mrf.mxu1  ;;  %6268 = vmatmul.mubr.msk.bf16.gmra.mxu1 %vm693_vm3, %v8384_v48  ;;  %v3982_v41 = vshll.u32 %v5690_v14, 16  ;;  %v3988_v28 = vshll.u32 %v8597_v20, 16  ;;  %v3992_v32 = vshrl.u32 %v8597_v20, 16  ;;  %v4454_v48 = vsel %vm6816_vm7, %v5755_v51, %v4453_v17  ;;  %v9321_v17 = vld [vmem:[#allocation6_spill] sm:$0xff] }
 0x146   : > { %9317 = vst [vmem:[#allocation16_spill] sm:$0xff] %v8599_v6  ;;  %v8609_v38 = vadd.f32 %v1548_v12, %v1124_v2  ;;  %v1145_v1 = vadd.f32 %v6065_v39, %v9319_v10  ;;  %v6100_v26 = vpop.f32.mrf.mxu0  ;;  %6271 = vmatprep.mubr.msk.bf16.mxu1 %vm693_vm3, %v8463_v15  ;;  %v4457_v24 = vsel %vm6816_vm7, %v4455_v19, %v4456_v57  ;;  %v3962_v21 = vrot.slane %v3961_v3, 4 }
 0x147   : > { %v1136_v60 = vpop.f32.mrf.mxu1  ;;  %v5756_v12 = vrot.slane %v5740_v4, 9  ;;  %v4462_v25 = vrot.slane %v4460_v53, 4  ;;  %v4463_v15 = vrot.slane %v5689_v27, 5  ;;  %v3972_v2 = vrot.slane %v3971_v33, 4  ;;  %v5692_v33 = vld [vmem:[%s6486_s25 + $0xd4] sm:$0x1] }
 0x148   : > { %9318 = vst [vmem:[#allocation12_spill] sm:$0xff] %v8609_v38  ;;  %v8620_v47 = vadd.f32 %v6099_v45, %v1145_v1  ;;  %v1137_v52 = vadd.f32 %v1136_v60, %v9320_v16  ;;  %v1564_v14 = vpop.f32.mrf.mxu0  ;;  %v3976_v39 = vrot.slane %v3974_v18, 5  ;;  %v3981_v10 = vrot.slane %v3979_v40, 4  ;;  %v9323_v18 = vld [vmem:[#allocation5_spill] sm:$0xff] }
 0x149   : > { %v6066_v50 = vpop.f32.mrf.mxu1  ;;  %v3984_v38 = vrot.slane %v3982_v41, 5  ;;  %v9322_v45 = vcombine.low %v8477_v58, %v8481_v36  ;;  %v8630_v57 = vrot.slane %v3988_v28, 5  ;;  %v3994_v27 = vrot.slane %v3992_v32, 4 }
 0x14a   : > { %v8623_v6 = vadd.f32 %v1561_v61, %v1137_v52  ;;  %v1148_v51 = vadd.f32 %v6066_v50, %v9321_v17  ;;  %v6103_v19 = vpop.f32.mrf.mxu0  ;;  %v3943_v61 = vsel %vm6530_vm4, %v8593_v49, %v8538_v62  ;;  %v3953_v4 = vsel %vm6530_vm4, %v8602_v23, %v8585_v35  ;;  %v5741_v62 = vld [vmem:[%s6486_s25 + $0xcc] sm:$0xe] }
 0x14b   : > { %6306 = vmatmul.mubr.msk.bf16.gmra.mxu0 %vm693_vm3, %v9322_v45  ;;  %v1139_v3 = vpop.f32.mrf.mxu1  ;;  %v4467_v58 = vrot.slane %v8597_v20, 5  ;;  %v4464_v1 = vsel %vm6816_vm7, %v4462_v25, %v4463_v15  ;;  %v5772_v35 = vcombine.low %v4454_v48, %v4457_v24  ;;  %v3967_v20 = vsel %vm6530_vm4, %v3962_v21, %v8576_v22  ;;  %v9325_v25 = vld [vmem:[#allocation10_spill] sm:$0xff] }
 0x14c   : > { %6309 = vmatprep.mubr.msk.bf16.mxu0 %vm693_vm3, %v5771_v13  ;;  %v8643_v36 = vadd.f32 %v6100_v26, %v1148_v51  ;;  %v1140_v40 = vadd.f32 %v1139_v3, %v9323_v18  ;;  %v1577_v41 = vpop.f32.mrf.mxu0  ;;  %v4461_v13 = vsel %vm6816_vm7, %v5756_v12, %v4460_v53  ;;  %v3977_v23 = vsel %vm6530_vm4, %v3972_v2, %v3976_v39  ;;  %v9324_v53 = vld [vmem:[#allocation7_spill] sm:$0xff] }
 0x14d   : > { %v6069_v49 = vpop.f32.mrf.mxu1  ;;  %6272 = vmatmul.mubr.msk.bf16.gmra.mxu1 %vm693_vm3, %v8569_v43  ;;  %v3985_v26 = vor.u32 %v3984_v38, %v3981_v10  ;;  %v3995_v12 = vor.u32 %v3994_v27, %v8630_v57  ;;  %v3998_v43 = vshll.u32 %v5692_v33, 16  ;;  %v5773_v24 = vcombine.low %v4461_v13, %v4464_v1 }
 0x14e   : > { %v8658_v28 = vadd.f32 %v1564_v14, %v1140_v40  ;;  %v1161_v32 = vadd.f32 %v6069_v49, %v9324_v53  ;;  %v6104_v60 = vpop.f32.mrf.mxu0  ;;  %6275 = vmatprep.mubr.msk.bf16.mxu1 %vm693_vm3, %v8572_v30  ;;  %v5757_v16 = vrot.slane %v5741_v62, 9  ;;  %v4469_v52 = vrot.slane %v4467_v58, 4  ;;  %v9326_v30 = vld [vmem:[#allocation13_spill] sm:$0xff] }
 0x14f   : > { %v1152_v48 = vpop.f32.mrf.mxu1  ;;  %v4470_v22 = vrot.slane %v5692_v33, 5  ;;  %v5707_v50 = vcombine.low %v3943_v61, %v3953_v4  ;;  %v5708_v2 = vcombine.low %v3967_v20, %v3977_v23  ;;  %v3986_v39 = vrot.slane %v3985_v26, 4  ;;  %v9327_v33 = vld [vmem:[#allocation15_spill] sm:$0xff]  ;;  %v9328_v62 = vld [vmem:[#allocation17_spill] sm:$0xff]  ;;  %v9329_v26 = vld [vmem:[#allocation20_spill] sm:$0xff] }
 0x150   : > { %v8664_v21 = vadd.f32 %v6103_v19, %v1161_v32  ;;  %v1153_v38 = vadd.f32 %v1152_v48, %v9325_v25  ;;  %v1580_v14 = vpop.f32.mrf.mxu0  ;;  %v3996_v45 = vrot.slane %v3995_v12, 4  ;;  %v4000_v27 = vrot.slane %v3998_v43, 5  ;;  %v9330_v43 = vld [vmem:[#allocation22_spill] sm:$0xff] }
 0x151   : > { %v6070_v15 = vpop.f32.mrf.mxu1  ;;  %v4468_v19 = vsel %vm6816_vm7, %v5757_v16, %v4467_v58  ;;  %v4471_v61 = vsel %vm6816_vm7, %v4469_v52, %v4470_v22  ;;  %v3991_v13 = vsel %vm6530_vm4, %v3986_v39, %v8630_v57 }
 0x152   : > { %v8667_v10 = vadd.f32 %v1577_v41, %v1153_v38  ;;  %v1164_v17 = vadd.f32 %v6070_v15, %v9326_v30  ;;  %v6107_v51 = vpop.f32.mrf.mxu0  ;;  %v4001_v0 = vsel %vm6530_vm4, %v3996_v45, %v4000_v27 }
 0x153   : > { %6310 = vmatmul.mubr.msk.bf16.gmra.mxu0 %vm693_vm3, %v5772_v35  ;;  %v1155_v3 = vpop.f32.mrf.mxu1  ;;  %v5774_v35 = vcombine.low %v4468_v19, %v4471_v61  ;;  %v5709_v12 = vcombine.low %v3991_v13, %v4001_v0 }
 0x154   : > { %6313 = vmatprep.mubr.msk.bf16.mxu0 %vm693_vm3, %v5773_v24  ;;  %v8676_v4 = vadd.f32 %v6104_v60, %v1164_v17  ;;  %v1156_v18 = vadd.f32 %v1155_v3, %v9327_v33  ;;  %v1593_v40 = vpop.f32.mrf.mxu0 }
 0x155   : > { %v6073_v41 = vpop.f32.mrf.mxu1  ;;  %6276 = vmatmul.mubr.msk.bf16.gmra.mxu1 %vm693_vm3, %v5707_v50 }
 0x156   : > { %v8683_v1 = vadd.f32 %v1580_v14, %v1156_v18  ;;  %v1177_v49 = vadd.f32 %v6073_v41, %v9328_v62  ;;  %v6108_v58 = vpop.f32.mrf.mxu0  ;;  %6279 = vmatprep.mubr.msk.bf16.mxu1 %vm693_vm3, %v5708_v2 }
 0x157   : > { %v1168_v20 = vpop.f32.mrf.mxu1 }
 0x158   : > { %v8689_v23 = vadd.f32 %v6107_v51, %v1177_v49  ;;  %v1169_v53 = vadd.f32 %v1168_v20, %v9329_v26  ;;  %v1596_v32 = vpop.f32.mrf.mxu0 }
 0x159   : > { %v6074_v60 = vpop.f32.mrf.mxu1 }
 0x15a   : > { %v8692_v57 = vadd.f32 %v1593_v40, %v1169_v53  ;;  %v1180_v48 = vadd.f32 %v6074_v60, %v9330_v43  ;;  %v6111_v24 = vpop.f32.mrf.mxu0 }
 0x15b   : > { %6314 = vmatmul.mubr.msk.bf16.gmra.mxu0 %vm693_vm3, %v5774_v35  ;;  %v1171_v16 = vpop.f32.mrf.mxu1 }
 0x15c   : > { %v8696_v52 = vadd.f32 %v6108_v58, %v1180_v48  ;;  %v1172_v22 = vadd.f32 %v1171_v16, %v9331_v31  ;;  %v1609_v25 = vpop.f32.mrf.mxu0 }
 0x15d   : > { %v6077_v38 = vpop.f32.mrf.mxu1  ;;  %6280 = vmatmul.mubr.msk.bf16.gmra.mxu1 %vm693_vm3, %v5709_v12 }
 0x15e   : > { %v8700_v14 = vadd.f32 %v1596_v32, %v1172_v22  ;;  %v1193_v15 = vadd.f32 %v6077_v38, %v8272_v42  ;;  %v6112_v50 = vpop.f32.mrf.mxu0 }
 0x15f   : > { %v1184_v2 = vpop.f32.mrf.mxu1 }
 0x160   : > { %v8703_v39 = vadd.f32 %v6111_v24, %v1193_v15  ;;  %v1185_v30 = vadd.f32 %v1184_v2, %v8299_v44  ;;  %v1612_v17 = vpop.f32.mrf.mxu0 }
 0x161   : > { %v6078_v51 = vpop.f32.mrf.mxu1 }
 0x162   : > { %v8706_v45 = vadd.f32 %v1609_v25, %v1185_v30  ;;  %v1196_v27 = vadd.f32 %v6078_v51, %v8314_v8  ;;  %v6151_v3 = vpop.f32.mrf.mxu0  ;;  %v9332_v30 = vld [vmem:[#allocation11_spill] sm:$0xff] }
 0x163   : > { %v1187_v19 = vpop.f32.mrf.mxu1 }
 0x164   : > { %v8709_v61 = vadd.f32 %v6112_v50, %v1196_v27  ;;  %v1188_v33 = vadd.f32 %v1187_v19, %v8336_v55  ;;  %v2582_v18 = vpop.f32.mrf.mxu0 }
 0x165   : > { %v6117_v42 = vpop.f32.mrf.mxu1 }
 0x166   : > { %v8712_v40 = vadd.f32 %v1612_v17, %v1188_v33  ;;  %v1985_v41 = vadd.f32 %v6117_v42, %v8381_v5  ;;  %v6152_v13 = vpop.f32.mrf.mxu0 }
 0x167   : > { %v1856_v44 = vpop.f32.mrf.mxu1 }
 0x168   : > { %v8715_v62 = vadd.f32 %v6151_v3, %v1985_v41  ;;  %v1983_v49 = vadd.f32 %v1856_v44, %v8388_v37  ;;  %v2585_v58 = vpop.f32.mrf.mxu0  ;;  %v9333_v3 = vld [vmem:[#allocation8_spill] sm:$0xff] }
 0x169   : > { %v6118_v8 = vpop.f32.mrf.mxu1 }
 0x16a   : > { %v8718_v0 = vadd.f32 %v2582_v18, %v1983_v49  ;;  %v1986_v35 = vadd.f32 %v6118_v8, %v8414_v54  ;;  %v6155_v20 = vpop.f32.mrf.mxu0 }
 0x16b   : > { %v1859_v55 = vpop.f32.mrf.mxu1 }
 0x16c   : > { %v8721_v26 = vadd.f32 %v6152_v13, %v1986_v35  ;;  %v1984_v53 = vadd.f32 %v1859_v55, %v8428_v11  ;;  %v2598_v32 = vpop.f32.mrf.mxu0 }
 0x16d   : > { %v6121_v5 = vpop.f32.mrf.mxu1 }
 0x16e   : > { %v8724_v60 = vadd.f32 %v2585_v58, %v1984_v53  ;;  %v1989_v12 = vadd.f32 %v6121_v5, %v8440_v29  ;;  %v6156_v43 = vpop.f32.mrf.mxu0 }
 0x16f   : > { %v1872_v37 = vpop.f32.mrf.mxu1 }
 0x170   : > { %v8727_v48 = vadd.f32 %v6155_v20, %v1989_v12  ;;  %v1987_v24 = vadd.f32 %v1872_v37, %v8447_v9  ;;  %v2601_v16 = vpop.f32.mrf.mxu0 }
 0x171   : > { %v6122_v54 = vpop.f32.mrf.mxu1 }
 0x172   : > { %v8730_v31 = vadd.f32 %v2598_v32, %v1987_v24  ;;  %v1990_v22 = vadd.f32 %v6122_v54, %v8472_v34  ;;  %v6159_v25 = vpop.f32.mrf.mxu0  ;;  %v9336_v54 = vld [vmem:[#allocation12_spill] sm:$0xff] }
 0x173   : > { %v1875_v11 = vpop.f32.mrf.mxu1 }
 0x174   : > { %v8733_v38 = vadd.f32 %v6156_v43, %v1990_v22  ;;  %v1988_v15 = vadd.f32 %v1875_v11, %v8495_v59  ;;  %v2614_v50 = vpop.f32.mrf.mxu0  ;;  %v9335_v43 = vld [vmem:[#allocation16_spill] sm:$0xff] }
 0x175   : > { %v6125_v29 = vpop.f32.mrf.mxu1 }
 0x176   : > { %v8736_v2 = vadd.f32 %v2601_v16, %v1988_v15  ;;  %v1993_v17 = vadd.f32 %v6125_v29, %v9332_v30  ;;  %v6160_v51 = vpop.f32.mrf.mxu0 }
 0x177   : > { %v1888_v9 = vpop.f32.mrf.mxu1 }
 0x178   : > { %v8739_v27 = vadd.f32 %v6159_v25, %v1993_v17  ;;  %v1991_v19 = vadd.f32 %v1888_v9, %v9333_v3  ;;  %v2617_v33 = vpop.f32.mrf.mxu0 }
 0x179   : > { %v6126_v34 = vpop.f32.mrf.mxu1 }
 0x17a   : > { %v8742_v18 = vadd.f32 %v2614_v50, %v1991_v19  ;;  %v1994_v42 = vadd.f32 %v6126_v34, %v8535_v56  ;;  %v6163_v41 = vpop.f32.mrf.mxu0 }
 0x17b   : > { %v1891_v59 = vpop.f32.mrf.mxu1 }
 0x17c   : > { %v8745_v13 = vadd.f32 %v6160_v51, %v1994_v42  ;;  %v1992_v44 = vadd.f32 %v1891_v59, %v8551_v63  ;;  %v2630_v49 = vpop.f32.mrf.mxu0 }
 0x17d   : > { %v6129_v58 = vpop.f32.mrf.mxu1 }
 0x17e   : > { %v8748_v8 = vadd.f32 %v2617_v33, %v1992_v44  ;;  %v1997_v35 = vadd.f32 %v6129_v58, %v8561_v46  ;;  %v6164_v20 = vpop.f32.mrf.mxu0 }
 0x17f   : > { %v1904_v55 = vpop.f32.mrf.mxu1 }
 0x180   : > { %v8751_v53 = vadd.f32 %v6163_v41, %v1997_v35  ;;  %v1995_v32 = vadd.f32 %v1904_v55, %v8578_v7  ;;  %v2633_v5 = vpop.f32.mrf.mxu0 }
 0x181   : > { %v6130_v56 = vpop.f32.mrf.mxu1 }
 0x182   : > { %v8754_v12 = vadd.f32 %v2630_v49, %v1995_v32  ;;  %v1998_v37 = vadd.f32 %v6130_v56, %v9335_v43  ;;  %v6167_v24 = vpop.f32.mrf.mxu0 }
 0x183   : > { %v1907_v63 = vpop.f32.mrf.mxu1 }
 0x184   : > { %9334 = vst [vmem:[#allocation2_spill] sm:$0xff] %v8754_v12  ;;  %v8757_v16 = vadd.f32 %v6164_v20, %v1998_v37  ;;  %v1996_v22 = vadd.f32 %v1907_v63, %v9336_v54  ;;  %v2646_v25 = vpop.f32.mrf.mxu0 }
 0x185   : > { %v6133_v46 = vpop.f32.mrf.mxu1 }
 0x186   : > { %v8760_v11 = vadd.f32 %v2633_v5, %v1996_v22  ;;  %v2001_v15 = vadd.f32 %v6133_v46, %v8620_v47  ;;  %v6168_v50 = vpop.f32.mrf.mxu0 }
 0x187   : > { %v1920_v7 = vpop.f32.mrf.mxu1 }
 0x188   : > { %v8763_v29 = vadd.f32 %v6167_v24, %v2001_v15  ;;  %v1999_v30 = vadd.f32 %v1920_v7, %v8623_v6  ;;  %v2649_v17 = vpop.f32.mrf.mxu0 }
 0x189   : > { %v6134_v51 = vpop.f32.mrf.mxu1 }
 0x18a   : > { %v8766_v9 = vadd.f32 %v2646_v25, %v1999_v30  ;;  %v2002_v3 = vadd.f32 %v6134_v51, %v8643_v36  ;;  %v6171_v19 = vpop.f32.mrf.mxu0 }
 0x18b   : > { %v1923_v33 = vpop.f32.mrf.mxu1 }
 0x18c   : > { %v8769_v34 = vadd.f32 %v6168_v50, %v2002_v3  ;;  %v2000_v42 = vadd.f32 %v1923_v33, %v8658_v28  ;;  %v2662_v41 = vpop.f32.mrf.mxu0 }
 0x18d   : > { %v6137_v47 = vpop.f32.mrf.mxu1 }
 0x18e   : > { %v8772_v59 = vadd.f32 %v2649_v17, %v2000_v42  ;;  %v2005_v44 = vadd.f32 %v6137_v47, %v8664_v21  ;;  %v6172_v49 = vpop.f32.mrf.mxu0 }
 0x18f   : > { %v1936_v6 = vpop.f32.mrf.mxu1 }
 0x190   : > { %v8775_v58 = vadd.f32 %v6171_v19, %v2005_v44  ;;  %v2003_v35 = vadd.f32 %v1936_v6, %v8667_v10  ;;  %v2665_v20 = vpop.f32.mrf.mxu0 }
 0x191   : > { %v6138_v36 = vpop.f32.mrf.mxu1 }
 0x192   : > { %v8778_v55 = vadd.f32 %v2662_v41, %v2003_v35  ;;  %v2006_v32 = vadd.f32 %v6138_v36, %v8676_v4  ;;  %v6175_v5 = vpop.f32.mrf.mxu0 }
 0x193   : > { %v1939_v28 = vpop.f32.mrf.mxu1 }
 0x194   : > { %v8781_v56 = vadd.f32 %v6172_v49, %v2006_v32  ;;  %v2004_v43 = vadd.f32 %v1939_v28, %v8683_v1  ;;  %v2678_v37 = vpop.f32.mrf.mxu0 }
 0x195   : > { %v6141_v21 = vpop.f32.mrf.mxu1 }
 0x196   : > { %v8784_v24 = vadd.f32 %v2665_v20, %v2004_v43  ;;  %v2009_v63 = vadd.f32 %v6141_v21, %v8689_v23  ;;  %v6176_v54 = vpop.f32.mrf.mxu0 }
 0x197   : > { %v1952_v10 = vpop.f32.mrf.mxu1 }
 0x198   : > { %v8787_v22 = vadd.f32 %v6175_v5, %v2009_v63  ;;  %v2007_v25 = vadd.f32 %v1952_v10, %v8692_v57  ;;  %v2681_v46 = vpop.f32.mrf.mxu0 }
 0x199   : > { %v6142_v4 = vpop.f32.mrf.mxu1 }
 0x19a   : > { %v8790_v15 = vadd.f32 %v2678_v37, %v2007_v25  ;;  %v2010_v50 = vadd.f32 %v6142_v4, %v8696_v52  ;;  %v6179_v7 = vpop.f32.mrf.mxu0 }
 0x19b   : > { %v1955_v1 = vpop.f32.mrf.mxu1 }
 0x19c   : > { %v8793_v30 = vadd.f32 %v6176_v54, %v2010_v50  ;;  %v2008_v17 = vadd.f32 %v1955_v1, %v8700_v14  ;;  %v2694_v51 = vpop.f32.mrf.mxu0 }
 0x19d   : > { %v6145_v23 = vpop.f32.mrf.mxu1 }
 0x19e   : > { %v8796_v3 = vadd.f32 %v2681_v46, %v2008_v17  ;;  %v2013_v19 = vadd.f32 %v6145_v23, %v8703_v39  ;;  %v6180_v33 = vpop.f32.mrf.mxu0 }
 0x19f   : > { %v1968_v57 = vpop.f32.mrf.mxu1 }
 0x1a0   : > { %v8799_v42 = vadd.f32 %v6179_v7, %v2013_v19  ;;  %v2011_v41 = vadd.f32 %v1968_v57, %v8706_v45  ;;  %v2697_v47 = vpop.f32.mrf.mxu0 }
 0x1a1   : > { %v6146_v52 = vpop.f32.mrf.mxu1 }
 0x1a2   : > { %v8802_v44 = vadd.f32 %v2694_v51, %v2011_v41  ;;  %v2014_v49 = vadd.f32 %v6146_v52, %v8709_v61  ;;  %v8805_v6 = vpop.f32.mrf.mxu0 }
 0x1a3   : > { %v1971_v14 = vpop.f32.mrf.mxu1 }
 0x1a4   : > { %v8807_v35 = vadd.f32 %v6180_v33, %v2014_v49  ;;  %v2012_v20 = vadd.f32 %v1971_v14, %v8712_v40  ;;  %v8810_v39 = vpop.f32.mrf.mxu0 }
 0x1a5   : > { %v8812_v36 = vpop.f32.mrf.mxu1 }
 0x1a6   : > { %v8814_v32 = vadd.f32 %v2697_v47, %v2012_v20  ;;  %v8816_v45 = vpop.f32.mrf.mxu0 }
 0x1a7   : > { %v8818_v5 = vpop.f32.mrf.mxu1 }
 0x1a8   : > { %v8820_v28 = vpop.f32.mrf.mxu0 }
 0x1a9   : > { %v8822_v61 = vpop.f32.mrf.mxu1 }
 0x1aa   : > { %v8824_v43 = vpop.f32.mrf.mxu0 }
 0x1ab   : > { %v8826_v37 = vpop.f32.mrf.mxu1 }
 0x1ac   : > { %v8828_v21 = vpop.f32.mrf.mxu0 }
 0x1ad   : > { %v8830_v40 = vpop.f32.mrf.mxu1 }
 0x1ae   : > { %v8832_v63 = vpop.f32.mrf.mxu0 }
 0x1af   : > { %v8834_v54 = vpop.f32.mrf.mxu1 }
 0x1b0   : > { %v8836_v10 = vpop.f32.mrf.mxu0 }
 0x1b1   : > { %9337 = vst [vmem:[#allocation14_spill] sm:$0xff] %v8836_v10  ;;  %v8838_v25 = vpop.f32.mrf.mxu1 }
 0x1b2   : > { %v8840_v46 = vpop.f32.mrf.mxu0 }
 0x1b3   : > { %9338 = vst [vmem:[#allocation19_spill] sm:$0xff] %v8840_v46  ;;  %v8842_v4 = vpop.f32.mrf.mxu1 }
 0x1b4   : > { %v8844_v50 = vpop.f32.mrf.mxu0 }
 0x1b5   : > { %9339 = vst [vmem:[#allocation9_spill] sm:$0xff] %v8844_v50  ;;  %v8846_v7 = vpop.f32.mrf.mxu1 }
 0x1b6   : > { %v6228_v1 = vpop.f32.mrf.mxu0 }
 0x1b7   : > { %v8848_v17 = vpop.f32.mrf.mxu1 }
 0x1b8   : > { %v3446_v51 = vpop.f32.mrf.mxu0 }
 0x1b9   : > { %v6194_v23 = vpop.f32.mrf.mxu1 }
 0x1ba   : > { %v3190_v19 = vadd.f32 %v6194_v23, %v8745_v13  ;;  %v8851_v33 = vpop.f32.mrf.mxu0 }
 0x1bb   : > { %9340 = vst [vmem:[#allocation18_spill] sm:$0xff] %v8851_v33  ;;  %v3087_v57 = vpop.f32.mrf.mxu1 }
 0x1bc   : > { %v8853_v41 = vadd.f32 %v6228_v1, %v3190_v19  ;;  %v3188_v47 = vadd.f32 %v3087_v57, %v8748_v8  ;;  %v8856_v52 = vpop.f32.mrf.mxu0 }
 0x1bd   : > { %9342 = vst [vmem:[#allocation23_spill] sm:$0xff] %v8856_v52  ;;  %v8858_v49 = vpop.f32.mrf.mxu1 }
 0x1be   : > { %9341 = vst [vmem:[#allocation21_spill] sm:$0xff] %v8853_v41  ;;  %v8860_v14 = vadd.f32 %v3446_v51, %v3188_v47  ;;  %v6232_v20 = vpop.f32.mrf.mxu0 }
 0x1bf   : > { %v8862_v12 = vpop.f32.mrf.mxu1 }
 0x1c0   : > { %9343 = vst [vmem:[#allocation25_spill] sm:$0xff] %v8860_v14  ;;  %9344 = vst [vmem:[#allocation4_spill] sm:$0xff] %v8862_v12  ;;  %v3462_v50 = vpop.f32.mrf.mxu0 }
 0x1c1   : > { %v6198_v46 = vpop.f32.mrf.mxu1 }
 0x1c2   : > { %v3194_v13 = vadd.f32 %v6198_v46, %v8757_v16  ;;  %v6235_v23 = vpop.f32.mrf.mxu0 }
 0x1c3   : > { %v3103_v33 = vpop.f32.mrf.mxu1 }
 0x1c4   : > { %v8865_v10 = vadd.f32 %v6232_v20, %v3194_v13  ;;  %v3192_v1 = vadd.f32 %v3103_v33, %v8760_v11  ;;  %v3475_v8 = vpop.f32.mrf.mxu0 }
 0x1c5   : > { %v6201_v19 = vpop.f32.mrf.mxu1 }
 0x1c6   : > { %v8868_v57 = vadd.f32 %v3462_v50, %v3192_v1  ;;  %v3197_v51 = vadd.f32 %v6201_v19, %v8763_v29  ;;  %v6236_v47 = vpop.f32.mrf.mxu0 }
 0x1c7   : > { %v3116_v14 = vpop.f32.mrf.mxu1 }
 0x1c8   : > { %v8871_v41 = vadd.f32 %v6235_v23, %v3197_v51  ;;  %v3195_v52 = vadd.f32 %v3116_v14, %v8766_v9  ;;  %v3478_v12 = vpop.f32.mrf.mxu0 }
 0x1c9   : > { %v6202_v16 = vpop.f32.mrf.mxu1 }
 0x1ca   : > { %v8874_v46 = vadd.f32 %v3475_v8, %v3195_v52  ;;  %v3198_v20 = vadd.f32 %v6202_v16, %v8769_v34  ;;  %v6239_v13 = vpop.f32.mrf.mxu0 }
 0x1cb   : > { %v3119_v11 = vpop.f32.mrf.mxu1 }
 0x1cc   : > { %v8877_v33 = vadd.f32 %v6236_v47, %v3198_v20  ;;  %v3196_v50 = vadd.f32 %v3119_v11, %v8772_v59  ;;  %v3491_v1 = vpop.f32.mrf.mxu0 }
 0x1cd   : > { %v6205_v29 = vpop.f32.mrf.mxu1 }
 0x1ce   : > { %v8880_v19 = vadd.f32 %v3478_v12, %v3196_v50  ;;  %v3201_v23 = vadd.f32 %v6205_v29, %v8775_v58  ;;  %v6240_v51 = vpop.f32.mrf.mxu0 }
 0x1cf   : > { %v3132_v9 = vpop.f32.mrf.mxu1 }
 0x1d0   : > { %v8883_v14 = vadd.f32 %v6239_v13, %v3201_v23  ;;  %v3199_v52 = vadd.f32 %v3132_v9, %v8778_v55  ;;  %v3494_v8 = vpop.f32.mrf.mxu0 }
 0x1d1   : > { %v6206_v34 = vpop.f32.mrf.mxu1 }
 0x1d2   : > { %v8886_v16 = vadd.f32 %v3491_v1, %v3199_v52  ;;  %v3202_v47 = vadd.f32 %v6206_v34, %v8781_v56  ;;  %v6243_v20 = vpop.f32.mrf.mxu0 }
 0x1d3   : > { %v3135_v59 = vpop.f32.mrf.mxu1 }
 0x1d4   : > { %v8889_v11 = vadd.f32 %v6240_v51, %v3202_v47  ;;  %v3200_v12 = vadd.f32 %v3135_v59, %v8784_v24  ;;  %v3507_v50 = vpop.f32.mrf.mxu0 }
 0x1d5   : > { %v6209_v58 = vpop.f32.mrf.mxu1 }
 0x1d6   : > { %v8892_v29 = vadd.f32 %v3494_v8, %v3200_v12  ;;  %v3205_v13 = vadd.f32 %v6209_v58, %v8787_v22  ;;  %v6244_v23 = vpop.f32.mrf.mxu0 }
 0x1d7   : > { %v3148_v55 = vpop.f32.mrf.mxu1 }
 0x1d8   : > { %v8895_v9 = vadd.f32 %v6243_v20, %v3205_v13  ;;  %v3203_v1 = vadd.f32 %v3148_v55, %v8790_v15  ;;  %v3510_v52 = vpop.f32.mrf.mxu0 }
 0x1d9   : > { %v6210_v56 = vpop.f32.mrf.mxu1 }
 0x1da   : > { %v8898_v34 = vadd.f32 %v3507_v50, %v3203_v1  ;;  %v3206_v51 = vadd.f32 %v6210_v56, %v8793_v30  ;;  %v6247_v47 = vpop.f32.mrf.mxu0  ;;  %v3181_v50 = vadd.f32 %v8812_v36, %v8715_v62  ;;  %v3182_v62 = vadd.f32 %v8822_v61, %v8721_v26 }
 0x1db   : > { %v3151_v24 = vpop.f32.mrf.mxu1  ;;  %v3185_v26 = vadd.f32 %v8830_v40, %v8727_v48  ;;  %v3183_v48 = vadd.f32 %v8834_v54, %v8730_v31  ;;  %v3186_v40 = vadd.f32 %v8838_v25, %v8733_v38  ;;  %v3187_v31 = vadd.f32 %v8848_v17, %v8742_v18 }
 0x1dc   : > { %v8901_v59 = vadd.f32 %v6244_v23, %v3206_v51  ;;  %v3204_v8 = vadd.f32 %v3151_v24, %v8796_v3  ;;  %v3523_v12 = vpop.f32.mrf.mxu0  ;;  %v3179_v3 = vadd.f32 %v8818_v5, %v8718_v0  ;;  %v3540_v24 = vadd.f32 %v8805_v6, %v3181_v50 }
 0x1dd   : > { %v6213_v22 = vpop.f32.mrf.mxu1  ;;  %v3180_v0 = vadd.f32 %v8826_v37, %v8724_v60  ;;  %v3193_v38 = vadd.f32 %v8858_v49, %v8751_v53 }
 0x1de   : > { %v8904_v58 = vadd.f32 %v3510_v52, %v3204_v8  ;;  %v3209_v20 = vadd.f32 %v6213_v22, %v8799_v42  ;;  %v6248_v13 = vpop.f32.mrf.mxu0  ;;  %v3538_v22 = vadd.f32 %v8810_v39, %v3179_v3 }
 0x1df   : > { %v3164_v15 = vpop.f32.mrf.mxu1  ;;  %v3539_v39 = vadd.f32 %v8820_v28, %v3180_v0 }
 0x1e0   : > { %v8909_v55 = vadd.f32 %v6247_v47, %v3209_v20  ;;  %v3207_v30 = vadd.f32 %v3164_v15, %v8802_v44  ;;  %v3526_v1 = vpop.f32.mrf.mxu0  ;;  %v3541_v20 = vadd.f32 %v8816_v45, %v3182_v62  ;;  %v3542_v62 = vadd.f32 %v8828_v21, %v3183_v48 }
 0x1e1   : > { %v6214_v23 = vpop.f32.mrf.mxu1 }
 0x1e2   : > { %v8914_v56 = vadd.f32 %v3523_v12, %v3207_v30  ;;  %v3210_v52 = vadd.f32 %v6214_v23, %v8807_v35  ;;  %v6287_v42 = vpop.f32.mrf.mxu0  ;;  %v3184_v30 = vadd.f32 %v8842_v4, %v8736_v2  ;;  %v3544_v23 = vadd.f32 %v8824_v43, %v3185_v26 }
 0x1e3   : > { %v3167_v51 = vpop.f32.mrf.mxu1 }
 0x1e4   : > { %v8920_v36 = vadd.f32 %v6248_v13, %v3210_v52  ;;  %v3208_v44 = vadd.f32 %v3167_v51, %v8814_v32  ;;  %v4607_v47 = vpop.f32.mrf.mxu0  ;;  %v3189_v51 = vadd.f32 %v8846_v7, %v8739_v27 }
 0x1e5   : > { %v6253_v8 = vpop.f32.mrf.mxu1 }
 0x1e6   : > { %v8926_v5 = vadd.f32 %v3526_v1, %v3208_v44  ;;  %v4266_v35 = vadd.f32 %v6253_v8, %v3540_v24  ;;  %v6288_v12 = vpop.f32.mrf.mxu0  ;;  %v3545_v44 = vadd.f32 %v8832_v63, %v3186_v40  ;;  %v9348_v63 = vld [vmem:[#allocation18_spill] sm:$0xff] }
 0x1e7   : > { %v4137_v6 = vpop.f32.mrf.mxu1  ;;  %v8963_v26 = vadd.f32 %v9348_v63, %v3193_v38 }
 0x1e8   : > { %v4736_v61 = vadd.f32 %v6287_v42, %v4266_v35  ;;  %v4264_v32 = vadd.f32 %v4137_v6, %v3538_v22  ;;  %v4610_v13 = vpop.f32.mrf.mxu0  ;;  %v9346_v22 = vld [vmem:[#allocation19_spill] sm:$0xff]  ;;  %v9347_v35 = vld [vmem:[#allocation9_spill] sm:$0xff] }
 0x1e9   : > { %v6254_v60 = vpop.f32.mrf.mxu1  ;;  %v3548_v0 = vadd.f32 %v9346_v22, %v3189_v51 }
 0x1ea   : > { %v5828_v37 = vpack.c.bf16 %v4736_v61, %v4736_v61  ;;  %v4734_v15 = vadd.f32 %v4607_v47, %v4264_v32  ;;  %v4267_v50 = vadd.f32 %v6254_v60, %v3541_v20  ;;  %v6291_v45 = vpop.f32.mrf.mxu0  ;;  %v9345_v47 = vld [vmem:[#allocation14_spill] sm:$0xff]  ;;  %v9350_v32 = vld [vmem:[#allocation4_spill] sm:$0xff] }
 0x1eb   : > { %v4140_v1 = vpop.f32.mrf.mxu1  ;;  %v3543_v27 = vadd.f32 %v9345_v47, %v3184_v30 }
 0x1ec   : > { %4897 = vst.msk [vmem:[%s8935_s18 + $0x8] sm:$0xf] %vm4894_vm8, %v5828_v37  ;;  %v5826_v28 = vpack.c.bf16 %v4734_v15, %v4734_v15  ;;  %v4737_v3 = vadd.f32 %v6288_v12, %v4267_v50  ;;  %v4265_v52 = vadd.f32 %v4140_v1, %v3539_v39  ;;  %v4623_v42 = vpop.f32.mrf.mxu0  ;;  %v3546_v12 = vadd.f32 %v9347_v35, %v3187_v31 }
 0x1ed   : > { %v6257_v2 = vpop.f32.mrf.mxu1 }
 0x1ee   : > { %4895 = vst.msk [vmem:[%s8935_s18] sm:$0xf] %vm4894_vm8, %v5826_v28  ;;  %v4767_v43 = vpack.c.bf16 %v4737_v3, %v4736_v61  ;;  %v5829_v54 = vpack.c.bf16 %v4737_v3, %v4737_v3  ;;  %v4735_v25 = vadd.f32 %v4610_v13, %v4265_v52  ;;  %v4270_v4 = vadd.f32 %v6257_v2, %v3544_v23  ;;  %v6292_v24 = vpop.f32.mrf.mxu0  ;;  %v9349_v61 = vld [vmem:[#allocation2_spill] sm:$0xff] }
 0x1ef   : > { %v4153_v7 = vpop.f32.mrf.mxu1  ;;  %v3191_v13 = vadd.f32 %v9350_v32, %v9349_v61 }
 0x1f0   : > { %4898 = vst.msk [vmem:[%s8935_s18 + $0xc] sm:$0xf] %vm4894_vm8, %v5829_v54  ;;  %v4929_v18 = vunpack.c.l.bf16 %v4767_v43  ;;  %v4930_v53 = vunpack.c.h.bf16 %v4767_v43  ;;  %v4766_v17 = vpack.c.bf16 %v4735_v25, %v4734_v15  ;;  %v5827_v49 = vpack.c.bf16 %v4735_v25, %v4735_v25  ;;  %v4626_v8 = vpop.f32.mrf.mxu0 }
 0x1f1   : > { %v4740_v6 = vadd.f32 %v6291_v45, %v4270_v4  ;;  %v4268_v21 = vadd.f32 %v4153_v7, %v3542_v62  ;;  %v6258_v20 = vpop.f32.mrf.mxu1 }
 0x1f2   : > { %v4963_v60 = vsel %vm4959_vm9, %v4929_v18, 0.0  ;;  %v5031_v39 = vmul.f32 %v4929_v18, %v4929_v18  ;;  %4896 = vst.msk [vmem:[%s8935_s18 + $0x4] sm:$0xf] %vm4894_vm8, %v5827_v49  ;;  %v6295_v37 = vpop.f32.mrf.mxu0  ;;  %v4927_v15 = vunpack.c.l.bf16 %v4766_v17  ;;  %v4928_v50 = vunpack.c.h.bf16 %v4766_v17 }
 0x1f3   : > { %v5832_v48 = vpack.c.bf16 %v4740_v6, %v4740_v6  ;;  %v4738_v40 = vadd.f32 %v4623_v42, %v4268_v21  ;;  %v4156_v45 = vpop.f32.mrf.mxu1  ;;  %v4965_v30 = vsel %vm4959_vm9, %v4930_v53, 0.0  ;;  %v5032_v1 = vmul.f32 %v4930_v53, %v4930_v53 }
 0x1f4   : > { %v4271_v23 = vadd.f32 %v6258_v20, %v3545_v44  ;;  %v4269_v28 = vadd.f32 %v4156_v45, %v3543_v27  ;;  %v4639_v3 = vpop.f32.mrf.mxu0  ;;  %v4960_v52 = vsel %vm4959_vm9, %v4927_v15, 0.0  ;;  %v4961_v51 = vsel %vm4959_vm9, %v4928_v50, 0.0 }
 0x1f5   : > { %v5029_v31 = vmul.f32 %v4927_v15, %v4927_v15  ;;  %v5030_v38 = vmul.f32 %v4928_v50, %v4928_v50  ;;  %4901 = vst.msk [vmem:[%s8935_s18 + $0x18] sm:$0xf] %vm4894_vm8, %v5832_v48  ;;  %v6261_v2 = vpop.f32.mrf.mxu1  ;;  %v4962_v43 = vadd.f32 %v4961_v51, %v4960_v52  ;;  %v5830_v54 = vpack.c.bf16 %v4738_v40, %v4738_v40 }
 0x1f6   : > { %v4741_v42 = vadd.f32 %v6292_v24, %v4271_v23  ;;  %v4739_v25 = vadd.f32 %v4626_v8, %v4269_v28  ;;  %v6296_v4 = vpop.f32.mrf.mxu0  ;;  %v5064_v62 = vsel %vm4959_vm9, %v5031_v39, 0.0  ;;  %v4274_v27 = vadd.f32 %v6261_v2, %v3548_v0 }
 0x1f7   : > { %v5061_v44 = vsel %vm4959_vm9, %v5029_v31, 0.0  ;;  %v5062_v47 = vsel %vm4959_vm9, %v5030_v38, 0.0  ;;  %v4169_v7 = vpop.f32.mrf.mxu1  ;;  %v4964_v18 = vadd.f32 %v4963_v60, %v4962_v43  ;;  %4899 = vst.msk [vmem:[%s8935_s18 + $0x10] sm:$0xf] %vm4894_vm8, %v5830_v54 }
 0x1f8   : > { %v5063_v53 = vadd.f32 %v5062_v47, %v5061_v44  ;;  %v4769_v17 = vpack.c.bf16 %v4741_v42, %v4740_v6  ;;  %v5833_v49 = vpack.c.bf16 %v4741_v42, %v4741_v42  ;;  %v4642_v22 = vpop.f32.mrf.mxu0  ;;  %v4768_v24 = vpack.c.bf16 %v4739_v25, %v4738_v40  ;;  %v9351_v40 = vld [vmem:[#allocation23_spill] sm:$0xff] }
 0x1f9   : > { %v5831_v8 = vpack.c.bf16 %v4739_v25, %v4739_v25  ;;  %v4744_v35 = vadd.f32 %v6295_v37, %v4274_v27  ;;  %v4272_v21 = vadd.f32 %v4169_v7, %v3546_v12  ;;  %v6262_v20 = vpop.f32.mrf.mxu1  ;;  %v4966_v0 = vadd.f32 %v4965_v30, %v4964_v18  ;;  %v9353_v18 = vld [vmem:[#allocation25_spill] sm:$0xff] }
 0x1fa   : > { %v5065_v63 = vadd.f32 %v5064_v62, %v5063_v53  ;;  %4902 = vst.msk [vmem:[%s8935_s18 + $0x1c] sm:$0xf] %vm4894_vm8, %v5833_v49  ;;  %v4933_v61 = vunpack.c.l.bf16 %v4769_v17  ;;  %v4934_v32 = vunpack.c.h.bf16 %v4769_v17  ;;  %v6299_v39 = vpop.f32.mrf.mxu0  ;;  %v4931_v60 = vunpack.c.l.bf16 %v4768_v24  ;;  %v9352_v62 = vld [vmem:[#allocation21_spill] sm:$0xff] }
 0x1fb   : > { %4900 = vst.msk [vmem:[%s8935_s18 + $0x14] sm:$0xf] %vm4894_vm8, %v5831_v8  ;;  %v4932_v15 = vunpack.c.h.bf16 %v4768_v24  ;;  %v5836_v6 = vpack.c.bf16 %v4744_v35, %v4744_v35  ;;  %v4742_v50 = vadd.f32 %v4639_v3, %v4272_v21  ;;  %v4172_v48 = vpop.f32.mrf.mxu1  ;;  %v3550_v45 = vadd.f32 %v9351_v40, %v3191_v13 }
 0x1fc   : > { %v5066_v12 = vsel %vm4959_vm9, %v5032_v1, 0.0  ;;  %v4971_v37 = vsel %vm4959_vm9, %v4933_v61, 0.0  ;;  %v5035_v23 = vmul.f32 %v4933_v61, %v4933_v61  ;;  %v4655_v28 = vpop.f32.mrf.mxu0  ;;  %v5036_v52 = vmul.f32 %v4934_v32, %v4934_v32 }
 0x1fd   : > { %v4967_v30 = vsel %vm4959_vm9, %v4931_v60, 0.0  ;;  %v5033_v51 = vmul.f32 %v4931_v60, %v4931_v60  ;;  %v5034_v31 = vmul.f32 %v4932_v15, %v4932_v15  ;;  %4905 = vst.msk [vmem:[%s8935_s18 + $0x28] sm:$0xf] %vm4894_vm8, %v5836_v6  ;;  %v6265_v38 = vpop.f32.mrf.mxu1  ;;  %v4973_v2 = vsel %vm4959_vm9, %v4934_v32, 0.0 }
 0x1fe   : > { %v4968_v3 = vadd.f32 %v4967_v30, %v4966_v0  ;;  %v4969_v13 = vsel %vm4959_vm9, %v4932_v15, 0.0  ;;  %v5067_v43 = vadd.f32 %v5066_v12, %v5065_v63  ;;  %v6300_v1 = vpop.f32.mrf.mxu0  ;;  %v5072_v54 = vsel %vm4959_vm9, %v5035_v23, 0.0 }
 0x1ff   : > { %v5068_v42 = vsel %vm4959_vm9, %v5033_v51, 0.0  ;;  %v5834_v25 = vpack.c.bf16 %v4742_v50, %v4742_v50  ;;  %v4275_v44 = vadd.f32 %v6262_v20, %v9352_v62  ;;  %v4185_v47 = vpop.f32.mrf.mxu1  ;;  %v4273_v53 = vadd.f32 %v4172_v48, %v9353_v18 }
 0x200   : > { %v4970_v27 = vadd.f32 %v4969_v13, %v4968_v3  ;;  %v5069_v7 = vadd.f32 %v5068_v42, %v5067_v43  ;;  %v4278_v17 = vadd.f32 %v6265_v38, %v8963_v26  ;;  %v4658_v49 = vpop.f32.mrf.mxu0  ;;  %v5074_v24 = vsel %vm4959_vm9, %v5036_v52, 0.0 }
 0x201   : > { %v5070_v8 = vsel %vm4959_vm9, %v5034_v31, 0.0  ;;  %4903 = vst.msk [vmem:[%s8935_s18 + $0x20] sm:$0xf] %vm4894_vm8, %v5834_v25  ;;  %v4745_v21 = vadd.f32 %v6296_v4, %v4275_v44  ;;  %v4276_v63 = vadd.f32 %v4185_v47, %v3550_v45  ;;  %v6266_v61 = vpop.f32.mrf.mxu1  ;;  %v4743_v0 = vadd.f32 %v4642_v22, %v4273_v53 }
 0x202   : > { %v4972_v32 = vadd.f32 %v4971_v37, %v4970_v27  ;;  %v5071_v20 = vadd.f32 %v5070_v8, %v5069_v7  ;;  %v4748_v60 = vadd.f32 %v6299_v39, %v4278_v17  ;;  %v9001_v15 = vpop.f32.mrf.mxu0  ;;  %v4279_v40 = vadd.f32 %v6266_v61, %v8865_v10 }
 0x203   : > { %v4771_v6 = vpack.c.bf16 %v4745_v21, %v4744_v35  ;;  %v5837_v26 = vpack.c.bf16 %v4745_v21, %v4745_v21  ;;  %v4746_v48 = vadd.f32 %v4655_v28, %v4276_v63  ;;  %v4188_v12 = vpop.f32.mrf.mxu1  ;;  %v4770_v52 = vpack.c.bf16 %v4743_v0, %v4742_v50 }
 0x204   : > { %v5073_v23 = vadd.f32 %v5072_v54, %v5071_v20  ;;  %v5835_v30 = vpack.c.bf16 %v4743_v0, %v4743_v0  ;;  %v4974_v4 = vadd.f32 %v4973_v2, %v4972_v32  ;;  %v4671_v45 = vpop.f32.mrf.mxu0  ;;  %v5840_v37 = vpack.c.bf16 %v4748_v60, %v4748_v60 }
 0x205   : > { %4906 = vst.msk [vmem:[%s8935_s18 + $0x2c] sm:$0xf] %vm4894_vm8, %v5837_v26  ;;  %v4937_v22 = vunpack.c.l.bf16 %v4771_v6  ;;  %v4938_v39 = vunpack.c.h.bf16 %v4771_v6  ;;  %v5838_v51 = vpack.c.bf16 %v4746_v48, %v4746_v48  ;;  %v6269_v35 = vpop.f32.mrf.mxu1  ;;  %v4935_v28 = vunpack.c.l.bf16 %v4770_v52 }
 0x206   : > { %4904 = vst.msk [vmem:[%s8935_s18 + $0x24] sm:$0xf] %vm4894_vm8, %v5835_v30  ;;  %v4936_v31 = vunpack.c.h.bf16 %v4770_v52  ;;  %v5075_v10 = vadd.f32 %v5074_v24, %v5073_v23  ;;  %v4749_v38 = vadd.f32 %v6300_v1, %v4279_v40  ;;  %v6304_v3 = vpop.f32.mrf.mxu0  ;;  %4909 = vst.msk [vmem:[%s8935_s18 + $0x38] sm:$0xf] %vm4894_vm8, %v5840_v37  ;;  %v4277_v17 = vadd.f32 %v4188_v12, %v8868_v57 }
 0x207   : > { %v4979_v50 = vsel %vm4959_vm9, %v4937_v22, 0.0  ;;  %4907 = vst.msk [vmem:[%s8935_s18 + $0x30] sm:$0xf] %vm4894_vm8, %v5838_v51  ;;  %v4201_v2 = vpop.f32.mrf.mxu1  ;;  %v4981_v13 = vsel %vm4959_vm9, %v4938_v39, 0.0  ;;  %v4975_v43 = vsel %vm4959_vm9, %v4935_v28, 0.0  ;;  %v5037_v54 = vmul.f32 %v4935_v28, %v4935_v28 }
 0x208   : > { %v5038_v42 = vmul.f32 %v4936_v31, %v4936_v31  ;;  %v9015_v25 = vpop.f32.mrf.mxu0  ;;  %v5039_v62 = vmul.f32 %v4937_v22, %v4937_v22  ;;  %v5040_v44 = vmul.f32 %v4938_v39, %v4938_v39  ;;  %v4976_v1 = vadd.f32 %v4975_v43, %v4974_v4 }
 0x209   : > { %v4773_v47 = vpack.c.bf16 %v4749_v38, %v4748_v60  ;;  %v6270_v27 = vpop.f32.mrf.mxu1  ;;  %v4977_v7 = vsel %vm4959_vm9, %v4936_v31, 0.0  ;;  %v5076_v18 = vsel %vm4959_vm9, %v5037_v54, 0.0  ;;  %v5841_v53 = vpack.c.bf16 %v4749_v38, %v4749_v38 }
 0x20a   : > { %v4978_v8 = vadd.f32 %v4977_v7, %v4976_v1  ;;  %v5077_v21 = vadd.f32 %v5076_v18, %v5075_v10  ;;  %v5078_v63 = vsel %vm4959_vm9, %v5038_v42, 0.0  ;;  %v4747_v0 = vadd.f32 %v4658_v49, %v4277_v17 }
 0x20b   : > { %v9020_v24 = vpop.f32.mrf.mxu0  ;;  %v4941_v61 = vunpack.c.l.bf16 %v4773_v47  ;;  %v4204_v32 = vpop.f32.mrf.mxu1  ;;  %4910 = vst.msk [vmem:[%s8935_s18 + $0x3c] sm:$0xf] %vm4894_vm8, %v5841_v53  ;;  %v4942_v20 = vunpack.c.h.bf16 %v4773_v47  ;;  %v4282_v60 = vadd.f32 %v6269_v35, %v8871_v41  ;;  %v4280_v6 = vadd.f32 %v4201_v2, %v8874_v46 }
 0x20c   : > { %v5080_v40 = vsel %vm4959_vm9, %v5039_v62, 0.0  ;;  %v4980_v57 = vadd.f32 %v4979_v50, %v4978_v8  ;;  %v5079_v12 = vadd.f32 %v5078_v63, %v5077_v21  ;;  %v4283_v23 = vadd.f32 %v6270_v27, %v8877_v33 }
 0x20d   : > { %v4687_v26 = vpop.f32.mrf.mxu0  ;;  %v6273_v52 = vpop.f32.mrf.mxu1  ;;  %v5082_v30 = vsel %vm4959_vm9, %v5040_v44, 0.0  ;;  %v4987_v4 = vsel %vm4959_vm9, %v4941_v61, 0.0  ;;  %v4772_v22 = vpack.c.bf16 %v4747_v0, %v4746_v48  ;;  %v5839_v39 = vpack.c.bf16 %v4747_v0, %v4747_v0 }
 0x20e   : > { %v5081_v41 = vadd.f32 %v5080_v40, %v5079_v12  ;;  %v4982_v37 = vadd.f32 %v4981_v13, %v4980_v57  ;;  %v4752_v46 = vadd.f32 %v9001_v15, %v4282_v60  ;;  %v4750_v51 = vadd.f32 %v4671_v45, %v4280_v6 }
 0x20f   : > { %v9031_v49 = vpop.f32.mrf.mxu0  ;;  %v4217_v35 = vpop.f32.mrf.mxu1  ;;  %v4989_v28 = vsel %vm4959_vm9, %v4942_v20, 0.0  ;;  %v5043_v31 = vmul.f32 %v4941_v61, %v4941_v61  ;;  %4908 = vst.msk [vmem:[%s8935_s18 + $0x34] sm:$0xf] %vm4894_vm8, %v5839_v39  ;;  %v4939_v33 = vunpack.c.l.bf16 %v4772_v22  ;;  %v4940_v10 = vunpack.c.h.bf16 %v4772_v22 }
 0x210   : > { %v5083_v48 = vadd.f32 %v5082_v30, %v5081_v41  ;;  %v5844_v50 = vpack.c.bf16 %v4752_v46, %v4752_v46  ;;  %v5842_v2 = vpack.c.bf16 %v4750_v51, %v4750_v51  ;;  %v4753_v43 = vadd.f32 %v6304_v3, %v4283_v23 }
 0x211   : > { %v9037_v38 = vpop.f32.mrf.mxu0  ;;  %v6274_v13 = vpop.f32.mrf.mxu1  ;;  %v5044_v54 = vmul.f32 %v4942_v20, %v4942_v20  ;;  %v4983_v15 = vsel %vm4959_vm9, %v4939_v33, 0.0  ;;  %v5041_v45 = vmul.f32 %v4939_v33, %v4939_v33  ;;  %v5042_v42 = vmul.f32 %v4940_v10, %v4940_v10 }
 0x212   : > { %v4984_v44 = vadd.f32 %v4983_v15, %v4982_v37  ;;  %4913 = vst.msk [vmem:[%s8935_s18 + $0x48] sm:$0xf] %vm4894_vm8, %v5844_v50  ;;  %4911 = vst.msk [vmem:[%s8935_s18 + $0x40] sm:$0xf] %vm4894_vm8, %v5842_v2  ;;  %v4775_v1 = vpack.c.bf16 %v4753_v43, %v4752_v46  ;;  %v5845_v47 = vpack.c.bf16 %v4753_v43, %v4753_v43  ;;  %v4985_v3 = vsel %vm4959_vm9, %v4940_v10, 0.0 }
 0x213   : > { %v6311_v62 = vpop.f32.mrf.mxu0  ;;  %v4281_v27 = vadd.f32 %v4204_v32, %v8880_v19  ;;  %v4220_v7 = vpop.f32.mrf.mxu1  ;;  %v5084_v18 = vsel %vm4959_vm9, %v5041_v45, 0.0  ;;  %v4286_v53 = vadd.f32 %v6273_v52, %v8883_v14  ;;  %v4284_v17 = vadd.f32 %v4217_v35, %v8886_v16 }
 0x214   : > { %v4986_v21 = vadd.f32 %v4985_v3, %v4984_v44  ;;  %v5085_v63 = vadd.f32 %v5084_v18, %v5083_v48  ;;  %v5086_v61 = vsel %vm4959_vm9, %v5042_v42, 0.0  ;;  %4914 = vst.msk [vmem:[%s8935_s18 + $0x4c] sm:$0xf] %vm4894_vm8, %v5845_v47  ;;  %v4945_v20 = vunpack.c.l.bf16 %v4775_v1 }
 0x215   : > { %v4703_v8 = vpop.f32.mrf.mxu0  ;;  %v6277_v0 = vpop.f32.mrf.mxu1  ;;  %v4946_v60 = vunpack.c.h.bf16 %v4775_v1  ;;  %v4751_v19 = vadd.f32 %v9015_v25, %v4281_v27  ;;  %v4756_v32 = vadd.f32 %v9020_v24, %v4286_v53  ;;  %v4754_v6 = vadd.f32 %v4687_v26, %v4284_v17 }
 0x216   : > { %v5088_v40 = vsel %vm4959_vm9, %v5043_v31, 0.0  ;;  %v4988_v14 = vadd.f32 %v4987_v4, %v4986_v21  ;;  %v5087_v16 = vadd.f32 %v5086_v61, %v5085_v63  ;;  %v4287_v57 = vadd.f32 %v6274_v13, %v8889_v11 }
 0x217   : > { %v4233_v12 = vpop.f32.mrf.mxu1  ;;  %v5090_v23 = vsel %vm4959_vm9, %v5044_v54, 0.0  ;;  %v4995_v52 = vsel %vm4959_vm9, %v4945_v20, 0.0  ;;  %v4774_v30 = vpack.c.bf16 %v4751_v19, %v4750_v51  ;;  %v5843_v22 = vpack.c.bf16 %v4751_v19, %v4751_v19  ;;  %v9058_v25 = vpop.f32.mrf.mxu0 }
 0x218   : > { %v5089_v24 = vadd.f32 %v5088_v40, %v5087_v16  ;;  %v4990_v26 = vadd.f32 %v4989_v28, %v4988_v14  ;;  %v5848_v39 = vpack.c.bf16 %v4756_v32, %v4756_v32  ;;  %v5846_v41 = vpack.c.bf16 %v4754_v6, %v4754_v6 }
 0x219   : > { %v6278_v4 = vpop.f32.mrf.mxu1  ;;  %v5047_v37 = vmul.f32 %v4945_v20, %v4945_v20  ;;  %v5048_v46 = vmul.f32 %v4946_v60, %v4946_v60  ;;  %4912 = vst.msk [vmem:[%s8935_s18 + $0x44] sm:$0xf] %vm4894_vm8, %v5843_v22  ;;  %v4943_v11 = vunpack.c.l.bf16 %v4774_v30  ;;  %v4944_v35 = vunpack.c.h.bf16 %v4774_v30  ;;  %v4706_v13 = vpop.f32.mrf.mxu0 }
 0x21a   : > { %v5091_v31 = vadd.f32 %v5090_v23, %v5089_v24  ;;  %4917 = vst.msk [vmem:[%s8935_s18 + $0x58] sm:$0xf] %vm4894_vm8, %v5848_v39  ;;  %4915 = vst.msk [vmem:[%s8935_s18 + $0x50] sm:$0xf] %vm4894_vm8, %v5846_v41  ;;  %v4757_v51 = vadd.f32 %v9031_v49, %v4287_v57  ;;  %v4285_v33 = vadd.f32 %v4220_v7, %v8892_v29  ;;  %v4997_v61 = vsel %vm4959_vm9, %v4946_v60, 0.0 }
 0x21b   : > { %v4290_v28 = vadd.f32 %v6277_v0, %v8895_v9  ;;  %v4236_v10 = vpop.f32.mrf.mxu1  ;;  %v4991_v48 = vsel %vm4959_vm9, %v4943_v11, 0.0  ;;  %v4993_v50 = vsel %vm4959_vm9, %v4944_v35, 0.0  ;;  %v5045_v2 = vmul.f32 %v4943_v11, %v4943_v11  ;;  %v6315_v21 = vpop.f32.mrf.mxu0 }
 0x21c   : > { %v5046_v43 = vmul.f32 %v4944_v35, %v4944_v35  ;;  %v4992_v54 = vadd.f32 %v4991_v48, %v4990_v26  ;;  %v4777_v15 = vpack.c.bf16 %v4757_v51, %v4756_v32  ;;  %v5849_v45 = vpack.c.bf16 %v4757_v51, %v4757_v51 }
 0x21d   : > { %v4755_v42 = vadd.f32 %v9037_v38, %v4285_v33  ;;  %v6281_v44 = vpop.f32.mrf.mxu1  ;;  %v5092_v49 = vsel %vm4959_vm9, %v5045_v2, 0.0  ;;  %v4760_v9 = vadd.f32 %v6311_v62, %v4290_v28  ;;  %v4288_v1 = vadd.f32 %v4233_v12, %v8898_v34 }
 0x21e   : > { %v5094_v29 = vsel %vm4959_vm9, %v5046_v43, 0.0  ;;  %v4994_v47 = vadd.f32 %v4993_v50, %v4992_v54  ;;  %v5093_v27 = vadd.f32 %v5092_v49, %v5091_v31  ;;  %4918 = vst.msk [vmem:[%s8935_s18 + $0x5c] sm:$0xf] %vm4894_vm8, %v5849_v45  ;;  %v4949_v7 = vunpack.c.l.bf16 %v4777_v15 }
 0x21f   : > { %v4950_v3 = vunpack.c.h.bf16 %v4777_v15  ;;  %v4776_v18 = vpack.c.bf16 %v4755_v42, %v4754_v6  ;;  %v5847_v53 = vpack.c.bf16 %v4755_v42, %v4755_v42  ;;  %v5852_v17 = vpack.c.bf16 %v4760_v9, %v4760_v9  ;;  %v4249_v63 = vpop.f32.mrf.mxu1 }
 0x220   : > { %v4758_v38 = vadd.f32 %v4703_v8, %v4288_v1  ;;  %v5096_v62 = vsel %vm4959_vm9, %v5047_v37, 0.0  ;;  %v4996_v20 = vadd.f32 %v4995_v52, %v4994_v47  ;;  %v5095_v34 = vadd.f32 %v5094_v29, %v5093_v27  ;;  %v4719_v52 = vpop.f32.mrf.mxu0 }
 0x221   : > { %v5098_v0 = vsel %vm4959_vm9, %v5048_v46, 0.0  ;;  %v5003_v19 = vsel %vm4959_vm9, %v4949_v7, 0.0  ;;  %4916 = vst.msk [vmem:[%s8935_s18 + $0x54] sm:$0xf] %vm4894_vm8, %v5847_v53  ;;  %v4947_v32 = vunpack.c.l.bf16 %v4776_v18  ;;  %v4948_v40 = vunpack.c.h.bf16 %v4776_v18  ;;  %4921 = vst.msk [vmem:[%s8935_s18 + $0x68] sm:$0xf] %vm4894_vm8, %v5852_v17  ;;  %v6282_v30 = vpop.f32.mrf.mxu1 }
 0x222   : > { %v5097_v8 = vadd.f32 %v5096_v62, %v5095_v34  ;;  %v4998_v6 = vadd.f32 %v4997_v61, %v4996_v20  ;;  %v5850_v14 = vpack.c.bf16 %v4758_v38, %v4758_v38  ;;  %v4291_v60 = vadd.f32 %v6278_v4, %v8901_v59  ;;  %v6316_v50 = vpop.f32.mrf.mxu0 }
 0x223   : > { %v5051_v16 = vmul.f32 %v4949_v7, %v4949_v7  ;;  %v5052_v57 = vmul.f32 %v4950_v3, %v4950_v3  ;;  %v4999_v12 = vsel %vm4959_vm9, %v4947_v32, 0.0  ;;  %v5001_v23 = vsel %vm4959_vm9, %v4948_v40, 0.0  ;;  %v4252_v42 = vpop.f32.mrf.mxu1 }
 0x224   : > { %v5000_v22 = vadd.f32 %v4999_v12, %v4998_v6  ;;  %v5049_v24 = vmul.f32 %v4947_v32, %v4947_v32  ;;  %v5050_v26 = vmul.f32 %v4948_v40, %v4948_v40  ;;  %v5099_v39 = vadd.f32 %v5098_v0, %v5097_v8  ;;  %4919 = vst.msk [vmem:[%s8935_s18 + $0x60] sm:$0xf] %vm4894_vm8, %v5850_v14 }
 0x225   : > { %v4761_v41 = vadd.f32 %v9058_v25, %v4291_v60  ;;  %v4289_v37 = vadd.f32 %v4236_v10, %v8904_v58  ;;  %v4294_v59 = vadd.f32 %v6281_v44, %v8909_v55  ;;  %v4292_v4 = vadd.f32 %v4249_v63, %v8914_v56  ;;  %v4722_v63 = vpop.f32.mrf.mxu0 }
 0x226   : > { %v5002_v46 = vadd.f32 %v5001_v23, %v5000_v22  ;;  %v5100_v11 = vsel %vm4959_vm9, %v5049_v24, 0.0  ;;  %v5102_v35 = vsel %vm4959_vm9, %v5050_v26, 0.0  ;;  %v4295_v31 = vadd.f32 %v6282_v30, %v8920_v36 }
 0x227   : > { %v5101_v51 = vadd.f32 %v5100_v11, %v5099_v39  ;;  %v4779_v33 = vpack.c.bf16 %v4761_v41, %v4760_v9  ;;  %v5853_v28 = vpack.c.bf16 %v4761_v41, %v4761_v41  ;;  %v4759_v48 = vadd.f32 %v4706_v13, %v4289_v37 }
 0x228   : > { %v5004_v25 = vadd.f32 %v5003_v19, %v5002_v46  ;;  %v4764_v2 = vadd.f32 %v6315_v21, %v4294_v59  ;;  %v4762_v58 = vadd.f32 %v4719_v52, %v4292_v4  ;;  %v4765_v55 = vadd.f32 %v6316_v50, %v4295_v31 }
 0x229   : > { %v5005_v56 = vsel %vm4959_vm9, %v4950_v3, 0.0  ;;  %v5104_v10 = vsel %vm4959_vm9, %v5051_v16, 0.0  ;;  %v5103_v43 = vadd.f32 %v5102_v35, %v5101_v51  ;;  %4922 = vst.msk [vmem:[%s8935_s18 + $0x6c] sm:$0xf] %vm4894_vm8, %v5853_v28  ;;  %v4778_v36 = vpack.c.bf16 %v4759_v48, %v4758_v38 }
 0x22a   : > { %v5851_v54 = vpack.c.bf16 %v4759_v48, %v4759_v48  ;;  %v5006_v15 = vadd.f32 %v5005_v56, %v5004_v25  ;;  %v5856_v45 = vpack.c.bf16 %v4764_v2, %v4764_v2  ;;  %v5854_v13 = vpack.c.bf16 %v4762_v58, %v4762_v58 }
 0x22b   : > { %v5106_v44 = vsel %vm4959_vm9, %v5052_v57, 0.0  ;;  %v5105_v49 = vadd.f32 %v5104_v10, %v5103_v43  ;;  %v4953_v29 = vunpack.c.l.bf16 %v4779_v33  ;;  %v4951_v9 = vunpack.c.l.bf16 %v4778_v36 }
 0x22c   : > { %4920 = vst.msk [vmem:[%s8935_s18 + $0x64] sm:$0xf] %vm4894_vm8, %v5851_v54  ;;  %v4952_v1 = vunpack.c.h.bf16 %v4778_v36  ;;  %4925 = vst.msk [vmem:[%s8935_s18 + $0x78] sm:$0xf] %vm4894_vm8, %v5856_v45  ;;  %v4781_v47 = vpack.c.bf16 %v4765_v55, %v4764_v2  ;;  %v4954_v27 = vunpack.c.h.bf16 %v4779_v33  ;;  %v5857_v3 = vpack.c.bf16 %v4765_v55, %v4765_v55 }
 0x22d   : > { %4923 = vst.msk [vmem:[%s8935_s18 + $0x70] sm:$0xf] %vm4894_vm8, %v5854_v13  ;;  %v5107_v7 = vadd.f32 %v5106_v44, %v5105_v49  ;;  %v4293_v18 = vadd.f32 %v4252_v42, %v8926_v5  ;;  %v5007_v53 = vsel %vm4959_vm9, %v4951_v9, 0.0  ;;  %v5053_v17 = vmul.f32 %v4951_v9, %v4951_v9 }
 0x22e   : > { %v5008_v38 = vadd.f32 %v5007_v53, %v5006_v15  ;;  %v5054_v21 = vmul.f32 %v4952_v1, %v4952_v1  ;;  %4926 = vst.msk [vmem:[%s8935_s18 + $0x7c] sm:$0xf] %vm4894_vm8, %v5857_v3  ;;  %v5055_v61 = vmul.f32 %v4953_v29, %v4953_v29  ;;  %v5009_v62 = vsel %vm4959_vm9, %v4952_v1, 0.0 }
 0x22f   : > { %v5108_v20 = vsel %vm4959_vm9, %v5053_v17, 0.0  ;;  %v4763_v34 = vadd.f32 %v4722_v63, %v4293_v18  ;;  %v5056_v0 = vmul.f32 %v4954_v27, %v4954_v27  ;;  %v5011_v5 = vsel %vm4959_vm9, %v4953_v29, 0.0 }
 0x230   : > { %v5010_v19 = vadd.f32 %v5009_v62, %v5008_v38  ;;  %v5109_v32 = vadd.f32 %v5108_v20, %v5107_v7  ;;  %v5110_v40 = vsel %vm4959_vm9, %v5054_v21, 0.0  ;;  %v5013_v6 = vsel %vm4959_vm9, %v4954_v27, 0.0 }
 0x231   : > { %v4780_v8 = vpack.c.bf16 %v4763_v34, %v4762_v58  ;;  %v5855_v16 = vpack.c.bf16 %v4763_v34, %v4763_v34  ;;  %v5112_v57 = vsel %vm4959_vm9, %v5055_v61, 0.0  ;;  %v4957_v12 = vunpack.c.l.bf16 %v4781_v47 }
 0x232   : > { %v5012_v14 = vadd.f32 %v5011_v5, %v5010_v19  ;;  %v5111_v60 = vadd.f32 %v5110_v40, %v5109_v32  ;;  %v5114_v30 = vsel %vm4959_vm9, %v5056_v0, 0.0  ;;  %v4958_v26 = vunpack.c.h.bf16 %v4781_v47 }
 0x233   : > { %v4955_v23 = vunpack.c.l.bf16 %v4780_v8  ;;  %v4956_v52 = vunpack.c.h.bf16 %v4780_v8  ;;  %4924 = vst.msk [vmem:[%s8935_s18 + $0x74] sm:$0xf] %vm4894_vm8, %v5855_v16  ;;  %v5059_v46 = vmul.f32 %v4957_v12, %v4957_v12  ;;  %v5019_v33 = vsel %vm4959_vm9, %v4957_v12, 0.0 }
 0x234   : > { %v5113_v22 = vadd.f32 %v5112_v57, %v5111_v60  ;;  %v5014_v24 = vadd.f32 %v5013_v6, %v5012_v14  ;;  %v5060_v28 = vmul.f32 %v4958_v26, %v4958_v26  ;;  %v5021_v2 = vsel %vm4959_vm9, %v4958_v26, 0.0 }
 0x235   : > { %v5015_v39 = vsel %vm4959_vm9, %v4955_v23, 0.0  ;;  %v5057_v41 = vmul.f32 %v4955_v23, %v4955_v23  ;;  %v5058_v37 = vmul.f32 %v4956_v52, %v4956_v52  ;;  %v5017_v11 = vsel %vm4959_vm9, %v4956_v52, 0.0 }
 0x236   : > { %v5016_v59 = vadd.f32 %v5015_v39, %v5014_v24  ;;  %v5115_v4 = vadd.f32 %v5114_v30, %v5113_v22  ;;  %v5120_v58 = vsel %vm4959_vm9, %v5059_v46, 0.0  ;;  %v5122_v10 = vsel %vm4959_vm9, %v5060_v28, 0.0 }
 0x237   : > { %v5116_v35 = vsel %vm4959_vm9, %v5057_v41, 0.0  ;;  %v5118_v48 = vsel %vm4959_vm9, %v5058_v37, 0.0 }
 0x238   : > { %v5018_v31 = vadd.f32 %v5017_v11, %v5016_v59  ;;  %v5117_v51 = vadd.f32 %v5116_v35, %v5115_v4 }
 0x23a   : > { %v5020_v50 = vadd.f32 %v5019_v33, %v5018_v31  ;;  %v5119_v25 = vadd.f32 %v5118_v48, %v5117_v51 }
 0x23c   : > { %v5022_v55 = vadd.f32 %v5021_v2, %v5020_v50  ;;  %v5121_v56 = vadd.f32 %v5120_v58, %v5119_v25 }
 0x23e   : > { %v5023_v43 = vrot.slane %v5022_v55, 4  ;;  %v5123_v36 = vadd.f32 %v5122_v10, %v5121_v56 }
 0x240   : > { %v5024_v54 = vadd.f32 %v5023_v43, %v5022_v55  ;;  %v5124_v15 = vrot.slane %v5123_v36, 4 }
 0x242   : > { %v5025_v45 = vrot.slane %v5024_v54, 2  ;;  %v5125_v13 = vadd.f32 %v5124_v15, %v5123_v36 }
 0x244   : > { %v5026_v42 = vadd.f32 %v5025_v45, %v5024_v54  ;;  %v5126_v44 = vrot.slane %v5125_v13, 2 }
 0x246   : > { %v5027_v49 = vrot.slane %v5026_v42, 1  ;;  %v5127_v29 = vadd.f32 %v5126_v44, %v5125_v13 }
 0x248   : > { %v5028_v9 = vadd.f32 %v5027_v49, %v5026_v42  ;;  %v5128_v1 = vrot.slane %v5127_v29, 1 }
 0x24a   : > { %v5129_v47 = vadd.f32 %v5128_v1, %v5127_v29  ;;  %5135 = vst.msk [vmem:[%s205_s22] sm:$0x1] %vm5134_vm10, %v5028_v9 }
 0x24c   : > { %5136 = vst.msk [vmem:[%s205_s22 + $0x1] sm:$0x1] %vm5134_vm10, %v5129_v47 }
 0x24d PF: > { %s14_s14 = sadd.s32 1, %s6426_s14   ;;  %s9354_s12 = smov %s6422_s13 }
 0x24e   : > { %p11_p5 = scmp.ge.s32.totalorder %s14_s14, 4   ;;  %s9355_s13 = smov %s9357_s15 }
 0x250   :  { %13 = sbr.rel (!%p11_p5) target bundleno = 2 (0x2), region = 88 }

</bundles_post_ra>
